<compile_context>
chip_gen: v5e
topology: v5e:2x2
jax: 0.10.0
libtpu: 0.0.40
codegen_flags: <defaults>
</compile_context>

<pallas_src>
import functools

import jax
import jax.numpy as jnp
from jax.experimental import pallas as pl
from jax.experimental.pallas import tpu as pltpu

_LANE = 128
_SUBLANE = 8
_MAX_ROW_TILE = 512   # row-tile for large batches
_MIN_SPLIT_B = 64     # v7x: split >=64-row batches into 2 parallel steps (one per TC)


def _round_up(x, m):
    return (x + m - 1) // m * m


def _device_kind():
    try:
        return jax.devices()[0].device_kind.lower()
    except Exception:
        return ""


_KIND = _device_kind()
_BF16_EPILOGUE = "v5" not in _KIND   # bf16 VPU exists on v6e/v7x; v5e would unpack to f32
_NUM_TC = 2 if "v7" in _KIND else 1  # v7x has 2 TensorCores per chip


def _mlp_kernel(x_ref, w1_ref, b1_ref, w2q_ref, s2_ref, b2_ref, w3_ref, b3_ref,
                o_ref, *, bf16_epilogue):
    """relu(relu(x@W1+b1)@W2+b2)@W3+b3 for one row-tile of x.

    w1/w3 are bf16; w2 is int8 + per-output-channel f32 scale (dequantized to bf16
    in-kernel, scale folded in after the f32 accumulate). All three matmuls accumulate
    in f32 on the MXU; activations never leave VMEM.
    """
    x = x_ref[...].astype(jnp.bfloat16)

    h1 = jnp.dot(x, w1_ref[...], preferred_element_type=jnp.float32)
    if bf16_epilogue:
        h1 = jnp.maximum(h1.astype(jnp.bfloat16) + b1_ref[...].astype(jnp.bfloat16), 0.0)
    else:
        h1 = jnp.maximum(h1 + b1_ref[...], 0.0).astype(jnp.bfloat16)

    # int8 values are exactly representable in bf16; scale-after-accumulate is exact.
    w2 = w2q_ref[...].astype(jnp.bfloat16)
    h2 = jnp.dot(h1, w2, preferred_element_type=jnp.float32) * s2_ref[...]
    if bf16_epilogue:
        h2 = jnp.maximum(h2.astype(jnp.bfloat16) + b2_ref[...].astype(jnp.bfloat16), 0.0)
    else:
        h2 = jnp.maximum(h2 + b2_ref[...], 0.0).astype(jnp.bfloat16)

    o_ref[...] = jnp.dot(h2, w3_ref[...], preferred_element_type=jnp.float32) + b3_ref[...]


def prepare_dqn_params(w1, b1, w2, b2, w3, b3):
    """One-time parameter prep (call at init / weight load, NOT per forward).

    * Pads to TPU-friendly shapes (feature dim only to 32; hidden/action dims to 128).
    * Casts w1/w3 to bf16 (MXU-native), keeps biases f32.
    * Quantizes w2 to int8 with a per-output-channel f32 scale (dominant HBM bytes).
    Zero padding is mathematically inert for matmul+bias+ReLU on the valid slice.
    """
    D_in, H = w1.shape
    A = w3.shape[1]
    Dp = max(_round_up(D_in, 32), 32)
    Hp = _round_up(H, _LANE)
    Ap = _round_up(A, _LANE)

    w1p = jnp.zeros((Dp, Hp), jnp.bfloat16).at[:D_in, :H].set(w1.astype(jnp.bfloat16))
    b1p = jnp.zeros((1, Hp), jnp.float32).at[0, :H].set(b1.astype(jnp.float32))

    # int8 per-output-channel (per-column) quantization of w2.
    w2f = jnp.zeros((Hp, Hp), jnp.float32).at[:H, :H].set(w2.astype(jnp.float32))
    absmax = jnp.max(jnp.abs(w2f), axis=0, keepdims=True)              # (1, Hp)
    s2p = jnp.where(absmax > 0.0, absmax / 127.0, 1.0).astype(jnp.float32)
    w2qp = jnp.clip(jnp.round(w2f / s2p), -127.0, 127.0).astype(jnp.int8)
    b2p = jnp.zeros((1, Hp), jnp.float32).at[0, :H].set(b2.astype(jnp.float32))

    w3p = jnp.zeros((Hp, Ap), jnp.bfloat16).at[:H, :A].set(w3.astype(jnp.bfloat16))
    b3p = jnp.zeros((1, Ap), jnp.float32).at[0, :A].set(b3.astype(jnp.float32))

    return {
        "dims": (D_in, H, A),
        "padded": (w1p, b1p, w2qp, s2p, b2p, w3p, b3p),
    }


@functools.partial(jax.jit, static_argnames=("tile_b", "bf16_epilogue"))
def _dqn_forward_padded(xp, w1p, b1p, w2qp, s2p, b2p, w3p, b3p, *, tile_b, bf16_epilogue):
    Bp, Dp = xp.shape
    Hp = w1p.shape[1]
    Ap = w3p.shape[1]
    grid = (Bp // tile_b,)

    resident = lambda i: (0, 0)  # weights/biases: same block every step -> stay in VMEM

    kernel = functools.partial(_mlp_kernel, bf16_epilogue=bf16_epilogue)

    return pl.pallas_call(
        kernel,
        out_shape=jax.ShapeDtypeStruct((Bp, Ap), jnp.float32),
        grid=grid,
        in_specs=[
            pl.BlockSpec((tile_b, Dp), lambda i: (i, 0)),
            pl.BlockSpec((Dp, Hp), resident),   # w1 (bf16)
            pl.BlockSpec((1, Hp), resident),    # b1 (f32)
            pl.BlockSpec((Hp, Hp), resident),   # w2 (int8)
            pl.BlockSpec((1, Hp), resident),    # w2 per-column scale (f32)
            pl.BlockSpec((1, Hp), resident),    # b2 (f32)
            pl.BlockSpec((Hp, Ap), resident),   # w3 (bf16)
            pl.BlockSpec((1, Ap), resident),    # b3 (f32)
        ],
        out_specs=pl.BlockSpec((tile_b, Ap), lambda i: (i, 0)),
        compiler_params=pltpu.CompilerParams(
            dimension_semantics=("parallel",)),
    )(xp, w1p, b1p, w2qp, s2p, b2p, w3p, b3p)


def _choose_tiling(B):
    if B <= _MAX_ROW_TILE:
        if _NUM_TC >= 2 and B >= _MIN_SPLIT_B:
            # Two parallel grid steps so both v7x TensorCores get work on
            # compute-bound batches. Tiny batches keep the single-block path
            # (splitting would only duplicate the weight DMA into both cores).
            tile_b = _round_up((B + 1) // 2, _SUBLANE)
            Bp = 2 * tile_b
        else:
            Bp = _round_up(max(B, 1), _SUBLANE)
            tile_b = Bp
    else:
        tile_b = _MAX_ROW_TILE
        Bp = _round_up(B, tile_b)
    return Bp, tile_b


def dqn_forward(x, prepared):
    """Pallas-backed forward of the DQN MLP.

    x        : (B, D_in) float32
    prepared : output of prepare_dqn_params
    returns  : (B, A) float32
    """
    D_in, H, A = prepared["dims"]
    w1p, b1p, w2qp, s2p, b2p, w3p, b3p = prepared["padded"]
    Dp = w1p.shape[0]

    B = x.shape[0]
    Bp, tile_b = _choose_tiling(B)

    # Skip the wrapper-side pad entirely when shapes already line up (extra
    # un-hidden XLA pass over the input otherwise).
    if B == Bp and D_in == Dp and x.dtype == jnp.float32:
        xp = x
    else:
        xp = jnp.zeros((Bp, Dp), jnp.float32).at[:B, :D_in].set(x.astype(jnp.float32))

    out = _dqn_forward_padded(xp, w1p, b1p, w2qp, s2p, b2p, w3p, b3p,
                              tile_b=tile_b, bf16_epilogue=_BF16_EPILOGUE)
    return out[:B, :A]


def init_dqn_params(key, input_dim, hidden, num_actions):
    """Deterministic init mimicking torch.nn.Linear default:
    U(-1/sqrt(fan_in), 1/sqrt(fan_in)) for both weight and bias.
    Weights stored as (in_features, out_features) so the kernel computes x @ W + b."""
    def linear_init(k, fan_in, fan_out):
        kw, kb = jax.random.split(k)
        bound = 1.0 / jnp.sqrt(jnp.float32(fan_in))
        w = jax.random.uniform(kw, (fan_in, fan_out), jnp.float32, -bound, bound)
        b = jax.random.uniform(kb, (fan_out,), jnp.float32, -bound, bound)
        return w, b

    k1, k2, k3 = jax.random.split(key, 3)
    w1, b1 = linear_init(k1, input_dim, hidden)
    w2, b2 = linear_init(k2, hidden, hidden)
    w3, b3 = linear_init(k3, hidden, num_actions)
    return w1, b1, w2, b2, w3, b3


def _reference_forward_f32(x, w1, b1, w2, b2, w3, b3):
    h1 = jnp.maximum(x @ w1 + b1, 0.0)
    h2 = jnp.maximum(h1 @ w2 + b2, 0.0)
    return h2 @ w3 + b3


def _reference_forward_matched(x, prepared, bf16_epilogue):
    """Mirrors the kernel's precision exactly: bf16 matmul inputs, int8 w2 with
    post-accumulate per-column scale, f32 accumulation, same epilogue precision."""
    D_in, H, A = prepared["dims"]
    w1p, b1p, w2qp, s2p, b2p, w3p, b3p = prepared["padded"]
    Dp = w1p.shape[0]
    B = x.shape[0]
    xp = jnp.zeros((B, Dp), jnp.float32).at[:, :D_in].set(x.astype(jnp.float32))

    h1 = jnp.dot(xp.astype(jnp.bfloat16), w1p, preferred_element_type=jnp.float32)
    if bf16_epilogue:
        h1 = jnp.maximum(h1.astype(jnp.bfloat16) + b1p.astype(jnp.bfloat16), 0.0)
    else:
        h1 = jnp.maximum(h1 + b1p, 0.0).astype(jnp.bfloat16)

    h2 = jnp.dot(h1, w2qp.astype(jnp.bfloat16), preferred_element_type=jnp.float32) * s2p
    if bf16_epilogue:
        h2 = jnp.maximum(h2.astype(jnp.bfloat16) + b2p.astype(jnp.bfloat16), 0.0)
    else:
        h2 = jnp.maximum(h2 + b2p, 0.0).astype(jnp.bfloat16)

    y = jnp.dot(h2, w3p, preferred_element_type=jnp.float32) + b3p
    return y[:, :A]


if __name__ == "__main__":
    # Small shapes consistent with DQN(use_cnn=False): state_dim=32, 4 actions.
    batch = 2
    input_dim = 32
    hidden = 1024          # matches the module's hidden width
    num_actions = 4

    key = jax.random.PRNGKey(0)
    kx, kx2, kp = jax.random.split(key, 3)
    x = jax.random.normal(kx, (batch, input_dim), jnp.float32)
    params = init_dqn_params(kp, input_dim, hidden, num_actions)

    prepared = prepare_dqn_params(*params)   # one-time: pad + bf16/int8 weight prep

    # --- small-batch (inference-style) path ---
    out = dqn_forward(x, prepared)
    out = jax.block_until_ready(out)
    assert out.shape == (batch, num_actions), out.shape

    ref_matched = _reference_forward_matched(x, prepared, _BF16_EPILOGUE)
    assert jnp.allclose(out, ref_matched, atol=2e-3, rtol=2e-3), \
        "mismatch vs precision-matched reference (small batch)"

    ref_f32 = _reference_forward_f32(x, *params)
    assert jnp.allclose(out, ref_f32, atol=1.5e-1, rtol=1e-1), \
        "mismatch vs f32 reference beyond bf16/int8 tolerance (small batch)"

    # --- multi-tile (training-style) path: exercises grid > 1 and batch padding ---
    big_batch = 520
    xb = jax.random.normal(kx2, (big_batch, input_dim), jnp.float32)
    out_b = jax.block_until_ready(dqn_forward(xb, prepared))
    assert out_b.shape == (big_batch, num_actions), out_b.shape
    ref_b = _reference_forward_matched(xb, prepared, _BF16_EPILOGUE)
    assert jnp.allclose(out_b, ref_b, atol=2e-3, rtol=2e-3), \
        "mismatch vs precision-matched reference (tiled batch)"

    print("KERNEL_OK")
</pallas_src>

<mosaic_0001>
module attributes {stable_mosaic.version = 11 : i64} {
  func.func @_mlp_kernel(%arg0: i32, %arg1: memref<8x32xf32, #tpu.memory_space<vmem>>, %arg2: memref<32x1024xbf16, #tpu.memory_space<vmem>>, %arg3: memref<1x1024xf32, #tpu.memory_space<vmem>>, %arg4: memref<1024x1024xi8, #tpu.memory_space<vmem>>, %arg5: memref<1x1024xf32, #tpu.memory_space<vmem>>, %arg6: memref<1x1024xf32, #tpu.memory_space<vmem>>, %arg7: memref<1024x128xbf16, #tpu.memory_space<vmem>>, %arg8: memref<1x128xf32, #tpu.memory_space<vmem>>, %arg9: memref<8x128xf32, #tpu.memory_space<vmem>>) attributes {dimension_semantics = [#tpu.dimension_semantics<parallel>], iteration_bounds = array<i64: 1>, scalar_prefetch = 0 : i64, scratch_operands = 0 : i64, tpu.core_type = #tpu.core_type<tc>, window_params = [{transform_indices = @transform_0, window_bounds = array<i64: 8, 32>}, {pipeline_mode = #tpu.pipeline_mode<synchronous>, transform_indices = @transform_1, window_bounds = array<i64: 32, 1024>}, {pipeline_mode = #tpu.pipeline_mode<synchronous>, transform_indices = @transform_2, window_bounds = array<i64: 1, 1024>}, {pipeline_mode = #tpu.pipeline_mode<synchronous>, transform_indices = @transform_3, window_bounds = array<i64: 1024, 1024>}, {pipeline_mode = #tpu.pipeline_mode<synchronous>, transform_indices = @transform_4, window_bounds = array<i64: 1, 1024>}, {pipeline_mode = #tpu.pipeline_mode<synchronous>, transform_indices = @transform_5, window_bounds = array<i64: 1, 1024>}, {pipeline_mode = #tpu.pipeline_mode<synchronous>, transform_indices = @transform_6, window_bounds = array<i64: 1024, 128>}, {pipeline_mode = #tpu.pipeline_mode<synchronous>, transform_indices = @transform_7, window_bounds = array<i64: 1, 128>}, {transform_indices = @transform_8, window_bounds = array<i64: 8, 128>}]} {
    %c0 = arith.constant 0 : index
    %c0_0 = arith.constant 0 : index
    %0 = vector.load %arg1[%c0, %c0_0] : memref<8x32xf32, #tpu.memory_space<vmem>>, vector<8x32xf32>
    %1 = arith.truncf %0 : vector<8x32xf32> to vector<8x32xbf16>
    %c0_1 = arith.constant 0 : index
    %c0_2 = arith.constant 0 : index
    %2 = vector.load %arg2[%c0_1, %c0_2] : memref<32x1024xbf16, #tpu.memory_space<vmem>>, vector<32x1024xbf16>
    %cst = arith.constant dense<0.000000e+00> : vector<8x1024xf32>
    %3 = tpu.matmul %1, %2, %cst {dimension_numbers = #tpu.dot_dimension_numbers<[1], [0], [0], [1], [0, 0, 1, 1], [], []>} : vector<8x32xbf16>, vector<32x1024xbf16>, vector<8x1024xf32> -> vector<8x1024xf32>
    %4 = arith.truncf %3 : vector<8x1024xf32> to vector<8x1024xbf16>
    %c0_3 = arith.constant 0 : index
    %c0_4 = arith.constant 0 : index
    %5 = vector.load %arg3[%c0_3, %c0_4] : memref<1x1024xf32, #tpu.memory_space<vmem>>, vector<1x1024xf32>
    %6 = arith.truncf %5 : vector<1x1024xf32> to vector<1x1024xbf16>
    %7 = vector.broadcast %6 : vector<1x1024xbf16> to vector<8x1024xbf16>
    %8 = arith.addf %4, %7 : vector<8x1024xbf16>
    %cst_5 = arith.constant 0.000000e+00 : bf16
    %9 = vector.broadcast %cst_5 : bf16 to vector<8x1024xbf16>
    %10 = arith.maximumf %8, %9 : vector<8x1024xbf16>
    %c0_6 = arith.constant 0 : index
    %c0_7 = arith.constant 0 : index
    %11 = vector.load %arg4[%c0_6, %c0_7] : memref<1024x1024xi8, #tpu.memory_space<vmem>>, vector<1024x1024xi8>
    %12 = arith.sitofp %11 : vector<1024x1024xi8> to vector<1024x1024xbf16>
    %cst_8 = arith.constant dense<0.000000e+00> : vector<8x1024xf32>
    %13 = tpu.matmul %10, %12, %cst_8 {dimension_numbers = #tpu.dot_dimension_numbers<[1], [0], [0], [1], [0, 0, 1, 1], [], []>} : vector<8x1024xbf16>, vector<1024x1024xbf16>, vector<8x1024xf32> -> vector<8x1024xf32>
    %c0_9 = arith.constant 0 : index
    %c0_10 = arith.constant 0 : index
    %14 = vector.load %arg5[%c0_9, %c0_10] : memref<1x1024xf32, #tpu.memory_space<vmem>>, vector<1x1024xf32>
    %15 = vector.broadcast %14 : vector<1x1024xf32> to vector<8x1024xf32>
    %16 = arith.mulf %13, %15 : vector<8x1024xf32>
    %17 = arith.truncf %16 : vector<8x1024xf32> to vector<8x1024xbf16>
    %c0_11 = arith.constant 0 : index
    %c0_12 = arith.constant 0 : index
    %18 = vector.load %arg6[%c0_11, %c0_12] : memref<1x1024xf32, #tpu.memory_space<vmem>>, vector<1x1024xf32>
    %19 = arith.truncf %18 : vector<1x1024xf32> to vector<1x1024xbf16>
    %20 = vector.broadcast %19 : vector<1x1024xbf16> to vector<8x1024xbf16>
    %21 = arith.addf %17, %20 : vector<8x1024xbf16>
    %cst_13 = arith.constant 0.000000e+00 : bf16
    %22 = vector.broadcast %cst_13 : bf16 to vector<8x1024xbf16>
    %23 = arith.maximumf %21, %22 : vector<8x1024xbf16>
    %c0_14 = arith.constant 0 : index
    %c0_15 = arith.constant 0 : index
    %24 = vector.load %arg7[%c0_14, %c0_15] : memref<1024x128xbf16, #tpu.memory_space<vmem>>, vector<1024x128xbf16>
    %cst_16 = arith.constant dense<0.000000e+00> : vector<8x128xf32>
    %25 = tpu.matmul %23, %24, %cst_16 {dimension_numbers = #tpu.dot_dimension_numbers<[1], [0], [0], [1], [0, 0, 1, 1], [], []>} : vector<8x1024xbf16>, vector<1024x128xbf16>, vector<8x128xf32> -> vector<8x128xf32>
    %c0_17 = arith.constant 0 : index
    %c0_18 = arith.constant 0 : index
    %26 = vector.load %arg8[%c0_17, %c0_18] : memref<1x128xf32, #tpu.memory_space<vmem>>, vector<1x128xf32>
    %27 = vector.broadcast %26 : vector<1x128xf32> to vector<8x128xf32>
    %28 = arith.addf %25, %27 : vector<8x128xf32>
    %c0_19 = arith.constant 0 : index
    %c0_20 = arith.constant 0 : index
    %29 = vector.load %arg9[%c0_19, %c0_20] : memref<8x128xf32, #tpu.memory_space<vmem>>, vector<8x128xf32>
    tpu.vector_store %arg9[%c0_19, %c0_20], %28 {strides = array<i32>} : memref<8x128xf32, #tpu.memory_space<vmem>>, vector<8x128xf32>,
    return
  }
  func.func @transform_0(%arg0: i32) -> (i32, i32) {
    %c0_i32 = arith.constant 0 : i32
    %c0_i32_0 = arith.constant 0 : i32
    return %arg0, %c0_i32 : i32, i32
  }
  func.func @transform_1(%arg0: i32) -> (i32, i32) {
    %c0_i32 = arith.constant 0 : i32
    %c0_i32_0 = arith.constant 0 : i32
    %c0_i32_1 = arith.constant 0 : i32
    return %c0_i32, %c0_i32_0 : i32, i32
  }
  func.func @transform_2(%arg0: i32) -> (i32, i32) {
    %c0_i32 = arith.constant 0 : i32
    %c0_i32_0 = arith.constant 0 : i32
    %c0_i32_1 = arith.constant 0 : i32
    return %c0_i32, %c0_i32_0 : i32, i32
  }
  func.func @transform_3(%arg0: i32) -> (i32, i32) {
    %c0_i32 = arith.constant 0 : i32
    %c0_i32_0 = arith.constant 0 : i32
    %c0_i32_1 = arith.constant 0 : i32
    return %c0_i32, %c0_i32_0 : i32, i32
  }
  func.func @transform_4(%arg0: i32) -> (i32, i32) {
    %c0_i32 = arith.constant 0 : i32
    %c0_i32_0 = arith.constant 0 : i32
    %c0_i32_1 = arith.constant 0 : i32
    return %c0_i32, %c0_i32_0 : i32, i32
  }
  func.func @transform_5(%arg0: i32) -> (i32, i32) {
    %c0_i32 = arith.constant 0 : i32
    %c0_i32_0 = arith.constant 0 : i32
    %c0_i32_1 = arith.constant 0 : i32
    return %c0_i32, %c0_i32_0 : i32, i32
  }
  func.func @transform_6(%arg0: i32) -> (i32, i32) {
    %c0_i32 = arith.constant 0 : i32
    %c0_i32_0 = arith.constant 0 : i32
    %c0_i32_1 = arith.constant 0 : i32
    return %c0_i32, %c0_i32_0 : i32, i32
  }
  func.func @transform_7(%arg0: i32) -> (i32, i32) {
    %c0_i32 = arith.constant 0 : i32
    %c0_i32_0 = arith.constant 0 : i32
    %c0_i32_1 = arith.constant 0 : i32
    return %c0_i32, %c0_i32_0 : i32, i32
  }
  func.func @transform_8(%arg0: i32) -> (i32, i32) {
    %c0_i32 = arith.constant 0 : i32
    %c0_i32_0 = arith.constant 0 : i32
    return %arg0, %c0_i32 : i32, i32
  }
}

</mosaic_0001>

<bundles_post_ra>
// kernel: _dqn_forward_padded.1
= control target key start
LH: loop header
LB: loop body
LE: loop exit
PB: predicated region body
PF: predicated region fallthrough
CT: control target
= control target key end

     0   :  { %13 = vsyncpa [#allocation3], 0  ;;  %s6235_s0 = inlined_call_operand.hbm [shape: f32[8,32], index: 0, kind: input, shape index: {}]   ;;  %s6236_s1 = inlined_call_operand.hbm [shape: bf16[32,1024], index: 1, kind: input, shape index: {}]   ;;  %s6237_s2 = inlined_call_operand.hbm [shape: f32[1,1024], index: 2, kind: input, shape index: {}]   ;;  %s6238_s3 = inlined_call_operand.hbm [shape: s8[1024,1024], index: 3, kind: input, shape index: {}]   ;;  %s6239_s4 = inlined_call_operand.hbm [shape: f32[1,1024], index: 4, kind: input, shape index: {}]   ;;  %s6240_s5 = inlined_call_operand.hbm [shape: f32[1,1024], index: 5, kind: input, shape index: {}]   ;;  %s6241_s6 = inlined_call_operand.hbm [shape: bf16[1024,128], index: 6, kind: input, shape index: {}]   ;;  %s6242_s7 = inlined_call_operand.vmem [shape: f32[1,128], index: 7, kind: input, shape index: {}]   ;;  %s6243_s8 = inlined_call_operand.hbm [shape: f32[8,128], index: 8, kind: output, shape index: {}]  }
   0x1   :  { %14 = vsyncpa [#allocation6], 0 }
   0x2   :  { %15 = vsyncpa [#allocation9], 0 }
   0x3   :  { %16 = vsyncpa [#allocation12], 0  ;;  %s33_s29 = sshll.u32 %s6236_s1, 4  ;;  %s34_s29 = int_to_ptr.hbm [resolvable:$true] %s33_s29 }
   0x4   :  { %17 = vsyncpa [#allocation4], 0  ;;  %s5540_s30 = smov [#allocation5]   ;;  %s57_s12 = sshll.u32 %s6238_s3, 4  ;;  %s58_s12 = int_to_ptr.hbm [resolvable:$true] %s57_s12 }
   0x5   :  { %s35_s9 = sshll.u32 %s5540_s30, 4  ;;  %s5541_s13 = smov 512   ;;  %s36_s9 = int_to_ptr.vmem [resolvable:$true] %s35_s9 }
   0x6   :  { %s5542_s14 = smov 32   ;;  %s5543_s15 = smov [#allocation8]  }
   0x7   :  { %41 = dma.hbm_to_vmem [thread:$0]  %s34_s29, 2048, %s36_s9, [#allocation6], %s5541_s13, %s5541_s13, %s5542_s14  }
   0x8   :  { %s59_s16 = sshll.u32 %s5543_s15, 4  ;;  %s5544_s17 = smov 1024   ;;  %s60_s16 = int_to_ptr.vmem [resolvable:$true] %s59_s16 }
   0x9   :  { %s5545_s18 = smov 64   ;;  %s82_s20 = sshll.u32 %s6240_s5, 4  ;;  %s83_s20 = int_to_ptr.hbm [resolvable:$true] %s82_s20 }
   0xa   :  { %65 = dma.hbm_to_vmem [thread:$0]  %s58_s12, 32768, %s60_s16, [#allocation9], %s5544_s17, %s5544_s17, %s5545_s18  }
   0xb   :  { %s5546_s21 = smov [#allocation11]   ;;  %s23_s24 = sshll.u32 %s6235_s0, 4  ;;  %s24_s24 = int_to_ptr.hbm [resolvable:$true] %s23_s24 }
   0xc   :  { %s84_s22 = sshll.u32 %s5546_s21, 4  ;;  %s5547_s25 = smov [#allocation2]   ;;  %s85_s22 = int_to_ptr.vmem [resolvable:$true] %s84_s22 }
   0xd   :  { %87 = dma.hbm_to_vmem [thread:$0]  %s83_s20, 128, %s85_s22, [#allocation12]  }
   0xe   :  { %s25_s26 = sshll.u32 %s5547_s25, 4  ;;  %s47_s29 = sshll.u32 %s6237_s2, 4  ;;  %s26_s26 = int_to_ptr.vmem [resolvable:$true] %s25_s26  ;;  %s48_s29 = int_to_ptr.hbm [resolvable:$true] %s47_s29 }
   0xf   :  { %28 = dma.hbm_to_vmem [thread:$0]  %s24_s24, 128, %s26_s26, [#allocation3]  }
  0x10   :  { %s71_s9 = sshll.u32 %s6239_s4, 4  ;;  %s5548_s10 = smov [#allocation7]   ;;  %s72_s9 = int_to_ptr.hbm [resolvable:$true] %s71_s9 }
  0x11   :  { %s49_s11 = sshll.u32 %s5548_s10, 4  ;;  %s5549_s0 = smov [#allocation10]   ;;  %s50_s11 = int_to_ptr.vmem [resolvable:$true] %s49_s11 }
  0x12   :  { %52 = dma.hbm_to_vmem [thread:$0]  %s48_s29, 128, %s50_s11, [#allocation6]  }
  0x13   :  { %s73_s12 = sshll.u32 %s5549_s0, 4  ;;  %s92_s15 = sshll.u32 %s6241_s6, 4  ;;  %s74_s12 = int_to_ptr.vmem [resolvable:$true] %s73_s12  ;;  %s93_s15 = int_to_ptr.hbm [resolvable:$true] %s92_s15 }
  0x14   :  { %76 = dma.hbm_to_vmem [thread:$0]  %s72_s9, 128, %s74_s12, [#allocation9]  }
  0x15   :  { %s5550_s2 = smov [#allocation13]   ;;  %s5551_s17 = smov 4  }
  0x16   :  { %s94_s16 = sshll.u32 %s5550_s2, 4  ;;  %s95_s16 = int_to_ptr.vmem [resolvable:$true] %s94_s16 }
  0x17   :  { %100 = dma.hbm_to_vmem [thread:$0]  %s93_s15, 8192, %s95_s16, [#allocation12], %s5545_s18, %s5545_s18, %s5551_s17  }
  0x18   :  { %5530 = dma.done.wait [#allocation3], 128  }
  0x19   :  { %5531 = vsyncadd [#allocation3], 4294967168 }
  0x1a   :  { %5532 = dma.done.wait [#allocation6], 2176  }
  0x1b   :  { %5533 = vsyncadd [#allocation6], 4294965120 }
  0x1c   :  { %5534 = dma.done.wait [#allocation9], 32896  }
  0x1d   :  { %5535 = vsyncadd [#allocation9], 4294934400 }
  0x1e   :  { %5536 = dma.done.wait [#allocation12], 8320  }
  0x1f   :  { %5537 = vsyncadd [#allocation12], 4294958976  ;;  %v4947_v0 = vld [vmem:[#allocation5 + $0x40] sm:$0xf]  ;;  %v5249_v2 = vld [vmem:[#allocation5 + $0x44] sm:$0xf] }
  0x20   :  { %v5253_v1 = vld [vmem:[#allocation5 + $0x5c] sm:$0xf0]  ;;  %v4949_v4 = vld [vmem:[#allocation5 + $0x60] sm:$0xf0]  ;;  %v4955_v5 = vld [vmem:[#allocation5 + $0x48] sm:$0xf] }
  0x21   :  { %v4948_v3 = vor.u32 %v5253_v1, %v4947_v0  ;;  %v5254_v6 = vld [vmem:[#allocation5 + $0x64] sm:$0xf0]  ;;  %v4952_v7 = vor.u32 %v5249_v2, %v4949_v4  ;;  %v5250_v9 = vld [vmem:[#allocation5 + $0x4c] sm:$0xf]  ;;  %v4915_v11 = vld [vmem:[#allocation5] sm:$0xf] }
  0x22   :  { %v4956_v8 = vor.u32 %v5254_v6, %v4955_v5  ;;  %v4957_v10 = vld [vmem:[#allocation5 + $0x68] sm:$0xf0]  ;;  %v5245_v13 = vld [vmem:[#allocation5 + $0x1c] sm:$0xf0]  ;;  %v5241_v14 = vld [vmem:[#allocation5 + $0x4] sm:$0xf] }
  0x23   :  { %240 = vmatpush.bf16.msra.mxu0 %v4948_v3  ;;  %v4960_v12 = vor.u32 %v5250_v9, %v4957_v10  ;;  %v4917_v15 = vld [vmem:[#allocation5 + $0x20] sm:$0xf0]  ;;  %253 = vmatpush.bf16.msra.mxu1 %v4952_v7  ;;  %v4916_v16 = vor.u32 %v5245_v13, %v4915_v11  ;;  %v4923_v18 = vld [vmem:[#allocation5 + $0x8] sm:$0xf]  ;;  %v5242_v20 = vld [vmem:[#allocation5 + $0xc] sm:$0xf] }
  0x24   :  { %266 = vmatpush.bf16.msra.mxu2 %v4956_v8  ;;  %v4920_v17 = vor.u32 %v5241_v14, %v4917_v15  ;;  %v5246_v19 = vld [vmem:[#allocation5 + $0x24] sm:$0xf0]  ;;  %v4925_v22 = vld [vmem:[#allocation5 + $0x28] sm:$0xf0]  ;;  %v132_v23 = vld [vmem:[#allocation2] sm:$0xff]  ;;  %vm230_vm0 = vcmask 261120  }
  0x25   :  { %279 = vmatpush.bf16.msra.mxu3 %v4960_v12  ;;  %v4924_v21 = vor.u32 %v5246_v19, %v4923_v18  ;;  %v4963_v24 = vld [vmem:[#allocation5 + $0x50] sm:$0xf]  ;;  %v4928_v25 = vor.u32 %v5242_v20, %v4925_v22  ;;  %v5622_v26 = vpack.c.bf16 %v132_v23, %v132_v23  ;;  %v5251_v28 = vld [vmem:[#allocation5 + $0x54] sm:$0xf]  ;;  %v4971_v32 = vld [vmem:[#allocation5 + $0x58] sm:$0xf] }
  0x26   :  { %v5255_v27 = vld [vmem:[#allocation5 + $0x6c] sm:$0xf0]  ;;  %v4965_v29 = vld [vmem:[#allocation5 + $0x70] sm:$0xf0]  ;;  %v5256_v33 = vld [vmem:[#allocation5 + $0x74] sm:$0xf0] }
  0x27   :  { %241 = vmatpush.bf16.msra.mxu0 %v4916_v16  ;;  %v4964_v30 = vor.u32 %v5255_v27, %v4963_v24  ;;  %v4968_v31 = vor.u32 %v5251_v28, %v4965_v29  ;;  %v5252_v34 = vld [vmem:[#allocation5 + $0x5c] sm:$0xf]  ;;  %254 = vmatpush.bf16.msra.mxu1 %v4920_v17  ;;  %v4972_v35 = vor.u32 %v5256_v33, %v4971_v32  ;;  %v4931_v37 = vld [vmem:[#allocation5 + $0x10] sm:$0xf]  ;;  %v5243_v41 = vld [vmem:[#allocation5 + $0x14] sm:$0xf] }
  0x28   :  { %267 = vmatpush.bf16.msra.mxu2 %v4924_v21  ;;  %v4973_v36 = vld [vmem:[#allocation5 + $0x78] sm:$0xf0]  ;;  %v5247_v38 = vld [vmem:[#allocation5 + $0x2c] sm:$0xf0]  ;;  %v4933_v42 = vld [vmem:[#allocation5 + $0x30] sm:$0xf0] }
  0x29   :  { %280 = vmatpush.bf16.msra.mxu3 %v4928_v25  ;;  %v4976_v39 = vor.u32 %v5252_v34, %v4973_v36  ;;  %v4932_v40 = vor.u32 %v5247_v38, %v4931_v37  ;;  %v4939_v43 = vld [vmem:[#allocation5 + $0x18] sm:$0xf]  ;;  %v4936_v44 = vor.u32 %v5243_v41, %v4933_v42  ;;  %v5244_v46 = vld [vmem:[#allocation5 + $0x1c] sm:$0xf]  ;;  %v492_v50 = vld [vmem:[#allocation8 + $0xc0] sm:$0xff]  ;;  %s4900_s20 = sshll.u32 %s6243_s8, 4  ;;  %s4901_s20 = int_to_ptr.hbm [resolvable:$true] %s4900_s20 }
  0x2a   :  { %4977 = vmatmul.msk.bf16.vlgmr.msra.gmra.mxu0 %vm230_vm0, %v5622_v26  ;;  %v5248_v45 = vld [vmem:[#allocation5 + $0x34] sm:$0xf0]  ;;  %v4941_v47 = vld [vmem:[#allocation5 + $0x38] sm:$0xf0]  ;;  %4978 = vmatmul.msk.bf16.vlgmr.msra.gmra.mxu1 %vm230_vm0, %v5622_v26  ;;  %v524_v51 = vld [vmem:[#allocation8 + $0x1c0] sm:$0xff]  ;;  %v836_v52 = vunpack.c.2.s8 %v492_v50  ;;  %v844_v53 = vunpack.c.3.s8 %v492_v50  ;;  %v820_v56 = vunpack.c.0.s8 %v492_v50  ;;  %v828_v57 = vunpack.c.1.s8 %v492_v50 }
  0x2b   :  { %292 = vmatpush.bf16.msrb.mxu0 %v4964_v30  ;;  %305 = vmatpush.bf16.msrb.mxu1 %v4968_v31  ;;  %v4940_v48 = vor.u32 %v5248_v45, %v4939_v43  ;;  %v4944_v49 = vor.u32 %v5244_v46, %v4941_v47  ;;  %v964_v54 = vunpack.c.2.s8 %v524_v51  ;;  %v972_v55 = vunpack.c.3.s8 %v524_v51  ;;  %v556_v60 = vld [vmem:[#allocation8 + $0x2c0] sm:$0xff] }
  0x2c   :  { %4979 = vmatmul.msk.bf16.vlgmr.msra.gmra.mxu2 %vm230_vm0, %v5622_v26  ;;  %4980 = vmatmul.msk.bf16.vlgmr.msra.gmra.mxu3 %vm230_vm0, %v5622_v26  ;;  %v948_v58 = vunpack.c.0.s8 %v524_v51  ;;  %v956_v59 = vunpack.c.1.s8 %v524_v51  ;;  %v1860_v61 = vcvt.s32.f32 %v836_v52  ;;  %v1868_v62 = vcvt.s32.f32 %v844_v53  ;;  %v588_v1 = vld [vmem:[#allocation8 + $0x3c0] sm:$0xff] }
  0x2d   :  { %318 = vmatpush.bf16.msrb.mxu2 %v4972_v35  ;;  %331 = vmatpush.bf16.msrb.mxu3 %v4976_v39  ;;  %v1988_v63 = vcvt.s32.f32 %v964_v54  ;;  %v1996_v0 = vcvt.s32.f32 %v972_v55  ;;  %v1844_v2 = vcvt.s32.f32 %v820_v56  ;;  %v1852_v3 = vcvt.s32.f32 %v828_v57  ;;  %v484_v6 = vld [vmem:[#allocation8 + $0x80] sm:$0xff] }
  0x2e   :  { %v1972_v4 = vcvt.s32.f32 %v948_v58  ;;  %v1980_v5 = vcvt.s32.f32 %v956_v59  ;;  %v2828_v7 = vpack.c.bf16 %v1868_v62, %v1860_v61  ;;  %v1092_v9 = vunpack.c.2.s8 %v556_v60  ;;  %v516_v11 = vld [vmem:[#allocation8 + $0x180] sm:$0xff] }
  0x2f   :  { %293 = vmatpush.bf16.msrb.mxu0 %v4932_v40  ;;  %306 = vmatpush.bf16.msrb.mxu1 %v4936_v44  ;;  %v2892_v8 = vpack.c.bf16 %v1996_v0, %v1988_v63  ;;  %v1100_v10 = vunpack.c.3.s8 %v556_v60  ;;  %v2820_v12 = vpack.c.bf16 %v1852_v3, %v1844_v2  ;;  %v1220_v14 = vunpack.c.2.s8 %v588_v1  ;;  %v548_v37 = vld [vmem:[#allocation8 + $0x280] sm:$0xff] }
  0x30   :  { %v2884_v13 = vpack.c.bf16 %v1980_v5, %v1972_v4  ;;  %v1228_v15 = vunpack.c.3.s8 %v588_v1  ;;  %v2116_v16 = vcvt.s32.f32 %v1092_v9  ;;  %v804_v18 = vunpack.c.2.s8 %v484_v6  ;;  %v580_v46 = vld [vmem:[#allocation8 + $0x380] sm:$0xff] }
  0x31   :  { %319 = vmatpush.bf16.msrb.mxu2 %v4940_v48  ;;  %332 = vmatpush.bf16.msrb.mxu3 %v4944_v49  ;;  %v2124_v17 = vcvt.s32.f32 %v1100_v10  ;;  %v812_v19 = vunpack.c.3.s8 %v484_v6  ;;  %v2244_v20 = vcvt.s32.f32 %v1220_v14  ;;  %v932_v22 = vunpack.c.2.s8 %v516_v11  ;;  %v476_v51 = vld [vmem:[#allocation8 + $0x40] sm:$0xff] }
  0x32   :  { %v2252_v21 = vcvt.s32.f32 %v1228_v15  ;;  %v940_v23 = vunpack.c.3.s8 %v516_v11  ;;  %v1828_v25 = vcvt.s32.f32 %v804_v18  ;;  %v1076_v28 = vunpack.c.0.s8 %v556_v60  ;;  %v508_v56 = vld [vmem:[#allocation8 + $0x140] sm:$0xff] }
  0x33   :  { %3284 = vmatpush.bf16.msra.mxu0 %v2828_v7  ;;  %3297 = vmatpush.bf16.msra.mxu1 %v2892_v8  ;;  %v2956_v24 = vpack.c.bf16 %v2124_v17, %v2116_v16  ;;  %v1836_v27 = vcvt.s32.f32 %v812_v19  ;;  %v1956_v30 = vcvt.s32.f32 %v932_v22  ;;  %v1084_v32 = vunpack.c.1.s8 %v556_v60  ;;  %v540_v16 = vld [vmem:[#allocation8 + $0x240] sm:$0xff] }
  0x34   :  { %v3020_v29 = vpack.c.bf16 %v2252_v21, %v2244_v20  ;;  %v1964_v31 = vcvt.s32.f32 %v940_v23  ;;  %v2100_v34 = vcvt.s32.f32 %v1076_v28  ;;  %v1204_v35 = vunpack.c.0.s8 %v588_v1 }
  0x35   :  { %v2812_v33 = vpack.c.bf16 %v1836_v27, %v1828_v25  ;;  %v1212_v36 = vunpack.c.1.s8 %v588_v1  ;;  %3310 = vmatpush.bf16.msra.mxu2 %v2956_v24  ;;  %v2108_v39 = vcvt.s32.f32 %v1084_v32  ;;  %v788_v40 = vunpack.c.0.s8 %v484_v6  ;;  %v572_v25 = vld [vmem:[#allocation8 + $0x340] sm:$0xff] }
  0x36   :  { %3323 = vmatpush.bf16.msra.mxu3 %v3020_v29  ;;  %v2876_v38 = vpack.c.bf16 %v1964_v31, %v1956_v30  ;;  %v796_v41 = vunpack.c.1.s8 %v484_v6  ;;  %v2228_v42 = vcvt.s32.f32 %v1204_v35  ;;  %v916_v44 = vunpack.c.0.s8 %v516_v11  ;;  %v468_v31 = vld [vmem:[#allocation8] sm:$0xff] }
  0x37   :  { %3285 = vmatpush.bf16.msra.mxu0 %v2820_v12  ;;  %3298 = vmatpush.bf16.msra.mxu1 %v2884_v13  ;;  %v2236_v43 = vcvt.s32.f32 %v1212_v36  ;;  %v924_v45 = vunpack.c.1.s8 %v516_v11  ;;  %v2948_v47 = vpack.c.bf16 %v2108_v39, %v2100_v34  ;;  %v1812_v48 = vcvt.s32.f32 %v788_v40  ;;  %v500_v36 = vld [vmem:[#allocation8 + $0x100] sm:$0xff] }
  0x38   :  { %v1820_v49 = vcvt.s32.f32 %v796_v41  ;;  %v1060_v50 = vunpack.c.2.s8 %v548_v37  ;;  %v1940_v53 = vcvt.s32.f32 %v916_v44  ;;  %v1068_v55 = vunpack.c.3.s8 %v548_v37 }
  0x39   :  { %v3012_v52 = vpack.c.bf16 %v2236_v43, %v2228_v42  ;;  %v1948_v54 = vcvt.s32.f32 %v924_v45  ;;  %v1188_v59 = vunpack.c.2.s8 %v580_v46  ;;  %v1196_v60 = vunpack.c.3.s8 %v580_v46  ;;  %3311 = vmatpush.bf16.msra.mxu2 %v2948_v47 }
  0x3a   :  { %4981 = vmatmul.msk.bf16.vlgmr.msrb.gmra.mxu0 %vm230_vm0, %v5622_v26  ;;  %4982 = vmatmul.msk.bf16.vlgmr.msrb.gmra.mxu1 %vm230_vm0, %v5622_v26  ;;  %v2804_v57 = vpack.c.bf16 %v1820_v49, %v1812_v48  ;;  %v2084_v58 = vcvt.s32.f32 %v1060_v50  ;;  %v2092_v62 = vcvt.s32.f32 %v1068_v55  ;;  %v772_v63 = vunpack.c.2.s8 %v476_v51 }
  0x3b   :  { %3299 = vmatpush.bf16.msra.mxu1 %v2876_v38  ;;  %3286 = vmatpush.bf16.msra.mxu0 %v2812_v33  ;;  %v2868_v61 = vpack.c.bf16 %v1948_v54, %v1940_v53  ;;  %v780_v0 = vunpack.c.3.s8 %v476_v51  ;;  %v2212_v1 = vcvt.s32.f32 %v1188_v59  ;;  %v2220_v2 = vcvt.s32.f32 %v1196_v60 }
  0x3c   :  { %4983 = vmatmul.msk.bf16.vlgmr.msrb.gmra.mxu2 %vm230_vm0, %v5622_v26  ;;  %4984 = vmatmul.msk.bf16.vlgmr.msrb.gmra.mxu3 %vm230_vm0, %v5622_v26  ;;  %v900_v3 = vunpack.c.2.s8 %v508_v56  ;;  %v908_v4 = vunpack.c.3.s8 %v508_v56  ;;  %v2940_v5 = vpack.c.bf16 %v2092_v62, %v2084_v58  ;;  %v1796_v6 = vcvt.s32.f32 %v772_v63 }
  0x3d   :  { %3324 = vmatpush.bf16.msra.mxu3 %v3012_v52  ;;  %v1804_v7 = vcvt.s32.f32 %v780_v0  ;;  %v1044_v8 = vunpack.c.0.s8 %v548_v37  ;;  %v3004_v9 = vpack.c.bf16 %v2220_v2, %v2212_v1  ;;  %v1052_v26 = vunpack.c.1.s8 %v548_v37 }
  0x3e   :  { %v1924_v10 = vcvt.s32.f32 %v900_v3  ;;  %v1932_v11 = vcvt.s32.f32 %v908_v4  ;;  %v1172_v14 = vunpack.c.0.s8 %v580_v46  ;;  %v1180_v15 = vunpack.c.1.s8 %v580_v46  ;;  %3312 = vmatpush.bf16.msra.mxu2 %v2940_v5 }
  0x3f   :  { %3300 = vmatpush.bf16.msra.mxu1 %v2868_v61  ;;  %3287 = vmatpush.bf16.msra.mxu0 %v2804_v57  ;;  %v2796_v12 = vpack.c.bf16 %v1804_v7, %v1796_v6  ;;  %v2068_v13 = vcvt.s32.f32 %v1044_v8  ;;  %v2076_v18 = vcvt.s32.f32 %v1052_v26  ;;  %v756_v19 = vunpack.c.0.s8 %v476_v51  ;;  %v620_v61 = vld [vmem:[#allocation8 + $0x4c0] sm:$0xff] }
  0x40   :  { %v2860_v17 = vpack.c.bf16 %v1932_v11, %v1924_v10  ;;  %v764_v20 = vunpack.c.1.s8 %v476_v51  ;;  %v2196_v21 = vcvt.s32.f32 %v1172_v14  ;;  %v2204_v22 = vcvt.s32.f32 %v1180_v15  ;;  %v652_v6 = vld [vmem:[#allocation8 + $0x5c0] sm:$0xff] }
  0x41   :  { %3325 = vmatpush.bf16.msra.mxu3 %v3004_v9  ;;  %v884_v23 = vunpack.c.0.s8 %v508_v56  ;;  %v892_v24 = vunpack.c.1.s8 %v508_v56  ;;  %v2932_v27 = vpack.c.bf16 %v2076_v18, %v2068_v13  ;;  %v1780_v28 = vcvt.s32.f32 %v756_v19  ;;  %v532_v11 = vld [vmem:[#allocation8 + $0x200] sm:$0xff] }
  0x42   :  { %v1788_v29 = vcvt.s32.f32 %v764_v20  ;;  %v1028_v30 = vunpack.c.2.s8 %v540_v16  ;;  %v2996_v32 = vpack.c.bf16 %v2204_v22, %v2196_v21  ;;  %v1036_v35 = vunpack.c.3.s8 %v540_v16  ;;  %v564_v15 = vld [vmem:[#allocation8 + $0x300] sm:$0xff] }
  0x43   :  { %3301 = vmatpush.bf16.msra.mxu1 %v2860_v17  ;;  %3288 = vmatpush.bf16.msra.mxu0 %v2796_v12  ;;  %v1908_v33 = vcvt.s32.f32 %v884_v23  ;;  %v1916_v34 = vcvt.s32.f32 %v892_v24  ;;  %v1156_v39 = vunpack.c.2.s8 %v572_v25  ;;  %v1164_v40 = vunpack.c.3.s8 %v572_v25 }
  0x44   :  { %3313 = vmatpush.bf16.msra.mxu2 %v2932_v27  ;;  %v2788_v37 = vpack.c.bf16 %v1788_v29, %v1780_v28  ;;  %v2052_v38 = vcvt.s32.f32 %v1028_v30  ;;  %v2060_v42 = vcvt.s32.f32 %v1036_v35  ;;  %v740_v43 = vunpack.c.2.s8 %v468_v31 }
  0x45   :  { %3326 = vmatpush.bf16.msra.mxu3 %v2996_v32  ;;  %v2852_v41 = vpack.c.bf16 %v1916_v34, %v1908_v33  ;;  %v748_v44 = vunpack.c.3.s8 %v468_v31  ;;  %v2180_v45 = vcvt.s32.f32 %v1156_v39  ;;  %v2188_v46 = vcvt.s32.f32 %v1164_v40 }
  0x46   :  { %v868_v47 = vunpack.c.2.s8 %v500_v36  ;;  %v876_v48 = vunpack.c.3.s8 %v500_v36  ;;  %v2924_v49 = vpack.c.bf16 %v2060_v42, %v2052_v38  ;;  %v1764_v50 = vcvt.s32.f32 %v740_v43 }
  0x47   :  { %3289 = vmatpush.bf16.msra.mxu0 %v2788_v37  ;;  %3302 = vmatpush.bf16.msra.mxu1 %v2852_v41  ;;  %v1772_v51 = vcvt.s32.f32 %v748_v44  ;;  %v1012_v52 = vunpack.c.0.s8 %v540_v16  ;;  %v2988_v53 = vpack.c.bf16 %v2188_v46, %v2180_v45  ;;  %v1020_v56 = vunpack.c.1.s8 %v540_v16  ;;  %v684_v41 = vld [vmem:[#allocation8 + $0x6c0] sm:$0xff] }
  0x48   :  { %v1892_v54 = vcvt.s32.f32 %v868_v47  ;;  %v1900_v55 = vcvt.s32.f32 %v876_v48  ;;  %3314 = vmatpush.bf16.msra.mxu2 %v2924_v49  ;;  %v1140_v59 = vunpack.c.0.s8 %v572_v25  ;;  %v1148_v60 = vunpack.c.1.s8 %v572_v25 }
  0x49   :  { %v2780_v57 = vpack.c.bf16 %v1772_v51, %v1764_v50  ;;  %v2036_v58 = vcvt.s32.f32 %v1012_v52  ;;  %3327 = vmatpush.bf16.msra.mxu3 %v2988_v53  ;;  %v2044_v63 = vcvt.s32.f32 %v1020_v56  ;;  %v724_v0 = vunpack.c.0.s8 %v468_v31  ;;  %v716_v50 = vld [vmem:[#allocation8 + $0x7c0] sm:$0xff] }
  0x4a   :  { %v2844_v62 = vpack.c.bf16 %v1900_v55, %v1892_v54  ;;  %v732_v1 = vunpack.c.1.s8 %v468_v31  ;;  %v2164_v2 = vcvt.s32.f32 %v1140_v59  ;;  %v2172_v3 = vcvt.s32.f32 %v1148_v60  ;;  %v612_v55 = vld [vmem:[#allocation8 + $0x480] sm:$0xff] }
  0x4b   :  { %3290 = vmatpush.bf16.msra.mxu0 %v2780_v57  ;;  %v852_v4 = vunpack.c.0.s8 %v500_v36  ;;  %v860_v5 = vunpack.c.1.s8 %v500_v36  ;;  %v2916_v7 = vpack.c.bf16 %v2044_v63, %v2036_v58  ;;  %v1748_v8 = vcvt.s32.f32 %v724_v0  ;;  %v644_v60 = vld [vmem:[#allocation8 + $0x580] sm:$0xff] }
  0x4c   :  { %3303 = vmatpush.bf16.msra.mxu1 %v2844_v62  ;;  %v1756_v9 = vcvt.s32.f32 %v732_v1  ;;  %v1348_v10 = vunpack.c.2.s8 %v620_v61  ;;  %v2980_v26 = vpack.c.bf16 %v2172_v3, %v2164_v2  ;;  %v1356_v14 = vunpack.c.3.s8 %v620_v61 }
  0x4d   :  { %v1876_v12 = vcvt.s32.f32 %v852_v4  ;;  %v1884_v13 = vcvt.s32.f32 %v860_v5  ;;  %3315 = vmatpush.bf16.msra.mxu2 %v2916_v7  ;;  %v1476_v18 = vunpack.c.2.s8 %v652_v6  ;;  %v1484_v19 = vunpack.c.3.s8 %v652_v6 }
  0x4e   :  { %v2772_v16 = vpack.c.bf16 %v1756_v9, %v1748_v8  ;;  %v2372_v17 = vcvt.s32.f32 %v1348_v10  ;;  %3328 = vmatpush.bf16.msra.mxu3 %v2980_v26  ;;  %v2380_v21 = vcvt.s32.f32 %v1356_v14  ;;  %v996_v22 = vunpack.c.2.s8 %v532_v11 }
  0x4f   :  { %v2836_v20 = vpack.c.bf16 %v1884_v13, %v1876_v12  ;;  %v1004_v23 = vunpack.c.3.s8 %v532_v11  ;;  %v2500_v24 = vcvt.s32.f32 %v1476_v18  ;;  %v2508_v25 = vcvt.s32.f32 %v1484_v19 }
  0x50   :  { %3291 = vmatpush.bf16.msra.mxu0 %v2772_v16  ;;  %v1124_v27 = vunpack.c.2.s8 %v564_v15  ;;  %v1132_v28 = vunpack.c.3.s8 %v564_v15  ;;  %v3084_v29 = vpack.c.bf16 %v2380_v21, %v2372_v17  ;;  %v2020_v30 = vcvt.s32.f32 %v996_v22 }
  0x51   :  { %3304 = vmatpush.bf16.msra.mxu1 %v2836_v20  ;;  %v2028_v31 = vcvt.s32.f32 %v1004_v23  ;;  %v1332_v32 = vunpack.c.0.s8 %v620_v61  ;;  %v3148_v33 = vpack.c.bf16 %v2508_v25, %v2500_v24  ;;  %v1340_v36 = vunpack.c.1.s8 %v620_v61  ;;  %v676_v20 = vld [vmem:[#allocation8 + $0x680] sm:$0xff] }
  0x52   :  { %v2148_v34 = vcvt.s32.f32 %v1124_v27  ;;  %v2156_v35 = vcvt.s32.f32 %v1132_v28  ;;  %v1460_v39 = vunpack.c.0.s8 %v652_v6  ;;  %v1468_v40 = vunpack.c.1.s8 %v652_v6 }
  0x53   :  { %v2908_v37 = vpack.c.bf16 %v2028_v31, %v2020_v30  ;;  %v2356_v38 = vcvt.s32.f32 %v1332_v32  ;;  %v2364_v43 = vcvt.s32.f32 %v1340_v36  ;;  %v980_v44 = vunpack.c.0.s8 %v532_v11  ;;  %v708_v30 = vld [vmem:[#allocation8 + $0x780] sm:$0xff] }
  0x54   :  { %3336 = vmatpush.bf16.msrb.mxu0 %v3084_v29  ;;  %v2972_v42 = vpack.c.bf16 %v2156_v35, %v2148_v34  ;;  %v988_v45 = vunpack.c.1.s8 %v532_v11  ;;  %v2484_v46 = vcvt.s32.f32 %v1460_v39  ;;  %v2492_v47 = vcvt.s32.f32 %v1468_v40  ;;  %v604_v35 = vld [vmem:[#allocation8 + $0x440] sm:$0xff] }
  0x55   :  { %3349 = vmatpush.bf16.msrb.mxu1 %v3148_v33  ;;  %3316 = vmatpush.bf16.msra.mxu2 %v2908_v37  ;;  %v1108_v48 = vunpack.c.0.s8 %v564_v15  ;;  %v1116_v49 = vunpack.c.1.s8 %v564_v15  ;;  %v3076_v51 = vpack.c.bf16 %v2364_v43, %v2356_v38  ;;  %v2004_v52 = vcvt.s32.f32 %v980_v44  ;;  %v636_v40 = vld [vmem:[#allocation8 + $0x540] sm:$0xff] }
  0x56   :  { %3329 = vmatpush.bf16.msra.mxu3 %v2972_v42  ;;  %v2012_v53 = vcvt.s32.f32 %v988_v45  ;;  %v1604_v54 = vunpack.c.2.s8 %v684_v41  ;;  %v3140_v56 = vpack.c.bf16 %v2492_v47, %v2484_v46  ;;  %v1612_v59 = vunpack.c.3.s8 %v684_v41 }
  0x57   :  { %v2132_v57 = vcvt.s32.f32 %v1108_v48  ;;  %v2140_v58 = vcvt.s32.f32 %v1116_v49  ;;  %v1732_v63 = vunpack.c.2.s8 %v716_v50  ;;  %v1740_v0 = vunpack.c.3.s8 %v716_v50 }
  0x58   :  { %3337 = vmatpush.bf16.msrb.mxu0 %v3076_v51  ;;  %v2900_v61 = vpack.c.bf16 %v2012_v53, %v2004_v52  ;;  %v2628_v62 = vcvt.s32.f32 %v1604_v54  ;;  %v2636_v2 = vcvt.s32.f32 %v1612_v59  ;;  %v1316_v3 = vunpack.c.2.s8 %v612_v55 }
  0x59   :  { %3350 = vmatpush.bf16.msrb.mxu1 %v3140_v56  ;;  %v2964_v1 = vpack.c.bf16 %v2140_v58, %v2132_v57  ;;  %v1324_v4 = vunpack.c.3.s8 %v612_v55  ;;  %v2756_v5 = vcvt.s32.f32 %v1732_v63  ;;  %v2764_v6 = vcvt.s32.f32 %v1740_v0 }
  0x5a   :  { %3317 = vmatpush.bf16.msra.mxu2 %v2900_v61  ;;  %v1444_v7 = vunpack.c.2.s8 %v644_v60  ;;  %v1452_v8 = vunpack.c.3.s8 %v644_v60  ;;  %v3212_v9 = vpack.c.bf16 %v2636_v2, %v2628_v62  ;;  %v2340_v10 = vcvt.s32.f32 %v1316_v3  ;;  %v5640_v61 = vld [vmem:[#allocation7] sm:$0xff] }
  0x5b   :  { %3330 = vmatpush.bf16.msra.mxu3 %v2964_v1  ;;  %v2348_v11 = vcvt.s32.f32 %v1324_v4  ;;  %v1588_v26 = vunpack.c.0.s8 %v684_v41  ;;  %v3276_v12 = vpack.c.bf16 %v2764_v6, %v2756_v5  ;;  %v1596_v15 = vunpack.c.1.s8 %v684_v41 }
  0x5c   :  { %v2468_v13 = vcvt.s32.f32 %v1444_v7  ;;  %v2476_v14 = vcvt.s32.f32 %v1452_v8  ;;  %v1716_v18 = vunpack.c.0.s8 %v716_v50  ;;  %v1724_v19 = vunpack.c.1.s8 %v716_v50 }
  0x5d   :  { %v3068_v16 = vpack.c.bf16 %v2348_v11, %v2340_v10  ;;  %v2612_v17 = vcvt.s32.f32 %v1588_v26  ;;  %v2620_v22 = vcvt.s32.f32 %v1596_v15  ;;  %v1300_v23 = vunpack.c.0.s8 %v612_v55 }
  0x5e   :  { %3362 = vmatpush.bf16.msrb.mxu2 %v3212_v9  ;;  %v3132_v21 = vpack.c.bf16 %v2476_v14, %v2468_v13  ;;  %v1308_v24 = vunpack.c.1.s8 %v612_v55  ;;  %v2740_v25 = vcvt.s32.f32 %v1716_v18  ;;  %v2748_v27 = vcvt.s32.f32 %v1724_v19  ;;  %v668_v14 = vld [vmem:[#allocation8 + $0x640] sm:$0xff] }
  0x5f   :  { %3375 = vmatpush.bf16.msrb.mxu3 %v3276_v12  ;;  %3338 = vmatpush.bf16.msrb.mxu0 %v3068_v16  ;;  %v1428_v28 = vunpack.c.0.s8 %v644_v60  ;;  %v1436_v29 = vunpack.c.1.s8 %v644_v60  ;;  %v3204_v31 = vpack.c.bf16 %v2620_v22, %v2612_v17  ;;  %v2324_v32 = vcvt.s32.f32 %v1300_v23  ;;  %v700_v19 = vld [vmem:[#allocation8 + $0x740] sm:$0xff] }
  0x60   :  { %3351 = vmatpush.bf16.msrb.mxu1 %v3132_v21  ;;  %v2332_v33 = vcvt.s32.f32 %v1308_v24  ;;  %v1572_v34 = vunpack.c.2.s8 %v676_v20  ;;  %v3268_v36 = vpack.c.bf16 %v2748_v27, %v2740_v25  ;;  %v1580_v39 = vunpack.c.3.s8 %v676_v20 }
  0x61   :  { %v2452_v37 = vcvt.s32.f32 %v1428_v28  ;;  %v2460_v38 = vcvt.s32.f32 %v1436_v29  ;;  %v1700_v43 = vunpack.c.2.s8 %v708_v30  ;;  %v1708_v44 = vunpack.c.3.s8 %v708_v30 }
  0x62   :  { %3363 = vmatpush.bf16.msrb.mxu2 %v3204_v31  ;;  %v3060_v41 = vpack.c.bf16 %v2332_v33, %v2324_v32  ;;  %v2596_v42 = vcvt.s32.f32 %v1572_v34  ;;  %v2604_v46 = vcvt.s32.f32 %v1580_v39  ;;  %v1284_v47 = vunpack.c.2.s8 %v604_v35  ;;  %v596_v33 = vld [vmem:[#allocation8 + $0x400] sm:$0xff] }
  0x63   :  { %3376 = vmatpush.bf16.msrb.mxu3 %v3268_v36  ;;  %v3124_v45 = vpack.c.bf16 %v2460_v38, %v2452_v37  ;;  %v1292_v48 = vunpack.c.3.s8 %v604_v35  ;;  %v2724_v49 = vcvt.s32.f32 %v1700_v43  ;;  %v2732_v50 = vcvt.s32.f32 %v1708_v44  ;;  %v628_v38 = vld [vmem:[#allocation8 + $0x500] sm:$0xff] }
  0x64   :  { %3339 = vmatpush.bf16.msrb.mxu0 %v3060_v41  ;;  %v1412_v51 = vunpack.c.2.s8 %v636_v40  ;;  %v1420_v52 = vunpack.c.3.s8 %v636_v40  ;;  %v3196_v53 = vpack.c.bf16 %v2604_v46, %v2596_v42  ;;  %v2308_v54 = vcvt.s32.f32 %v1284_v47 }
  0x65   :  { %3352 = vmatpush.bf16.msrb.mxu1 %v3124_v45  ;;  %v2316_v55 = vcvt.s32.f32 %v1292_v48  ;;  %v3260_v56 = vpack.c.bf16 %v2732_v50, %v2724_v49  ;;  %v344_v62 = vperm.slane %v5640_v61, 0  ;;  %v345_v63 = vperm.slane %v5640_v61, 1 }
  0x66   :  { %v2436_v57 = vcvt.s32.f32 %v1412_v51  ;;  %v2444_v58 = vcvt.s32.f32 %v1420_v52  ;;  %3364 = vmatpush.bf16.msrb.mxu2 %v3196_v53  ;;  %v1556_v1 = vunpack.c.0.s8 %v676_v20  ;;  %v1564_v2 = vunpack.c.1.s8 %v676_v20 }
  0x67   :  { %v3052_v59 = vpack.c.bf16 %v2316_v55, %v2308_v54  ;;  %3377 = vmatpush.bf16.msrb.mxu3 %v3260_v56  ;;  %v360_v0 = vpack.c.bf16 %v345_v63, %v344_v62  ;;  %v1684_v3 = vunpack.c.0.s8 %v708_v30  ;;  %v1692_v4 = vunpack.c.1.s8 %v708_v30 }
  0x68   :  { %v3116_v60 = vpack.c.bf16 %v2444_v58, %v2436_v57  ;;  %v2580_v7 = vcvt.s32.f32 %v1556_v1  ;;  %v2588_v8 = vcvt.s32.f32 %v1564_v2  ;;  %v1268_v12 = vunpack.c.0.s8 %v604_v35 }
  0x69   :  { %3340 = vmatpush.bf16.msrb.mxu0 %v3052_v59  ;;  %v368_v5 = vunpack.c.l.b16 %v360_v0  ;;  %v369_v6 = vunpack.c.h.b16 %v360_v0  ;;  %v2708_v9 = vcvt.s32.f32 %v1684_v3  ;;  %v2716_v10 = vcvt.s32.f32 %v1692_v4  ;;  %v493_v4 = vld [vmem:[#allocation8 + $0xc8] sm:$0xff] }
  0x6a   :  { %3353 = vmatpush.bf16.msrb.mxu1 %v3116_v60  ;;  %v1276_v13 = vunpack.c.1.s8 %v604_v35  ;;  %v3188_v15 = vpack.c.bf16 %v2588_v8, %v2580_v7  ;;  %v1396_v17 = vunpack.c.0.s8 %v636_v40  ;;  %v1404_v18 = vunpack.c.1.s8 %v636_v40 }
  0x6b   :  { %v376_v11 = vpack.c.b16 %v368_v5, %v368_v5  ;;  %v377_v26 = vpack.c.b16 %v369_v6, %v369_v6  ;;  %v3252_v16 = vpack.c.bf16 %v2716_v10, %v2708_v9  ;;  %v2292_v22 = vcvt.s32.f32 %v1268_v12 }
  0x6c   :  { %v2300_v23 = vcvt.s32.f32 %v1276_v13  ;;  %3365 = vmatpush.bf16.msrb.mxu2 %v3188_v15  ;;  %v2420_v24 = vcvt.s32.f32 %v1396_v17  ;;  %v2428_v25 = vcvt.s32.f32 %v1404_v18  ;;  %v1540_v27 = vunpack.c.2.s8 %v668_v14 }
  0x6d   :  { %v385_v21 = vpack.i.b16 %v376_v11, %v376_v11  ;;  %v389_v20 = vpack.i.b16 %v377_v26, %v377_v26  ;;  %3378 = vmatpush.bf16.msrb.mxu3 %v3252_v16  ;;  %v1548_v28 = vunpack.c.3.s8 %v668_v14  ;;  %v1668_v32 = vunpack.c.2.s8 %v700_v19  ;;  %v525_v16 = vld [vmem:[#allocation8 + $0x1c8] sm:$0xff] }
  0x6e   :  { %v3044_v31 = vpack.c.bf16 %v2300_v23, %v2292_v22  ;;  %v3108_v34 = vpack.c.bf16 %v2428_v25, %v2420_v24  ;;  %v2564_v35 = vcvt.s32.f32 %v1540_v27  ;;  %v1676_v37 = vunpack.c.3.s8 %v700_v19 }
  0x6f   :  { %v5644_v29 = vperm.slane %v385_v21, 0  ;;  %v5646_v30 = vperm.slane %v389_v20, 0  ;;  %v2572_v36 = vcvt.s32.f32 %v1548_v28  ;;  %v2692_v41 = vcvt.s32.f32 %v1668_v32  ;;  %v660_v20 = vld [vmem:[#allocation8 + $0x600] sm:$0xff] }
  0x70   :  { %3341 = vmatpush.bf16.msrb.mxu0 %v3044_v31  ;;  %v346_v42 = vperm.slane %v5640_v61, 2  ;;  %3354 = vmatpush.bf16.msrb.mxu1 %v3108_v34  ;;  %v2700_v44 = vcvt.s32.f32 %v1676_v37  ;;  %v347_v45 = vperm.slane %v5640_v61, 3  ;;  %v1252_v46 = vunpack.c.2.s8 %v596_v33 }
  0x71   :  { %v424_v39 = vunpack.c.l.bf16 %v5644_v29  ;;  %v425_v40 = vunpack.c.l.bf16 %v5646_v30  ;;  %v3180_v43 = vpack.c.bf16 %v2572_v36, %v2564_v35  ;;  %v1260_v47 = vunpack.c.3.s8 %v596_v33 }
  0x72   :  { %v1380_v48 = vunpack.c.2.s8 %v628_v38  ;;  %v1388_v49 = vunpack.c.3.s8 %v628_v38  ;;  %v1524_v50 = vunpack.c.0.s8 %v668_v14  ;;  %v3244_v51 = vpack.c.bf16 %v2700_v44, %v2692_v41 }
  0x73   :  { %3366 = vmatpush.bf16.msrb.mxu2 %v3180_v43  ;;  %v361_v52 = vpack.c.bf16 %v347_v45, %v346_v42  ;;  %v2276_v53 = vcvt.s32.f32 %v1252_v46  ;;  %v1532_v54 = vunpack.c.1.s8 %v668_v14  ;;  %v2284_v55 = vcvt.s32.f32 %v1260_v47 }
  0x74   :  { %v2404_v56 = vcvt.s32.f32 %v1380_v48  ;;  %v2412_v57 = vcvt.s32.f32 %v1388_v49  ;;  %v2548_v58 = vcvt.s32.f32 %v1524_v50  ;;  %3379 = vmatpush.bf16.msrb.mxu3 %v3244_v51  ;;  %v1652_v63 = vunpack.c.0.s8 %v700_v19 }
  0x75   :  { %v370_v59 = vunpack.c.l.b16 %v361_v52  ;;  %v371_v60 = vunpack.c.h.b16 %v361_v52  ;;  %v2556_v62 = vcvt.s32.f32 %v1532_v54  ;;  %v3036_v0 = vpack.c.bf16 %v2284_v55, %v2276_v53 }
  0x76   :  { %v3100_v1 = vpack.c.bf16 %v2412_v57, %v2404_v56  ;;  %v1660_v2 = vunpack.c.1.s8 %v700_v19  ;;  %v1236_v3 = vunpack.c.0.s8 %v596_v33  ;;  %v2676_v8 = vcvt.s32.f32 %v1652_v63 }
  0x77   :  { %v378_v5 = vpack.c.b16 %v370_v59, %v370_v59  ;;  %v379_v6 = vpack.c.b16 %v371_v60, %v371_v60  ;;  %v3172_v7 = vpack.c.bf16 %v2556_v62, %v2548_v58  ;;  %3342 = vmatpush.bf16.msrb.mxu0 %v3036_v0  ;;  %v1244_v10 = vunpack.c.1.s8 %v596_v33  ;;  %v692_v33 = vld [vmem:[#allocation8 + $0x700] sm:$0xff]  ;;  %v5677_v60 = vld [vmem:[#allocation8 + $0x2c8] sm:$0xff] }
  0x78   :  { %3355 = vmatpush.bf16.msrb.mxu1 %v3100_v1  ;;  %v2684_v9 = vcvt.s32.f32 %v1660_v2  ;;  %v2260_v11 = vcvt.s32.f32 %v1236_v3  ;;  %v1364_v26 = vunpack.c.0.s8 %v628_v38  ;;  %v1372_v14 = vunpack.c.1.s8 %v628_v38 }
  0x79   :  { %v393_v12 = vpack.i.b16 %v378_v5, %v378_v5  ;;  %v397_v13 = vpack.i.b16 %v379_v6, %v379_v6  ;;  %3367 = vmatpush.bf16.msrb.mxu2 %v3172_v7  ;;  %v837_v15 = vunpack.c.2.s8 %v493_v4  ;;  %v2268_v18 = vcvt.s32.f32 %v1244_v10  ;;  %v589_v6 = vld [vmem:[#allocation8 + $0x3c8] sm:$0xff] }
  0x7a   :  { %v3236_v17 = vpack.c.bf16 %v2684_v9, %v2676_v8  ;;  %v2388_v19 = vcvt.s32.f32 %v1364_v26  ;;  %v845_v21 = vunpack.c.3.s8 %v493_v4  ;;  %v2396_v24 = vcvt.s32.f32 %v1372_v14  ;;  %v5688_v14 = vld [vmem:[#allocation8 + $0x88] sm:$0xff] }
  0x7b   :  { %v5652_v22 = vperm.slane %v393_v12, 0  ;;  %v5654_v23 = vperm.slane %v397_v13, 0  ;;  %v5656_v25 = vcvt.s32.f32 %v837_v15  ;;  %v3028_v27 = vpack.c.bf16 %v2268_v18, %v2260_v11 }
  0x7c   :  { %3380 = vmatpush.bf16.msrb.mxu3 %v3236_v17  ;;  %v5658_v28 = vcvt.s32.f32 %v845_v21  ;;  %v965_v31 = vunpack.c.2.s8 %v525_v16  ;;  %v973_v32 = vunpack.c.3.s8 %v525_v16  ;;  %v3092_v36 = vpack.c.bf16 %v2396_v24, %v2388_v19  ;;  %v5692_v19 = vld [vmem:[#allocation8 + $0x188] sm:$0xff] }
  0x7d   :  { %v426_v34 = vunpack.c.l.bf16 %v5652_v22  ;;  %v427_v35 = vunpack.c.l.bf16 %v5654_v23  ;;  %v1508_v37 = vunpack.c.2.s8 %v660_v20  ;;  %3343 = vmatpush.bf16.msrb.mxu0 %v3028_v27  ;;  %v1516_v43 = vunpack.c.3.s8 %v660_v20  ;;  %v5785_v23 = vld [vmem:[#allocation8 + $0x48] sm:$0xff] }
  0x7e   :  { %v2829_v38 = vpack.c.bf16 %v5658_v28, %v5656_v25  ;;  %v5664_v41 = vcvt.s32.f32 %v965_v31  ;;  %v5666_v42 = vcvt.s32.f32 %v973_v32  ;;  %3356 = vmatpush.bf16.msrb.mxu1 %v3092_v36  ;;  %v1636_v45 = vunpack.c.2.s8 %v692_v33 }
  0x7f   :  { %v2532_v44 = vcvt.s32.f32 %v1508_v37  ;;  %v1644_v46 = vunpack.c.3.s8 %v692_v33  ;;  %v821_v47 = vunpack.c.0.s8 %v493_v4  ;;  %v2540_v49 = vcvt.s32.f32 %v1516_v43 }
  0x80   :  { %v2893_v48 = vpack.c.bf16 %v5666_v42, %v5664_v41  ;;  %v829_v50 = vunpack.c.1.s8 %v493_v4  ;;  %v949_v51 = vunpack.c.0.s8 %v525_v16  ;;  %v2660_v52 = vcvt.s32.f32 %v1636_v45 }
  0x81   :  { %v2668_v53 = vcvt.s32.f32 %v1644_v46  ;;  %v5670_v54 = vcvt.s32.f32 %v821_v47  ;;  %v957_v55 = vunpack.c.1.s8 %v525_v16  ;;  %v3164_v56 = vpack.c.bf16 %v2540_v49, %v2532_v44 }
  0x82   :  { %v5672_v57 = vcvt.s32.f32 %v829_v50  ;;  %v5674_v58 = vcvt.s32.f32 %v949_v51  ;;  %v348_v59 = vperm.slane %v5640_v61, 4  ;;  %v349_v0 = vperm.slane %v5640_v61, 5 }
  0x83   :  { %v3228_v62 = vpack.c.bf16 %v2668_v53, %v2660_v52  ;;  %v5679_v63 = vcvt.s32.f32 %v957_v55  ;;  %v1492_v1 = vunpack.c.0.s8 %v660_v20  ;;  %3368 = vmatpush.bf16.msrb.mxu2 %v3164_v56  ;;  %v1500_v3 = vunpack.c.1.s8 %v660_v20 }
  0x84   :  { %v2821_v2 = vpack.c.bf16 %v5672_v57, %v5670_v54  ;;  %v1620_v4 = vunpack.c.0.s8 %v692_v33  ;;  %v1628_v5 = vunpack.c.1.s8 %v692_v33  ;;  %v362_v8 = vpack.c.bf16 %v349_v0, %v348_v59 }
  0x85   :  { %3381 = vmatpush.bf16.msrb.mxu3 %v3228_v62  ;;  %v2885_v7 = vpack.c.bf16 %v5679_v63, %v5674_v58  ;;  %v2516_v9 = vcvt.s32.f32 %v1492_v1  ;;  %v1093_v10 = vunpack.c.2.s8 %v5677_v60  ;;  %v2524_v11 = vcvt.s32.f32 %v1500_v3 }
  0x86   :  { %v2644_v26 = vcvt.s32.f32 %v1620_v4  ;;  %v2652_v12 = vcvt.s32.f32 %v1628_v5  ;;  %v1101_v13 = vunpack.c.3.s8 %v5677_v60  ;;  %v372_v15 = vunpack.c.l.b16 %v362_v8 }
  0x87   :  { %v373_v16 = vunpack.c.h.b16 %v362_v8  ;;  %v5690_v17 = vcvt.s32.f32 %v1093_v10  ;;  %v1221_v18 = vunpack.c.2.s8 %v589_v6  ;;  %v3156_v21 = vpack.c.bf16 %v2524_v11, %v2516_v9 }
  0x88   :  { %v3220_v20 = vpack.c.bf16 %v2652_v12, %v2644_v26  ;;  %v5694_v24 = vcvt.s32.f32 %v1101_v13  ;;  %v1229_v27 = vunpack.c.3.s8 %v589_v6  ;;  %v380_v31 = vpack.c.b16 %v372_v15, %v372_v15 }
  0x89   :  { %v381_v32 = vpack.c.b16 %v373_v16, %v373_v16  ;;  %v5696_v33 = vcvt.s32.f32 %v1221_v18  ;;  %v805_v36 = vunpack.c.2.s8 %v5688_v14  ;;  %3369 = vmatpush.bf16.msrb.mxu2 %v3156_v21  ;;  %v813_v44 = vunpack.c.3.s8 %v5688_v14 }
  0x8a   :  { %3382 = vmatpush.bf16.msrb.mxu3 %v3220_v20  ;;  %v2957_v37 = vpack.c.bf16 %v5694_v24, %v5690_v17  ;;  %v5701_v43 = vcvt.s32.f32 %v1229_v27  ;;  %v933_v45 = vunpack.c.2.s8 %v5692_v19  ;;  %v401_v47 = vpack.i.b16 %v380_v31, %v380_v31 }
  0x8b   :  { %v405_v49 = vpack.i.b16 %v381_v32, %v381_v32  ;;  %v5705_v50 = vcvt.s32.f32 %v805_v36  ;;  %v941_v51 = vunpack.c.3.s8 %v5692_v19  ;;  %v5710_v55 = vcvt.s32.f32 %v813_v44 }
  0x8c   :  { %v3021_v53 = vpack.c.bf16 %v5701_v43, %v5696_v33  ;;  %v5712_v56 = vcvt.s32.f32 %v933_v45  ;;  %v1077_v59 = vunpack.c.0.s8 %v5677_v60  ;;  %v5715_v0 = vperm.slane %v401_v47, 0 }
  0x8d   :  { %v5717_v1 = vperm.slane %v405_v49, 0  ;;  %v5719_v3 = vcvt.s32.f32 %v941_v51  ;;  %v2813_v4 = vpack.c.bf16 %v5710_v55, %v5705_v50  ;;  %v1085_v5 = vunpack.c.1.s8 %v5677_v60 }
  0x8e   :  { %v5724_v8 = vcvt.s32.f32 %v1077_v59  ;;  %v1205_v9 = vunpack.c.0.s8 %v589_v6  ;;  %v428_v26 = vunpack.c.l.bf16 %v5715_v0  ;;  %v1213_v16 = vunpack.c.1.s8 %v589_v6  ;;  %v5753_v59 = vld [vmem:[#allocation8 + $0x288] sm:$0xff] }
  0x8f   :  { %v429_v12 = vunpack.c.l.bf16 %v5717_v1  ;;  %v2877_v13 = vpack.c.bf16 %v5719_v3, %v5712_v56  ;;  %v5730_v15 = vcvt.s32.f32 %v1085_v5  ;;  %v350_v20 = vperm.slane %v5640_v61, 6 }
  0x90   :  { %v5732_v18 = vcvt.s32.f32 %v1205_v9  ;;  %v351_v27 = vperm.slane %v5640_v61, 7  ;;  %v5742_v36 = vcvt.s32.f32 %v1213_v16  ;;  %v789_v6 = vunpack.c.0.s8 %v5688_v14 }
  0x91   :  { %v2949_v32 = vpack.c.bf16 %v5730_v15, %v5724_v8  ;;  %v797_v44 = vunpack.c.1.s8 %v5688_v14  ;;  %v781_v54 = vunpack.c.3.s8 %v5785_v23  ;;  %v1053_v24 = vunpack.c.1.s8 %v5753_v59  ;;  %v5852_v15 = vld [vmem:[#allocation8 + $0x248] sm:$0xff] }
  0x92   :  { %v363_v30 = vpack.c.bf16 %v351_v27, %v350_v20  ;;  %v3013_v61 = vpack.c.bf16 %v5742_v36, %v5732_v18  ;;  %v5749_v51 = vcvt.s32.f32 %v789_v6  ;;  %v1061_v6 = vunpack.c.2.s8 %v5753_v59 }
  0x93   :  { %v765_v8 = vunpack.c.1.s8 %v5785_v23 }
  0x94   :  { %v374_v5 = vunpack.c.l.b16 %v363_v30  ;;  %v375_v9 = vunpack.c.h.b16 %v363_v30  ;;  %v5782_v30 = vcvt.s32.f32 %v1061_v6 }
  0x96   :  { %v382_v20 = vpack.c.b16 %v374_v5, %v374_v5  ;;  %v383_v27 = vpack.c.b16 %v375_v9, %v375_v9  ;;  %v5798_v5 = vld [vmem:[#allocation8 + $0x148] sm:$0xff] }
  0x97   :  { %v901_v58 = vunpack.c.2.s8 %v5798_v5  ;;  %v909_v63 = vunpack.c.3.s8 %v5798_v5 }
  0x99   :  { %v1933_v17 = vcvt.s32.f32 %v909_v63 }
  0xa7   :  { %v243_v46 = vpop.f32.mrf.mxu0  ;;  %v256_v52 = vpop.f32.mrf.mxu1 }
  0xa8   :  { %v338_v62 = vpack.c.bf16 %v256_v52, %v243_v46  ;;  %v5751_v52 = vcvt.s32.f32 %v797_v44 }
  0xaa   :  { %v416_v10 = vunpack.c.l.bf16 %v338_v62  ;;  %v417_v11 = vunpack.c.h.bf16 %v338_v62  ;;  %v2805_v16 = vpack.c.bf16 %v5751_v52, %v5749_v51  ;;  %v1789_v52 = vcvt.s32.f32 %v765_v8 }
  0xac   :  { %v432_v60 = vadd.f32 %v424_v39, %v416_v10  ;;  %v433_v21 = vadd.f32 %v425_v40, %v417_v11  ;;  %v917_v40 = vunpack.c.0.s8 %v5692_v19 }
  0xae   :  { %v452_v45 = vmax.f32 %v432_v60, 0.0  ;;  %v453_v29 = vmax.f32 %v433_v21, 0.0  ;;  %v925_v60 = vunpack.c.1.s8 %v5692_v19  ;;  %v5762_v21 = vld [vmem:[#allocation8 + $0x388] sm:$0xff] }
  0xaf   :  { %v269_v31 = vpop.f32.mrf.mxu2  ;;  %v282_v39 = vpop.f32.mrf.mxu3  ;;  %v1189_v22 = vunpack.c.2.s8 %v5762_v21  ;;  %v1181_v56 = vunpack.c.1.s8 %v5762_v21 }
  0xb0   :  { %v245_v46 = vpop.f32.mrf.mxu0  ;;  %v339_v47 = vpack.c.bf16 %v282_v39, %v269_v31  ;;  %v258_v49 = vpop.f32.mrf.mxu1  ;;  %v5755_v62 = vpack.c.bf16 %v452_v45, %v452_v45  ;;  %v5757_v14 = vpack.c.bf16 %v453_v29, %v453_v29  ;;  %v5766_v31 = vcvt.s32.f32 %v917_v40 }
  0xb1   :  { %v5779_v19 = vcvt.s32.f32 %v925_v60  ;;  %v1069_v29 = vunpack.c.3.s8 %v5753_v59  ;;  %v409_v39 = vpack.i.b16 %v382_v20, %v382_v20  ;;  %v413_v46 = vpack.i.b16 %v383_v27, %v383_v27 }
  0xb2   :  { %v418_v10 = vunpack.c.l.bf16 %v339_v47  ;;  %v419_v11 = vunpack.c.h.bf16 %v339_v47  ;;  %3292 = vmatmul.bf16.vlgmr.msra.gmra.mxu0 %v5755_v62  ;;  %3305 = vmatmul.bf16.vlgmr.msra.gmra.mxu1 %v5757_v14  ;;  %v1197_v47 = vunpack.c.3.s8 %v5762_v21  ;;  %v5796_v49 = vcvt.s32.f32 %v1189_v22 }
  0xb3   :  { %3388 = vmatpush.bf16.msra.mxu0 %v2829_v38  ;;  %3401 = vmatpush.bf16.msra.mxu1 %v2893_v48  ;;  %v2869_v28 = vpack.c.bf16 %v5779_v19, %v5766_v31  ;;  %v5789_v38 = vcvt.s32.f32 %v1069_v29  ;;  %v5791_v48 = vperm.slane %v409_v39, 0  ;;  %v5793_v40 = vperm.slane %v413_v46, 0 }
  0xb4   :  { %v434_v44 = vadd.f32 %v426_v34, %v418_v10  ;;  %v435_v45 = vadd.f32 %v427_v35, %v419_v11  ;;  %v773_v20 = vunpack.c.2.s8 %v5785_v23  ;;  %v1045_v19 = vunpack.c.0.s8 %v5753_v59 }
  0xb5   :  { %v2941_v60 = vpack.c.bf16 %v5789_v38, %v5782_v30  ;;  %v430_v31 = vunpack.c.l.bf16 %v5791_v48  ;;  %v431_v6 = vunpack.c.l.bf16 %v5793_v40  ;;  %v1805_v29 = vcvt.s32.f32 %v781_v54 }
  0xb6   :  { %v454_v34 = vmax.f32 %v434_v44, 0.0  ;;  %v455_v35 = vmax.f32 %v435_v45, 0.0  ;;  %v2221_v44 = vcvt.s32.f32 %v1197_v47  ;;  %v1797_v57 = vcvt.s32.f32 %v773_v20  ;;  %v501_v20 = vld [vmem:[#allocation8 + $0x108] sm:$0xff] }
  0xb7   :  { %v271_v25 = vpop.f32.mrf.mxu2  ;;  %v284_v41 = vpop.f32.mrf.mxu3  ;;  %3389 = vmatpush.bf16.msra.mxu0 %v2821_v2  ;;  %3402 = vmatpush.bf16.msra.mxu1 %v2885_v7  ;;  %v1925_v39 = vcvt.s32.f32 %v901_v58  ;;  %v2069_v43 = vcvt.s32.f32 %v1045_v19  ;;  %v2077_v46 = vcvt.s32.f32 %v1053_v24  ;;  %v2205_v30 = vcvt.s32.f32 %v1181_v56 }
  0xb8   :  { %v295_v42 = vpop.f32.mrf.mxu0  ;;  %v5800_v9 = vpack.c.bf16 %v454_v34, %v454_v34  ;;  %v5802_v10 = vpack.c.bf16 %v455_v35, %v455_v35  ;;  %v308_v11 = vpop.f32.mrf.mxu1  ;;  %v3005_v45 = vpack.c.bf16 %v2221_v44, %v5796_v49  ;;  %v2797_v55 = vpack.c.bf16 %v1805_v29, %v1797_v57  ;;  %v573_v34 = vld [vmem:[#allocation8 + $0x348] sm:$0xff] }
  0xb9   :  { %v340_v27 = vpack.c.bf16 %v308_v11, %v295_v42  ;;  %v885_v22 = vunpack.c.0.s8 %v5798_v5  ;;  %v1037_v38 = vunpack.c.3.s8 %v5852_v15  ;;  %v469_v41 = vld [vmem:[#allocation8 + $0x8] sm:$0xff]  ;;  %v1157_v47 = vunpack.c.2.s8 %v573_v34 }
  0xba   :  { %3318 = vmatmul.bf16.vlgmr.msra.gmra.mxu2 %v5800_v9  ;;  %3331 = vmatmul.bf16.vlgmr.msra.gmra.mxu3 %v5802_v10  ;;  %v741_v58 = vunpack.c.2.s8 %v469_v41  ;;  %v853_v8 = vunpack.c.0.s8 %v501_v20 }
  0xbb   :  { %v420_v2 = vunpack.c.l.bf16 %v340_v27  ;;  %v421_v7 = vunpack.c.h.bf16 %v340_v27  ;;  %3414 = vmatpush.bf16.msra.mxu2 %v2957_v37  ;;  %3427 = vmatpush.bf16.msra.mxu3 %v3021_v53  ;;  %v1173_v53 = vunpack.c.0.s8 %v5762_v21  ;;  %v2933_v21 = vpack.c.bf16 %v2077_v46, %v2069_v43 }
  0xbc   :  { %3390 = vmatpush.bf16.msra.mxu0 %v2813_v4  ;;  %3403 = vmatpush.bf16.msra.mxu1 %v2877_v13  ;;  %v2861_v4 = vpack.c.bf16 %v1933_v17, %v1925_v39  ;;  %v2181_v54 = vcvt.s32.f32 %v1157_v47  ;;  %v1765_v29 = vcvt.s32.f32 %v741_v58  ;;  %v869_v39 = vunpack.c.2.s8 %v501_v20 }
  0xbd   :  { %v436_v33 = vadd.f32 %v428_v26, %v420_v2  ;;  %v437_v37 = vadd.f32 %v429_v12, %v421_v7  ;;  %v2197_v1 = vcvt.s32.f32 %v1173_v53  ;;  %v757_v26 = vunpack.c.0.s8 %v5785_v23 }
  0xbe   :  { %v1909_v23 = vcvt.s32.f32 %v885_v22  ;;  %v749_v7 = vunpack.c.3.s8 %v469_v41  ;;  %v1893_v43 = vcvt.s32.f32 %v869_v39  ;;  %v1021_v53 = vunpack.c.1.s8 %v5852_v15 }
  0xbf   :  { %v321_v50 = vpop.f32.mrf.mxu2  ;;  %v456_v3 = vmax.f32 %v436_v33, 0.0  ;;  %v457_v13 = vmax.f32 %v437_v37, 0.0  ;;  %3415 = vmatpush.bf16.msra.mxu2 %v2949_v32  ;;  %3428 = vmatpush.bf16.msra.mxu3 %v3013_v61  ;;  %v334_v0 = vpop.f32.mrf.mxu3  ;;  %v1781_v61 = vcvt.s32.f32 %v757_v26  ;;  %v2997_v51 = vpack.c.bf16 %v2205_v30, %v2197_v1 }
  0xc0   :  { %v297_v12 = vpop.f32.mrf.mxu0  ;;  %v341_v59 = vpack.c.bf16 %v334_v0, %v321_v50  ;;  %3391 = vmatpush.bf16.msra.mxu0 %v2805_v16  ;;  %3404 = vmatpush.bf16.msra.mxu1 %v2869_v28  ;;  %v310_v32 = vpop.f32.mrf.mxu1  ;;  %v893_v16 = vunpack.c.1.s8 %v5798_v5  ;;  %v1029_v28 = vunpack.c.2.s8 %v5852_v15  ;;  %v1165_v5 = vunpack.c.3.s8 %v573_v34 }
  0xc1   :  { %v5854_v18 = vpack.c.bf16 %v456_v3, %v456_v3  ;;  %v5856_v36 = vpack.c.bf16 %v457_v13, %v457_v13  ;;  %v2789_v40 = vpack.c.bf16 %v1789_v52, %v1781_v61  ;;  %v1773_v24 = vcvt.s32.f32 %v749_v7  ;;  %v621_v13 = vld [vmem:[#allocation8 + $0x4c8] sm:$0xff] }
  0xc2   :  { %v422_v35 = vunpack.c.l.bf16 %v341_v59  ;;  %v423_v25 = vunpack.c.h.bf16 %v341_v59  ;;  %v1917_v49 = vcvt.s32.f32 %v893_v16  ;;  %v2053_v11 = vcvt.s32.f32 %v1029_v28  ;;  %v653_v59 = vld [vmem:[#allocation8 + $0x5c8] sm:$0xff] }
  0xc3   :  { %3416 = vmatpush.bf16.msra.mxu2 %v2941_v60  ;;  %3429 = vmatpush.bf16.msra.mxu3 %v3005_v45  ;;  %v2061_v60 = vcvt.s32.f32 %v1037_v38  ;;  %v2189_v63 = vcvt.s32.f32 %v1165_v5  ;;  %v877_v33 = vunpack.c.3.s8 %v501_v20  ;;  %v1013_v37 = vunpack.c.0.s8 %v5852_v15  ;;  %v533_v15 = vld [vmem:[#allocation8 + $0x208] sm:$0xff] }
  0xc4   :  { %v438_v42 = vadd.f32 %v430_v31, %v422_v35  ;;  %v439_v48 = vadd.f32 %v431_v6, %v423_v25  ;;  %3344 = vmatmul.bf16.vlgmr.msrb.gmra.mxu0 %v5854_v18  ;;  %3357 = vmatmul.bf16.vlgmr.msrb.gmra.mxu1 %v5856_v36  ;;  %v2853_v31 = vpack.c.bf16 %v1917_v49, %v1909_v23  ;;  %v1141_v50 = vunpack.c.0.s8 %v573_v34  ;;  %v565_v23 = vld [vmem:[#allocation8 + $0x308] sm:$0xff] }
  0xc5   :  { %3392 = vmatpush.bf16.msra.mxu0 %v2797_v55  ;;  %3405 = vmatpush.bf16.msra.mxu1 %v2861_v4  ;;  %v2925_v6 = vpack.c.bf16 %v2061_v60, %v2053_v11  ;;  %v2989_v17 = vpack.c.bf16 %v2189_v63, %v2181_v54  ;;  %v1149_v55 = vunpack.c.1.s8 %v573_v34  ;;  %v2781_v4 = vpack.c.bf16 %v1773_v24, %v1765_v29 }
  0xc6   :  { %v458_v27 = vmax.f32 %v438_v42, 0.0  ;;  %v459_v44 = vmax.f32 %v439_v48, 0.0  ;;  %v1901_v46 = vcvt.s32.f32 %v877_v33  ;;  %v2037_v56 = vcvt.s32.f32 %v1013_v37 }
  0xc7   :  { %v323_v57 = vpop.f32.mrf.mxu2  ;;  %3417 = vmatpush.bf16.msra.mxu2 %v2933_v21  ;;  %3430 = vmatpush.bf16.msra.mxu3 %v2997_v51  ;;  %v336_v2 = vpop.f32.mrf.mxu3  ;;  %v725_v3 = vunpack.c.0.s8 %v469_v41  ;;  %v2045_v0 = vcvt.s32.f32 %v1021_v53  ;;  %v2165_v1 = vcvt.s32.f32 %v1141_v50  ;;  %v2173_v26 = vcvt.s32.f32 %v1149_v55  ;;  %v717_v53 = vld [vmem:[#allocation8 + $0x7c8] sm:$0xff] }
  0xc8   :  { %v5864_v45 = vpack.c.bf16 %v458_v27, %v458_v27  ;;  %v5866_v19 = vpack.c.bf16 %v459_v44, %v459_v44  ;;  %v733_v12 = vunpack.c.1.s8 %v469_v41  ;;  %v2845_v21 = vpack.c.bf16 %v1901_v46, %v1893_v43 }
  0xc9   :  { %3393 = vmatpush.bf16.msra.mxu0 %v2789_v40  ;;  %3406 = vmatpush.bf16.msra.mxu1 %v2853_v31  ;;  %v1749_v30 = vcvt.s32.f32 %v725_v3  ;;  %v861_v32 = vunpack.c.1.s8 %v501_v20  ;;  %v2917_v61 = vpack.c.bf16 %v2045_v0, %v2037_v56  ;;  %v2981_v22 = vpack.c.bf16 %v2173_v26, %v2165_v1  ;;  %v613_v1 = vld [vmem:[#allocation8 + $0x488] sm:$0xff] }
  0xca   :  { %3370 = vmatmul.bf16.vlgmr.msrb.gmra.mxu2 %v5864_v45  ;;  %3383 = vmatmul.bf16.vlgmr.msrb.gmra.mxu3 %v5866_v19  ;;  %v1757_v34 = vcvt.s32.f32 %v733_v12  ;;  %v1349_v35 = vunpack.c.2.s8 %v621_v13  ;;  %v1877_v25 = vcvt.s32.f32 %v853_v8  ;;  %v1357_v52 = vunpack.c.3.s8 %v621_v13 }
  0xcb   :  { %3418 = vmatpush.bf16.msra.mxu2 %v2925_v6  ;;  %3431 = vmatpush.bf16.msra.mxu3 %v2989_v17  ;;  %v1885_v51 = vcvt.s32.f32 %v861_v32  ;;  %v1477_v16 = vunpack.c.2.s8 %v653_v59  ;;  %v1485_v41 = vunpack.c.3.s8 %v653_v59  ;;  %v997_v42 = vunpack.c.2.s8 %v533_v15  ;;  %v685_v17 = vld [vmem:[#allocation8 + $0x6c8] sm:$0xff] }
  0xcc   :  { %v2773_v28 = vpack.c.bf16 %v1757_v34, %v1749_v30  ;;  %v2373_v38 = vcvt.s32.f32 %v1349_v35  ;;  %v2381_v40 = vcvt.s32.f32 %v1357_v52  ;;  %v1005_v49 = vunpack.c.3.s8 %v533_v15  ;;  %v645_v30 = vld [vmem:[#allocation8 + $0x588] sm:$0xff] }
  0xcd   :  { %3394 = vmatpush.bf16.msra.mxu0 %v2781_v4  ;;  %3407 = vmatpush.bf16.msra.mxu1 %v2845_v21  ;;  %v2837_v48 = vpack.c.bf16 %v1885_v51, %v1877_v25  ;;  %v2501_v47 = vcvt.s32.f32 %v1477_v16  ;;  %v2509_v11 = vcvt.s32.f32 %v1485_v41  ;;  %v2021_v60 = vcvt.s32.f32 %v997_v42 }
  0xce   :  { %v1125_v5 = vunpack.c.2.s8 %v565_v23  ;;  %v1133_v20 = vunpack.c.3.s8 %v565_v23  ;;  %v3085_v27 = vpack.c.bf16 %v2381_v40, %v2373_v38  ;;  %v2029_v44 = vcvt.s32.f32 %v1005_v49 }
  0xcf   :  { %3419 = vmatpush.bf16.msra.mxu2 %v2917_v61  ;;  %3432 = vmatpush.bf16.msra.mxu3 %v2981_v22  ;;  %v1333_v54 = vunpack.c.0.s8 %v621_v13  ;;  %v1341_v57 = vunpack.c.1.s8 %v621_v13  ;;  %v3149_v58 = vpack.c.bf16 %v2509_v11, %v2501_v47  ;;  %v1461_v63 = vunpack.c.0.s8 %v653_v59 }
  0xd0   :  { %v2149_v31 = vcvt.s32.f32 %v1125_v5  ;;  %v2157_v6 = vcvt.s32.f32 %v1133_v20  ;;  %v2909_v2 = vpack.c.bf16 %v2029_v44, %v2021_v60  ;;  %v1469_v39 = vunpack.c.1.s8 %v653_v59 }
  0xd1   :  { %3395 = vmatpush.bf16.msra.mxu0 %v2773_v28  ;;  %3408 = vmatpush.bf16.msra.mxu1 %v2837_v48  ;;  %v2357_v7 = vcvt.s32.f32 %v1333_v54  ;;  %v2365_v29 = vcvt.s32.f32 %v1341_v57  ;;  %v2485_v33 = vcvt.s32.f32 %v1461_v63  ;;  %v981_v37 = vunpack.c.0.s8 %v533_v15 }
  0xd2   :  { %v2973_v24 = vpack.c.bf16 %v2157_v6, %v2149_v31  ;;  %v989_v43 = vunpack.c.1.s8 %v533_v15  ;;  %v2493_v55 = vcvt.s32.f32 %v1469_v39  ;;  %v1109_v4 = vunpack.c.0.s8 %v565_v23  ;;  %v709_v31 = vld [vmem:[#allocation8 + $0x788] sm:$0xff] }
  0xd3   :  { %3420 = vmatpush.bf16.msra.mxu2 %v2909_v2  ;;  %v3077_v50 = vpack.c.bf16 %v2365_v29, %v2357_v7  ;;  %v1117_v46 = vunpack.c.1.s8 %v565_v23  ;;  %v2005_v56 = vcvt.s32.f32 %v981_v37  ;;  %v1605_v13 = vunpack.c.2.s8 %v685_v17 }
  0xd4   :  { %3396 = vmatmul.bf16.vlgmr.msra.gmra.mxu0 %v5755_v62  ;;  %3409 = vmatmul.bf16.vlgmr.msra.gmra.mxu1 %v5757_v14  ;;  %v2013_v3 = vcvt.s32.f32 %v989_v43  ;;  %v1613_v0 = vunpack.c.3.s8 %v685_v17  ;;  %v3141_v26 = vpack.c.bf16 %v2493_v55, %v2485_v33  ;;  %v2133_v12 = vcvt.s32.f32 %v1109_v4  ;;  %v605_v33 = vld [vmem:[#allocation8 + $0x448] sm:$0xff] }
  0xd5   :  { %3440 = vmatpush.bf16.msrb.mxu0 %v3085_v27  ;;  %3453 = vmatpush.bf16.msrb.mxu1 %v3149_v58  ;;  %v2141_v59 = vcvt.s32.f32 %v1117_v46  ;;  %v1733_v21 = vunpack.c.2.s8 %v717_v53  ;;  %v2629_v32 = vcvt.s32.f32 %v1605_v13  ;;  %v1741_v61 = vunpack.c.3.s8 %v717_v53  ;;  %v677_v27 = vld [vmem:[#allocation8 + $0x688] sm:$0xff] }
  0xd6   :  { %3433 = vmatpush.bf16.msra.mxu3 %v2973_v24  ;;  %v2901_v8 = vpack.c.bf16 %v2013_v3, %v2005_v56  ;;  %v2637_v15 = vcvt.s32.f32 %v1613_v0  ;;  %v1317_v35 = vunpack.c.2.s8 %v613_v1  ;;  %v1325_v25 = vunpack.c.3.s8 %v613_v1  ;;  %v637_v55 = vld [vmem:[#allocation8 + $0x548] sm:$0xff] }
  0xd7   :  { %v2965_v22 = vpack.c.bf16 %v2141_v59, %v2133_v12  ;;  %v2757_v34 = vcvt.s32.f32 %v1733_v21  ;;  %v2765_v52 = vcvt.s32.f32 %v1741_v61  ;;  %v1445_v16 = vunpack.c.2.s8 %v645_v30 }
  0xd8   :  { %3421 = vmatpush.bf16.msra.mxu2 %v2901_v8  ;;  %v3213_v51 = vpack.c.bf16 %v2637_v15, %v2629_v32  ;;  %v1453_v23 = vunpack.c.3.s8 %v645_v30  ;;  %v2341_v28 = vcvt.s32.f32 %v1317_v35  ;;  %v2349_v38 = vcvt.s32.f32 %v1325_v25 }
  0xd9   :  { %3441 = vmatpush.bf16.msrb.mxu0 %v3077_v50  ;;  %3454 = vmatpush.bf16.msrb.mxu1 %v3141_v26  ;;  %v1589_v41 = vunpack.c.0.s8 %v685_v17  ;;  %v1597_v42 = vunpack.c.1.s8 %v685_v17  ;;  %v3277_v48 = vpack.c.bf16 %v2765_v52, %v2757_v34  ;;  %v2469_v40 = vcvt.s32.f32 %v1445_v16 }
  0xda   :  { %3434 = vmatpush.bf16.msra.mxu3 %v2965_v22  ;;  %v2477_v47 = vcvt.s32.f32 %v1453_v23  ;;  %v1717_v49 = vunpack.c.0.s8 %v717_v53  ;;  %v3069_v11 = vpack.c.bf16 %v2349_v38, %v2341_v28  ;;  %v1725_v20 = vunpack.c.1.s8 %v717_v53  ;;  %v669_v28 = vld [vmem:[#allocation8 + $0x648] sm:$0xff] }
  0xdb   :  { %3422 = vmatmul.bf16.vlgmr.msra.gmra.mxu2 %v5800_v9  ;;  %v2613_v60 = vcvt.s32.f32 %v1589_v41  ;;  %v2621_v5 = vcvt.s32.f32 %v1597_v42  ;;  %v1301_v57 = vunpack.c.0.s8 %v613_v1  ;;  %v1309_v58 = vunpack.c.1.s8 %v613_v1 }
  0xdc   :  { %3466 = vmatpush.bf16.msrb.mxu2 %v3213_v51  ;;  %v3133_v44 = vpack.c.bf16 %v2477_v47, %v2469_v40  ;;  %v2741_v54 = vcvt.s32.f32 %v1717_v49  ;;  %v2749_v63 = vcvt.s32.f32 %v1725_v20  ;;  %v1429_v2 = vunpack.c.0.s8 %v645_v30  ;;  %v701_v40 = vld [vmem:[#allocation8 + $0x748] sm:$0xff] }
  0xdd   :  { %3442 = vmatpush.bf16.msrb.mxu0 %v3069_v11  ;;  %3435 = vmatmul.bf16.vlgmr.msra.gmra.mxu3 %v5802_v10  ;;  %v3205_v6 = vpack.c.bf16 %v2621_v5, %v2613_v60  ;;  %v1437_v7 = vunpack.c.1.s8 %v645_v30  ;;  %v2325_v29 = vcvt.s32.f32 %v1301_v57  ;;  %v2333_v39 = vcvt.s32.f32 %v1309_v58 }
  0xde   :  { %3479 = vmatpush.bf16.msrb.mxu3 %v3277_v48  ;;  %3455 = vmatpush.bf16.msrb.mxu1 %v3133_v44  ;;  %v1573_v17 = vunpack.c.2.s8 %v677_v27  ;;  %v1581_v24 = vunpack.c.3.s8 %v677_v27  ;;  %v3269_v37 = vpack.c.bf16 %v2749_v63, %v2741_v54  ;;  %v2453_v43 = vcvt.s32.f32 %v1429_v2  ;;  %v597_v54 = vld [vmem:[#allocation8 + $0x408] sm:$0xff] }
  0xdf   :  { %v2461_v53 = vcvt.s32.f32 %v1437_v7  ;;  %v1701_v50 = vunpack.c.2.s8 %v709_v31  ;;  %v3061_v4 = vpack.c.bf16 %v2333_v39, %v2325_v29  ;;  %v1709_v3 = vunpack.c.3.s8 %v709_v31  ;;  %v629_v63 = vld [vmem:[#allocation8 + $0x508] sm:$0xff] }
  0xe0   :  { %3467 = vmatpush.bf16.msrb.mxu2 %v3205_v6  ;;  %v2597_v46 = vcvt.s32.f32 %v1573_v17  ;;  %v2605_v56 = vcvt.s32.f32 %v1581_v24  ;;  %v1285_v1 = vunpack.c.2.s8 %v605_v33  ;;  %v1293_v26 = vunpack.c.3.s8 %v605_v33 }
  0xe1   :  { %v3125_v13 = vpack.c.bf16 %v2461_v53, %v2453_v43  ;;  %v2725_v0 = vcvt.s32.f32 %v1701_v50  ;;  %3443 = vmatpush.bf16.msrb.mxu0 %v3061_v4  ;;  %v2733_v59 = vcvt.s32.f32 %v1709_v3  ;;  %v1413_v21 = vunpack.c.2.s8 %v637_v55 }
  0xe2   :  { %3480 = vmatpush.bf16.msrb.mxu3 %v3269_v37  ;;  %v3197_v12 = vpack.c.bf16 %v2605_v56, %v2597_v46  ;;  %v1421_v30 = vunpack.c.3.s8 %v637_v55  ;;  %v2309_v8 = vcvt.s32.f32 %v1285_v1  ;;  %v2317_v32 = vcvt.s32.f32 %v1293_v26 }
  0xe3   :  { %3456 = vmatpush.bf16.msrb.mxu1 %v3125_v13  ;;  %v1557_v15 = vunpack.c.0.s8 %v677_v27  ;;  %v1565_v61 = vunpack.c.1.s8 %v677_v27  ;;  %v3261_v22 = vpack.c.bf16 %v2733_v59, %v2725_v0  ;;  %v2437_v34 = vcvt.s32.f32 %v1413_v21 }
  0xe4   :  { %3468 = vmatpush.bf16.msrb.mxu2 %v3197_v12  ;;  %v2445_v35 = vcvt.s32.f32 %v1421_v30  ;;  %v1685_v25 = vunpack.c.0.s8 %v709_v31  ;;  %v3053_v51 = vpack.c.bf16 %v2317_v32, %v2309_v8  ;;  %v1693_v23 = vunpack.c.1.s8 %v709_v31  ;;  %v494_v8 = vld [vmem:[#allocation8 + $0xd0] sm:$0xff] }
  0xe5   :  { %v2581_v52 = vcvt.s32.f32 %v1557_v15  ;;  %v2589_v16 = vcvt.s32.f32 %v1565_v61  ;;  %v1269_v42 = vunpack.c.0.s8 %v605_v33  ;;  %v1277_v48 = vunpack.c.1.s8 %v605_v33 }
  0xe6   :  { %3481 = vmatpush.bf16.msrb.mxu3 %v3261_v22  ;;  %v3117_v38 = vpack.c.bf16 %v2445_v35, %v2437_v34  ;;  %v2709_v41 = vcvt.s32.f32 %v1685_v25  ;;  %3444 = vmatpush.bf16.msrb.mxu0 %v3053_v51  ;;  %v2717_v49 = vcvt.s32.f32 %v1693_v23  ;;  %v1397_v11 = vunpack.c.0.s8 %v637_v55  ;;  %v526_v34 = vld [vmem:[#allocation8 + $0x1d0] sm:$0xff] }
  0xe7   :  { %v3189_v47 = vpack.c.bf16 %v2589_v16, %v2581_v52  ;;  %v1405_v60 = vunpack.c.1.s8 %v637_v55  ;;  %v2293_v5 = vcvt.s32.f32 %v1269_v42  ;;  %v2301_v20 = vcvt.s32.f32 %v1277_v48 }
  0xe8   :  { %3457 = vmatpush.bf16.msrb.mxu1 %v3117_v38  ;;  %v1541_v27 = vunpack.c.2.s8 %v669_v28  ;;  %v1549_v44 = vunpack.c.3.s8 %v669_v28  ;;  %v3253_v57 = vpack.c.bf16 %v2717_v49, %v2709_v41  ;;  %v2421_v58 = vcvt.s32.f32 %v1397_v11  ;;  %v661_v41 = vld [vmem:[#allocation8 + $0x608] sm:$0xff] }
  0xe9   :  { %3469 = vmatpush.bf16.msrb.mxu2 %v3189_v47  ;;  %v2429_v31 = vcvt.s32.f32 %v1405_v60  ;;  %v1669_v6 = vunpack.c.2.s8 %v701_v40  ;;  %v3045_v2 = vpack.c.bf16 %v2301_v20, %v2293_v5  ;;  %v1677_v39 = vunpack.c.3.s8 %v701_v40  ;;  %v693_v49 = vld [vmem:[#allocation8 + $0x708] sm:$0xff] }
  0xea   :  { %v2565_v7 = vcvt.s32.f32 %v1541_v27  ;;  %v2573_v29 = vcvt.s32.f32 %v1549_v44  ;;  %3482 = vmatpush.bf16.msrb.mxu3 %v3253_v57  ;;  %v1253_v33 = vunpack.c.2.s8 %v597_v54  ;;  %v1261_v37 = vunpack.c.3.s8 %v597_v54 }
  0xeb   :  { %v3109_v17 = vpack.c.bf16 %v2429_v31, %v2421_v58  ;;  %v2693_v24 = vcvt.s32.f32 %v1669_v6  ;;  %3445 = vmatpush.bf16.msrb.mxu0 %v3045_v2  ;;  %v2701_v53 = vcvt.s32.f32 %v1677_v39  ;;  %v1381_v50 = vunpack.c.2.s8 %v629_v63 }
  0xec   :  { %v3181_v43 = vpack.c.bf16 %v2573_v29, %v2565_v7  ;;  %v1389_v55 = vunpack.c.3.s8 %v629_v63  ;;  %v2277_v4 = vcvt.s32.f32 %v1253_v33  ;;  %v2285_v46 = vcvt.s32.f32 %v1261_v37 }
  0xed   :  { %3458 = vmatpush.bf16.msrb.mxu1 %v3109_v17  ;;  %v1525_v56 = vunpack.c.0.s8 %v669_v28  ;;  %v1533_v3 = vunpack.c.1.s8 %v669_v28  ;;  %v3245_v13 = vpack.c.bf16 %v2701_v53, %v2693_v24  ;;  %v2405_v0 = vcvt.s32.f32 %v1381_v50 }
  0xee   :  { %3470 = vmatpush.bf16.msrb.mxu2 %v3181_v43  ;;  %v2413_v1 = vcvt.s32.f32 %v1389_v55  ;;  %v1653_v26 = vunpack.c.0.s8 %v701_v40  ;;  %v3037_v12 = vpack.c.bf16 %v2285_v46, %v2277_v4  ;;  %v1661_v30 = vunpack.c.1.s8 %v701_v40  ;;  %v558_v4 = vld [vmem:[#allocation8 + $0x2d0] sm:$0xff] }
  0xef   :  { %v2549_v59 = vcvt.s32.f32 %v1525_v56  ;;  %v2557_v21 = vcvt.s32.f32 %v1533_v3  ;;  %3483 = vmatpush.bf16.msrb.mxu3 %v3245_v13  ;;  %v1237_v61 = vunpack.c.0.s8 %v597_v54  ;;  %v1245_v22 = vunpack.c.1.s8 %v597_v54 }
  0xf0   :  { %v3101_v32 = vpack.c.bf16 %v2413_v1, %v2405_v0  ;;  %v2677_v15 = vcvt.s32.f32 %v1653_v26  ;;  %3446 = vmatpush.bf16.msrb.mxu0 %v3037_v12  ;;  %v2685_v25 = vcvt.s32.f32 %v1661_v30  ;;  %v1365_v51 = vunpack.c.0.s8 %v629_v63  ;;  %v590_v0 = vld [vmem:[#allocation8 + $0x3d0] sm:$0xff] }
  0xf1   :  { %v3173_v35 = vpack.c.bf16 %v2557_v21, %v2549_v59  ;;  %v1373_v52 = vunpack.c.1.s8 %v629_v63  ;;  %v2261_v16 = vcvt.s32.f32 %v1237_v61  ;;  %v2269_v23 = vcvt.s32.f32 %v1245_v22 }
  0xf2   :  { %3459 = vmatpush.bf16.msrb.mxu1 %v3101_v32  ;;  %v838_v28 = vunpack.c.2.s8 %v494_v8  ;;  %v846_v38 = vunpack.c.3.s8 %v494_v8  ;;  %v3237_v42 = vpack.c.bf16 %v2685_v25, %v2677_v15  ;;  %v2389_v48 = vcvt.s32.f32 %v1365_v51  ;;  %v486_v15 = vld [vmem:[#allocation8 + $0x90] sm:$0xff] }
  0xf3   :  { %3471 = vmatpush.bf16.msrb.mxu2 %v3173_v35  ;;  %v2397_v40 = vcvt.s32.f32 %v1373_v52  ;;  %v966_v47 = vunpack.c.2.s8 %v526_v34  ;;  %v3029_v11 = vpack.c.bf16 %v2269_v23, %v2261_v16  ;;  %v974_v20 = vunpack.c.3.s8 %v526_v34  ;;  %v518_v25 = vld [vmem:[#allocation8 + $0x190] sm:$0xff] }
  0xf4   :  { %v1862_v60 = vcvt.s32.f32 %v838_v28  ;;  %v1870_v5 = vcvt.s32.f32 %v846_v38  ;;  %3484 = vmatpush.bf16.msrb.mxu3 %v3237_v42  ;;  %v1509_v54 = vunpack.c.2.s8 %v661_v41  ;;  %v1517_v57 = vunpack.c.3.s8 %v661_v41 }
  0xf5   :  { %v3093_v27 = vpack.c.bf16 %v2397_v40, %v2389_v48  ;;  %v1990_v44 = vcvt.s32.f32 %v966_v47  ;;  %3447 = vmatpush.bf16.msrb.mxu0 %v3029_v11  ;;  %v1998_v31 = vcvt.s32.f32 %v974_v20  ;;  %v1637_v6 = vunpack.c.2.s8 %v693_v49 }
  0xf6   :  { %v2830_v58 = vpack.c.bf16 %v1870_v5, %v1862_v60  ;;  %v1645_v63 = vunpack.c.3.s8 %v693_v49  ;;  %v2533_v2 = vcvt.s32.f32 %v1509_v54  ;;  %v2541_v7 = vcvt.s32.f32 %v1517_v57 }
  0xf7   :  { %3460 = vmatpush.bf16.msrb.mxu1 %v3093_v27  ;;  %v822_v29 = vunpack.c.0.s8 %v494_v8  ;;  %v830_v39 = vunpack.c.1.s8 %v494_v8  ;;  %v2894_v17 = vpack.c.bf16 %v1998_v31, %v1990_v44  ;;  %v2661_v24 = vcvt.s32.f32 %v1637_v6 }
  0xf8   :  { %v2669_v33 = vcvt.s32.f32 %v1645_v63  ;;  %v950_v37 = vunpack.c.0.s8 %v526_v34  ;;  %v3165_v43 = vpack.c.bf16 %v2541_v7, %v2533_v2  ;;  %3448 = vmatmul.bf16.vlgmr.msrb.gmra.mxu0 %v5854_v18  ;;  %v958_v55 = vunpack.c.1.s8 %v526_v34  ;;  %v550_v2 = vld [vmem:[#allocation8 + $0x290] sm:$0xff] }
  0xf9   :  { %3492 = vmatpush.bf16.msra.mxu0 %v2830_v58  ;;  %v1846_v53 = vcvt.s32.f32 %v822_v29  ;;  %v1854_v50 = vcvt.s32.f32 %v830_v39  ;;  %v1493_v3 = vunpack.c.0.s8 %v661_v41  ;;  %v1501_v13 = vunpack.c.1.s8 %v661_v41 }
  0xfa   :  { %v3229_v46 = vpack.c.bf16 %v2669_v33, %v2661_v24  ;;  %v1974_v56 = vcvt.s32.f32 %v950_v37  ;;  %3472 = vmatpush.bf16.msrb.mxu2 %v3165_v43  ;;  %3461 = vmatmul.bf16.vlgmr.msrb.gmra.mxu1 %v5856_v36  ;;  %v1982_v26 = vcvt.s32.f32 %v958_v55  ;;  %v1621_v12 = vunpack.c.0.s8 %v693_v49  ;;  %v582_v24 = vld [vmem:[#allocation8 + $0x390] sm:$0xff] }
  0xfb   :  { %3505 = vmatpush.bf16.msra.mxu1 %v2894_v17  ;;  %v2822_v1 = vpack.c.bf16 %v1854_v50, %v1846_v53  ;;  %v1629_v59 = vunpack.c.1.s8 %v693_v49  ;;  %v2517_v21 = vcvt.s32.f32 %v1493_v3  ;;  %v2525_v30 = vcvt.s32.f32 %v1501_v13 }
  0xfc   :  { %3485 = vmatpush.bf16.msrb.mxu3 %v3229_v46  ;;  %v1094_v8 = vunpack.c.2.s8 %v558_v4  ;;  %v1102_v32 = vunpack.c.3.s8 %v558_v4  ;;  %v2886_v61 = vpack.c.bf16 %v1982_v26, %v1974_v56  ;;  %v2645_v22 = vcvt.s32.f32 %v1621_v12  ;;  %v478_v56 = vld [vmem:[#allocation8 + $0x50] sm:$0xff] }
  0xfd   :  { %3493 = vmatpush.bf16.msra.mxu0 %v2822_v1  ;;  %v2653_v34 = vcvt.s32.f32 %v1629_v59  ;;  %v1222_v35 = vunpack.c.2.s8 %v590_v0  ;;  %v3157_v51 = vpack.c.bf16 %v2525_v30, %v2517_v21  ;;  %v1230_v23 = vunpack.c.3.s8 %v590_v0  ;;  %v510_v26 = vld [vmem:[#allocation8 + $0x150] sm:$0xff] }
  0xfe   :  { %v2118_v52 = vcvt.s32.f32 %v1094_v8  ;;  %v2126_v16 = vcvt.s32.f32 %v1102_v32  ;;  %v806_v41 = vunpack.c.2.s8 %v486_v15  ;;  %v814_v42 = vunpack.c.3.s8 %v486_v15 }
  0xff   :  { %3506 = vmatpush.bf16.msra.mxu1 %v2886_v61  ;;  %v3221_v28 = vpack.c.bf16 %v2653_v34, %v2645_v22  ;;  %v2246_v38 = vcvt.s32.f32 %v1222_v35  ;;  %3473 = vmatpush.bf16.msrb.mxu2 %v3157_v51  ;;  %v2254_v40 = vcvt.s32.f32 %v1230_v23  ;;  %v934_v47 = vunpack.c.2.s8 %v518_v25 }
 0x100   :  { %v2958_v48 = vpack.c.bf16 %v2126_v16, %v2118_v52  ;;  %v942_v49 = vunpack.c.3.s8 %v518_v25  ;;  %v1830_v11 = vcvt.s32.f32 %v806_v41  ;;  %v1838_v60 = vcvt.s32.f32 %v814_v42 }
 0x101   :  { %3486 = vmatpush.bf16.msrb.mxu3 %v3221_v28  ;;  %v1078_v5 = vunpack.c.0.s8 %v558_v4  ;;  %v1086_v20 = vunpack.c.1.s8 %v558_v4  ;;  %v3022_v27 = vpack.c.bf16 %v2254_v40, %v2246_v38  ;;  %v1958_v44 = vcvt.s32.f32 %v934_v47 }
 0x102   :  { %v1966_v54 = vcvt.s32.f32 %v942_v49  ;;  %v1206_v57 = vunpack.c.0.s8 %v590_v0  ;;  %3474 = vmatmul.bf16.vlgmr.msrb.gmra.mxu2 %v5864_v45  ;;  %v2814_v58 = vpack.c.bf16 %v1838_v60, %v1830_v11  ;;  %v1214_v63 = vunpack.c.1.s8 %v590_v0  ;;  %v542_v11 = vld [vmem:[#allocation8 + $0x250] sm:$0xff] }
 0x103   :  { %3518 = vmatpush.bf16.msra.mxu2 %v2958_v48  ;;  %v2102_v31 = vcvt.s32.f32 %v1078_v5  ;;  %v2110_v6 = vcvt.s32.f32 %v1086_v20  ;;  %v790_v39 = vunpack.c.0.s8 %v486_v15  ;;  %v798_v17 = vunpack.c.1.s8 %v486_v15 }
 0x104   :  { %v2878_v7 = vpack.c.bf16 %v1966_v54, %v1958_v44  ;;  %v2230_v29 = vcvt.s32.f32 %v1206_v57  ;;  %3487 = vmatmul.bf16.vlgmr.msrb.gmra.mxu3 %v5866_v19  ;;  %3494 = vmatpush.bf16.msra.mxu0 %v2814_v58  ;;  %v2238_v37 = vcvt.s32.f32 %v1214_v63  ;;  %v918_v43 = vunpack.c.0.s8 %v518_v25  ;;  %v574_v44 = vld [vmem:[#allocation8 + $0x350] sm:$0xff] }
 0x105   :  { %3531 = vmatpush.bf16.msra.mxu3 %v3022_v27  ;;  %v2950_v33 = vpack.c.bf16 %v2110_v6, %v2102_v31  ;;  %v926_v53 = vunpack.c.1.s8 %v518_v25  ;;  %v1814_v50 = vcvt.s32.f32 %v790_v39  ;;  %v1822_v55 = vcvt.s32.f32 %v798_v17 }
 0x106   :  { %3507 = vmatpush.bf16.msra.mxu1 %v2878_v7  ;;  %v1062_v4 = vunpack.c.2.s8 %v550_v2  ;;  %v1070_v46 = vunpack.c.3.s8 %v550_v2  ;;  %v3014_v3 = vpack.c.bf16 %v2238_v37, %v2230_v29  ;;  %v1942_v13 = vcvt.s32.f32 %v918_v43  ;;  %v470_v29 = vld [vmem:[#allocation8 + $0x10] sm:$0xff] }
 0x107   :  { %3519 = vmatpush.bf16.msra.mxu2 %v2950_v33  ;;  %v1950_v0 = vcvt.s32.f32 %v926_v53  ;;  %v1190_v1 = vunpack.c.2.s8 %v582_v24  ;;  %v2806_v12 = vpack.c.bf16 %v1822_v55, %v1814_v50  ;;  %v1198_v30 = vunpack.c.3.s8 %v582_v24  ;;  %v502_v37 = vld [vmem:[#allocation8 + $0x110] sm:$0xff] }
 0x108   :  { %v2086_v59 = vcvt.s32.f32 %v1062_v4  ;;  %v2094_v21 = vcvt.s32.f32 %v1070_v46  ;;  %v774_v15 = vunpack.c.2.s8 %v478_v56  ;;  %v782_v61 = vunpack.c.3.s8 %v478_v56 }
 0x109   :  { %3532 = vmatpush.bf16.msra.mxu3 %v3014_v3  ;;  %v2870_v8 = vpack.c.bf16 %v1950_v0, %v1942_v13  ;;  %v2214_v32 = vcvt.s32.f32 %v1190_v1  ;;  %3495 = vmatpush.bf16.msra.mxu0 %v2806_v12  ;;  %v2222_v34 = vcvt.s32.f32 %v1198_v30  ;;  %v902_v35 = vunpack.c.2.s8 %v510_v26 }
 0x10a   :  { %v2942_v22 = vpack.c.bf16 %v2094_v21, %v2086_v59  ;;  %v910_v25 = vunpack.c.3.s8 %v510_v26  ;;  %v1798_v51 = vcvt.s32.f32 %v774_v15  ;;  %v1806_v52 = vcvt.s32.f32 %v782_v61 }
 0x10b   :  { %3508 = vmatpush.bf16.msra.mxu1 %v2870_v8  ;;  %v1046_v16 = vunpack.c.0.s8 %v550_v2  ;;  %v1054_v23 = vunpack.c.1.s8 %v550_v2  ;;  %v3006_v28 = vpack.c.bf16 %v2222_v34, %v2214_v32  ;;  %v1926_v38 = vcvt.s32.f32 %v902_v35 }
 0x10c   :  { %3520 = vmatpush.bf16.msra.mxu2 %v2942_v22  ;;  %v1934_v41 = vcvt.s32.f32 %v910_v25  ;;  %v1174_v42 = vunpack.c.0.s8 %v582_v24  ;;  %v2798_v48 = vpack.c.bf16 %v1806_v52, %v1798_v51  ;;  %v1182_v49 = vunpack.c.1.s8 %v582_v24  ;;  %v622_v51 = vld [vmem:[#allocation8 + $0x4d0] sm:$0xff] }
 0x10d   :  { %v2070_v40 = vcvt.s32.f32 %v1046_v16  ;;  %v2078_v47 = vcvt.s32.f32 %v1054_v23  ;;  %3533 = vmatpush.bf16.msra.mxu3 %v3006_v28  ;;  %v758_v20 = vunpack.c.0.s8 %v478_v56  ;;  %v766_v27 = vunpack.c.1.s8 %v478_v56 }
 0x10e   :  { %v2862_v60 = vpack.c.bf16 %v1934_v41, %v1926_v38  ;;  %v2198_v5 = vcvt.s32.f32 %v1174_v42  ;;  %3496 = vmatpush.bf16.msra.mxu0 %v2798_v48  ;;  %v2206_v57 = vcvt.s32.f32 %v1182_v49  ;;  %v886_v58 = vunpack.c.0.s8 %v510_v26  ;;  %v654_v38 = vld [vmem:[#allocation8 + $0x5d0] sm:$0xff] }
 0x10f   :  { %v2934_v54 = vpack.c.bf16 %v2078_v47, %v2070_v40  ;;  %v894_v31 = vunpack.c.1.s8 %v510_v26  ;;  %v1782_v6 = vcvt.s32.f32 %v758_v20  ;;  %v1790_v63 = vcvt.s32.f32 %v766_v27 }
 0x110   :  { %3509 = vmatpush.bf16.msra.mxu1 %v2862_v60  ;;  %v1030_v2 = vunpack.c.2.s8 %v542_v11  ;;  %v1038_v7 = vunpack.c.3.s8 %v542_v11  ;;  %v2998_v39 = vpack.c.bf16 %v2206_v57, %v2198_v5  ;;  %v1910_v17 = vcvt.s32.f32 %v886_v58  ;;  %v534_v5 = vld [vmem:[#allocation8 + $0x210] sm:$0xff] }
 0x111   :  { %3521 = vmatpush.bf16.msra.mxu2 %v2934_v54  ;;  %v1918_v24 = vcvt.s32.f32 %v894_v31  ;;  %v1158_v33 = vunpack.c.2.s8 %v574_v44  ;;  %v2790_v43 = vpack.c.bf16 %v1790_v63, %v1782_v6  ;;  %v1166_v55 = vunpack.c.3.s8 %v574_v44  ;;  %v566_v57 = vld [vmem:[#allocation8 + $0x310] sm:$0xff] }
 0x112   :  { %v2054_v53 = vcvt.s32.f32 %v1030_v2  ;;  %v2062_v50 = vcvt.s32.f32 %v1038_v7  ;;  %3534 = vmatpush.bf16.msra.mxu3 %v2998_v39  ;;  %v742_v56 = vunpack.c.2.s8 %v470_v29  ;;  %v750_v3 = vunpack.c.3.s8 %v470_v29 }
 0x113   :  { %v2854_v4 = vpack.c.bf16 %v1918_v24, %v1910_v17  ;;  %v2182_v46 = vcvt.s32.f32 %v1158_v33  ;;  %3497 = vmatpush.bf16.msra.mxu0 %v2790_v43  ;;  %v2190_v0 = vcvt.s32.f32 %v1166_v55  ;;  %v870_v1 = vunpack.c.2.s8 %v502_v37 }
 0x114   :  { %v2926_v13 = vpack.c.bf16 %v2062_v50, %v2054_v53  ;;  %v878_v26 = vunpack.c.3.s8 %v502_v37  ;;  %v1766_v12 = vcvt.s32.f32 %v742_v56  ;;  %v1774_v59 = vcvt.s32.f32 %v750_v3 }
 0x115   :  { %3510 = vmatpush.bf16.msra.mxu1 %v2854_v4  ;;  %v1014_v21 = vunpack.c.0.s8 %v542_v11  ;;  %v1022_v30 = vunpack.c.1.s8 %v542_v11  ;;  %v2990_v8 = vpack.c.bf16 %v2190_v0, %v2182_v46  ;;  %v1894_v32 = vcvt.s32.f32 %v870_v1 }
 0x116   :  { %3522 = vmatpush.bf16.msra.mxu2 %v2926_v13  ;;  %v1902_v15 = vcvt.s32.f32 %v878_v26  ;;  %v1142_v61 = vunpack.c.0.s8 %v574_v44  ;;  %v2782_v22 = vpack.c.bf16 %v1774_v59, %v1766_v12  ;;  %v1150_v25 = vunpack.c.1.s8 %v574_v44  ;;  %v686_v12 = vld [vmem:[#allocation8 + $0x6d0] sm:$0xff] }
 0x117   :  { %v2038_v34 = vcvt.s32.f32 %v1014_v21  ;;  %v2046_v35 = vcvt.s32.f32 %v1022_v30  ;;  %3535 = vmatpush.bf16.msra.mxu3 %v2990_v8  ;;  %v726_v23 = vunpack.c.0.s8 %v470_v29  ;;  %v734_v28 = vunpack.c.1.s8 %v470_v29 }
 0x118   :  { %v2846_v52 = vpack.c.bf16 %v1902_v15, %v1894_v32  ;;  %v2166_v16 = vcvt.s32.f32 %v1142_v61  ;;  %3498 = vmatpush.bf16.msra.mxu0 %v2782_v22  ;;  %v2174_v42 = vcvt.s32.f32 %v1150_v25  ;;  %v854_v48 = vunpack.c.0.s8 %v502_v37  ;;  %v718_v32 = vld [vmem:[#allocation8 + $0x7d0] sm:$0xff] }
 0x119   :  { %v2918_v41 = vpack.c.bf16 %v2046_v35, %v2038_v34  ;;  %v862_v40 = vunpack.c.1.s8 %v502_v37  ;;  %v1750_v47 = vcvt.s32.f32 %v726_v23  ;;  %v1758_v49 = vcvt.s32.f32 %v734_v28 }
 0x11a   :  { %3511 = vmatpush.bf16.msra.mxu1 %v2846_v52  ;;  %v1350_v11 = vunpack.c.2.s8 %v622_v51  ;;  %v1358_v60 = vunpack.c.3.s8 %v622_v51  ;;  %v2982_v20 = vpack.c.bf16 %v2174_v42, %v2166_v16  ;;  %v1878_v27 = vcvt.s32.f32 %v854_v48  ;;  %v614_v16 = vld [vmem:[#allocation8 + $0x490] sm:$0xff] }
 0x11b   :  { %3523 = vmatpush.bf16.msra.mxu2 %v2918_v41  ;;  %v1886_v44 = vcvt.s32.f32 %v862_v40  ;;  %v1478_v54 = vunpack.c.2.s8 %v654_v38  ;;  %v2774_v58 = vpack.c.bf16 %v1758_v49, %v1750_v47  ;;  %v1486_v63 = vunpack.c.3.s8 %v654_v38  ;;  %v646_v42 = vld [vmem:[#allocation8 + $0x590] sm:$0xff] }
 0x11c   :  { %v2374_v31 = vcvt.s32.f32 %v1350_v11  ;;  %v2382_v6 = vcvt.s32.f32 %v1358_v60  ;;  %3536 = vmatpush.bf16.msra.mxu3 %v2982_v20  ;;  %v998_v29 = vunpack.c.2.s8 %v534_v5  ;;  %v1006_v39 = vunpack.c.3.s8 %v534_v5 }
 0x11d   :  { %v2838_v2 = vpack.c.bf16 %v1886_v44, %v1878_v27  ;;  %v2502_v7 = vcvt.s32.f32 %v1478_v54  ;;  %3499 = vmatpush.bf16.msra.mxu0 %v2774_v58  ;;  %v2510_v24 = vcvt.s32.f32 %v1486_v63  ;;  %v1126_v33 = vunpack.c.2.s8 %v566_v57 }
 0x11e   :  { %v3086_v17 = vpack.c.bf16 %v2382_v6, %v2374_v31  ;;  %v1134_v37 = vunpack.c.3.s8 %v566_v57  ;;  %v2022_v43 = vcvt.s32.f32 %v998_v29  ;;  %v2030_v53 = vcvt.s32.f32 %v1006_v39 }
 0x11f   :  { %3512 = vmatpush.bf16.msra.mxu1 %v2838_v2  ;;  %v1334_v50 = vunpack.c.0.s8 %v622_v51  ;;  %v1342_v55 = vunpack.c.1.s8 %v622_v51  ;;  %v3150_v4 = vpack.c.bf16 %v2510_v24, %v2502_v7  ;;  %v2150_v46 = vcvt.s32.f32 %v1126_v33 }
 0x120   :  { %v2158_v56 = vcvt.s32.f32 %v1134_v37  ;;  %v1462_v3 = vunpack.c.0.s8 %v654_v38  ;;  %v2910_v13 = vpack.c.bf16 %v2030_v53, %v2022_v43  ;;  %3500 = vmatmul.bf16.vlgmr.msra.gmra.mxu0 %v5755_v62  ;;  %v1470_v26 = vunpack.c.1.s8 %v654_v38  ;;  %v678_v43 = vld [vmem:[#allocation8 + $0x690] sm:$0xff] }
 0x121   :  { %3544 = vmatpush.bf16.msrb.mxu0 %v3086_v17  ;;  %v2358_v0 = vcvt.s32.f32 %v1334_v50  ;;  %v2366_v1 = vcvt.s32.f32 %v1342_v55  ;;  %v982_v30 = vunpack.c.0.s8 %v534_v5  ;;  %v990_v8 = vunpack.c.1.s8 %v534_v5 }
 0x122   :  { %v2974_v59 = vpack.c.bf16 %v2158_v56, %v2150_v46  ;;  %v2486_v21 = vcvt.s32.f32 %v1462_v3  ;;  %3524 = vmatpush.bf16.msra.mxu2 %v2910_v13  ;;  %3513 = vmatmul.bf16.vlgmr.msra.gmra.mxu1 %v5757_v14  ;;  %v2494_v61 = vcvt.s32.f32 %v1470_v26  ;;  %v1110_v22 = vunpack.c.0.s8 %v566_v57  ;;  %v710_v46 = vld [vmem:[#allocation8 + $0x790] sm:$0xff] }
 0x123   :  { %3557 = vmatpush.bf16.msrb.mxu1 %v3150_v4  ;;  %v3078_v15 = vpack.c.bf16 %v2366_v1, %v2358_v0  ;;  %v1118_v34 = vunpack.c.1.s8 %v566_v57  ;;  %v2006_v35 = vcvt.s32.f32 %v982_v30  ;;  %v2014_v25 = vcvt.s32.f32 %v990_v8 }
 0x124   :  { %3537 = vmatpush.bf16.msra.mxu3 %v2974_v59  ;;  %v1606_v51 = vunpack.c.2.s8 %v686_v12  ;;  %v1614_v52 = vunpack.c.3.s8 %v686_v12  ;;  %v3142_v23 = vpack.c.bf16 %v2494_v61, %v2486_v21  ;;  %v2134_v28 = vcvt.s32.f32 %v1110_v22  ;;  %v606_v21 = vld [vmem:[#allocation8 + $0x450] sm:$0xff] }
 0x125   :  { %3545 = vmatpush.bf16.msrb.mxu0 %v3078_v15  ;;  %v2142_v38 = vcvt.s32.f32 %v1118_v34  ;;  %v1734_v41 = vunpack.c.2.s8 %v718_v32  ;;  %v2902_v48 = vpack.c.bf16 %v2014_v25, %v2006_v35  ;;  %v1742_v49 = vunpack.c.3.s8 %v718_v32  ;;  %v638_v61 = vld [vmem:[#allocation8 + $0x550] sm:$0xff] }
 0x126   :  { %v2630_v40 = vcvt.s32.f32 %v1606_v51  ;;  %v2638_v47 = vcvt.s32.f32 %v1614_v52  ;;  %v1318_v5 = vunpack.c.2.s8 %v614_v16  ;;  %v1326_v20 = vunpack.c.3.s8 %v614_v16 }
 0x127   :  { %3558 = vmatpush.bf16.msrb.mxu1 %v3142_v23  ;;  %v2966_v11 = vpack.c.bf16 %v2142_v38, %v2134_v28  ;;  %v2758_v60 = vcvt.s32.f32 %v1734_v41  ;;  %3525 = vmatpush.bf16.msra.mxu2 %v2902_v48  ;;  %v2766_v44 = vcvt.s32.f32 %v1742_v49  ;;  %v1446_v54 = vunpack.c.2.s8 %v646_v42 }
 0x128   :  { %v3214_v27 = vpack.c.bf16 %v2638_v47, %v2630_v40  ;;  %v1454_v57 = vunpack.c.3.s8 %v646_v42  ;;  %v2342_v58 = vcvt.s32.f32 %v1318_v5  ;;  %v2350_v31 = vcvt.s32.f32 %v1326_v20 }
 0x129   :  { %3538 = vmatpush.bf16.msra.mxu3 %v2966_v11  ;;  %v1590_v6 = vunpack.c.0.s8 %v686_v12  ;;  %v1598_v63 = vunpack.c.1.s8 %v686_v12  ;;  %v3278_v2 = vpack.c.bf16 %v2766_v44, %v2758_v60  ;;  %v2470_v7 = vcvt.s32.f32 %v1446_v54 }
 0x12a   :  { %v2478_v29 = vcvt.s32.f32 %v1454_v57  ;;  %v1718_v39 = vunpack.c.0.s8 %v718_v32  ;;  %3526 = vmatmul.bf16.vlgmr.msra.gmra.mxu2 %v5800_v9  ;;  %v3070_v17 = vpack.c.bf16 %v2350_v31, %v2342_v58  ;;  %v1726_v37 = vunpack.c.1.s8 %v718_v32  ;;  %v670_v58 = vld [vmem:[#allocation8 + $0x650] sm:$0xff] }
 0x12b   :  { %3570 = vmatpush.bf16.msrb.mxu2 %v3214_v27  ;;  %v2614_v24 = vcvt.s32.f32 %v1590_v6  ;;  %v2622_v33 = vcvt.s32.f32 %v1598_v63  ;;  %v1302_v55 = vunpack.c.0.s8 %v614_v16  ;;  %v1310_v4 = vunpack.c.1.s8 %v614_v16 }
 0x12c   :  { %v3134_v53 = vpack.c.bf16 %v2478_v29, %v2470_v7  ;;  %v2742_v50 = vcvt.s32.f32 %v1718_v39  ;;  %3539 = vmatmul.bf16.vlgmr.msra.gmra.mxu3 %v5802_v10  ;;  %3546 = vmatpush.bf16.msrb.mxu0 %v3070_v17  ;;  %v2750_v3 = vcvt.s32.f32 %v1726_v37  ;;  %v1430_v13 = vunpack.c.0.s8 %v646_v42  ;;  %v702_v7 = vld [vmem:[#allocation8 + $0x750] sm:$0xff] }
 0x12d   :  { %3583 = vmatpush.bf16.msrb.mxu3 %v3278_v2  ;;  %v3206_v56 = vpack.c.bf16 %v2622_v33, %v2614_v24  ;;  %v1438_v0 = vunpack.c.1.s8 %v646_v42  ;;  %v2326_v1 = vcvt.s32.f32 %v1302_v55  ;;  %v2334_v26 = vcvt.s32.f32 %v1310_v4  ;;  %v598_v4 = vld [vmem:[#allocation8 + $0x410] sm:$0xff] }
 0x12e   :  { %3559 = vmatpush.bf16.msrb.mxu1 %v3134_v53  ;;  %v1574_v12 = vunpack.c.2.s8 %v678_v43  ;;  %v1582_v59 = vunpack.c.3.s8 %v678_v43  ;;  %v3270_v30 = vpack.c.bf16 %v2750_v3, %v2742_v50  ;;  %v2454_v8 = vcvt.s32.f32 %v1430_v13 }
 0x12f   :  { %3571 = vmatpush.bf16.msrb.mxu2 %v3206_v56  ;;  %v2462_v32 = vcvt.s32.f32 %v1438_v0  ;;  %v1702_v15 = vunpack.c.2.s8 %v710_v46  ;;  %v3062_v22 = vpack.c.bf16 %v2334_v26, %v2326_v1  ;;  %v1710_v25 = vunpack.c.3.s8 %v710_v46  ;;  %v5884_v29 = vpop.f32.mrf.mxu0  ;;  %v5886_v39 = vpop.f32.mrf.mxu1  ;;  %v630_v0 = vld [vmem:[#allocation8 + $0x510] sm:$0xff] }
 0x130   :  { %v2598_v34 = vcvt.s32.f32 %v1574_v12  ;;  %v2606_v35 = vcvt.s32.f32 %v1582_v59  ;;  %v1286_v16 = vunpack.c.2.s8 %v606_v21  ;;  %v1294_v23 = vunpack.c.3.s8 %v606_v21 }
 0x131   :  { %3584 = vmatpush.bf16.msrb.mxu3 %v3270_v30  ;;  %v3126_v51 = vpack.c.bf16 %v2462_v32, %v2454_v8  ;;  %v2726_v52 = vcvt.s32.f32 %v1702_v15  ;;  %3547 = vmatpush.bf16.msrb.mxu0 %v3062_v22  ;;  %v2734_v38 = vcvt.s32.f32 %v1710_v25  ;;  %v1414_v41 = vunpack.c.2.s8 %v638_v61 }
 0x132   :  { %v3198_v28 = vpack.c.bf16 %v2606_v35, %v2598_v34  ;;  %v1422_v42 = vunpack.c.3.s8 %v638_v61  ;;  %v2310_v48 = vcvt.s32.f32 %v1286_v16  ;;  %v2318_v40 = vcvt.s32.f32 %v1294_v23 }
 0x133   :  { %3560 = vmatpush.bf16.msrb.mxu1 %v3126_v51  ;;  %v1558_v47 = vunpack.c.0.s8 %v678_v43  ;;  %v1566_v49 = vunpack.c.1.s8 %v678_v43  ;;  %v3262_v11 = vpack.c.bf16 %v2734_v38, %v2726_v52  ;;  %v2438_v60 = vcvt.s32.f32 %v1414_v41 }
 0x134   :  { %3572 = vmatpush.bf16.msrb.mxu2 %v3198_v28  ;;  %v2446_v5 = vcvt.s32.f32 %v1422_v42  ;;  %v1686_v20 = vunpack.c.0.s8 %v710_v46  ;;  %v3054_v27 = vpack.c.bf16 %v2318_v40, %v2310_v48  ;;  %v1694_v57 = vunpack.c.1.s8 %v710_v46 }
 0x135   :  { %v2582_v44 = vcvt.s32.f32 %v1558_v47  ;;  %v2590_v54 = vcvt.s32.f32 %v1566_v49  ;;  %3585 = vmatpush.bf16.msrb.mxu3 %v3262_v11  ;;  %v1270_v63 = vunpack.c.0.s8 %v606_v21  ;;  %v1278_v2 = vunpack.c.1.s8 %v606_v21  ;;  %v495_v11 = vld [vmem:[#allocation8 + $0xd8] sm:$0xff] }
 0x136   :  { %v3118_v31 = vpack.c.bf16 %v2446_v5, %v2438_v60  ;;  %v2710_v6 = vcvt.s32.f32 %v1686_v20  ;;  %3548 = vmatpush.bf16.msrb.mxu0 %v3054_v27  ;;  %v2718_v24 = vcvt.s32.f32 %v1694_v57  ;;  %v1398_v33 = vunpack.c.0.s8 %v638_v61 }
 0x137   :  { %v3190_v17 = vpack.c.bf16 %v2590_v54, %v2582_v44  ;;  %v1406_v37 = vunpack.c.1.s8 %v638_v61  ;;  %v2294_v43 = vcvt.s32.f32 %v1270_v63  ;;  %v2302_v53 = vcvt.s32.f32 %v1278_v2  ;;  %v3295_v41 = vpop.f32.mrf.mxu0  ;;  %v3308_v42 = vpop.f32.mrf.mxu1  ;;  %v527_v44 = vld [vmem:[#allocation8 + $0x1d8] sm:$0xff] }
 0x138   :  { %3561 = vmatpush.bf16.msrb.mxu1 %v3118_v31  ;;  %v1542_v50 = vunpack.c.2.s8 %v670_v58  ;;  %v1550_v55 = vunpack.c.3.s8 %v670_v58  ;;  %v3254_v46 = vpack.c.bf16 %v2718_v24, %v2710_v6  ;;  %v2422_v56 = vcvt.s32.f32 %v1398_v33  ;;  %v662_v24 = vld [vmem:[#allocation8 + $0x610] sm:$0xff] }
 0x139   :  { %3573 = vmatpush.bf16.msrb.mxu2 %v3190_v17  ;;  %v2430_v3 = vcvt.s32.f32 %v1406_v37  ;;  %v1670_v13 = vunpack.c.2.s8 %v702_v7  ;;  %v3046_v1 = vpack.c.bf16 %v2302_v53, %v2294_v43  ;;  %v1678_v59 = vunpack.c.3.s8 %v702_v7  ;;  %v694_v53 = vld [vmem:[#allocation8 + $0x710] sm:$0xff] }
 0x13a   :  { %v2566_v26 = vcvt.s32.f32 %v1542_v50  ;;  %v2574_v12 = vcvt.s32.f32 %v1550_v55  ;;  %3586 = vmatpush.bf16.msrb.mxu3 %v3254_v46  ;;  %v1254_v8 = vunpack.c.2.s8 %v598_v4  ;;  %v1262_v32 = vunpack.c.3.s8 %v598_v4 }
 0x13b   :  { %v3110_v21 = vpack.c.bf16 %v2430_v3, %v2422_v56  ;;  %v2694_v30 = vcvt.s32.f32 %v1670_v13  ;;  %3549 = vmatpush.bf16.msrb.mxu0 %v3046_v1  ;;  %v2702_v61 = vcvt.s32.f32 %v1678_v59  ;;  %v1382_v22 = vunpack.c.2.s8 %v630_v0 }
 0x13c   :  { %v3182_v15 = vpack.c.bf16 %v2574_v12, %v2566_v26  ;;  %v1390_v34 = vunpack.c.3.s8 %v630_v0  ;;  %v2278_v35 = vcvt.s32.f32 %v1254_v8  ;;  %v2286_v25 = vcvt.s32.f32 %v1262_v32 }
 0x13d   :  { %3562 = vmatpush.bf16.msrb.mxu1 %v3110_v21  ;;  %v1526_v51 = vunpack.c.0.s8 %v670_v58  ;;  %v1534_v52 = vunpack.c.1.s8 %v670_v58  ;;  %v3246_v16 = vpack.c.bf16 %v2702_v61, %v2694_v30  ;;  %v2406_v23 = vcvt.s32.f32 %v1382_v22  ;;  %v5888_v1 = vpop.f32.mrf.mxu2  ;;  %v5890_v26 = vpop.f32.mrf.mxu3 }
 0x13e   :  { %3574 = vmatpush.bf16.msrb.mxu2 %v3182_v15  ;;  %v2414_v28 = vcvt.s32.f32 %v1390_v34  ;;  %v1654_v38 = vunpack.c.0.s8 %v702_v7  ;;  %v3038_v48 = vpack.c.bf16 %v2286_v25, %v2278_v35  ;;  %v1662_v49 = vunpack.c.1.s8 %v702_v7 }
 0x13f   :  { %v2550_v40 = vcvt.s32.f32 %v1526_v51  ;;  %v2558_v47 = vcvt.s32.f32 %v1534_v52  ;;  %3587 = vmatpush.bf16.msrb.mxu3 %v3246_v16  ;;  %v1238_v20 = vunpack.c.0.s8 %v598_v4  ;;  %v1246_v27 = vunpack.c.1.s8 %v598_v4 }
 0x140   :  { %v3102_v60 = vpack.c.bf16 %v2414_v28, %v2406_v23  ;;  %v2678_v5 = vcvt.s32.f32 %v1654_v38  ;;  %3550 = vmatpush.bf16.msrb.mxu0 %v3038_v48  ;;  %v2686_v57 = vcvt.s32.f32 %v1662_v49  ;;  %v1366_v58 = vunpack.c.0.s8 %v630_v0  ;;  %v5893_v28 = vld [vmem:[#allocation8 + $0x2d8] sm:$0xff] }
 0x141   :  { %v3174_v54 = vpack.c.bf16 %v2558_v47, %v2550_v40  ;;  %v1374_v31 = vunpack.c.1.s8 %v630_v0  ;;  %v2262_v6 = vcvt.s32.f32 %v1238_v20  ;;  %v2270_v63 = vcvt.s32.f32 %v1246_v27  ;;  %v5895_v40 = vld [vmem:[#allocation8 + $0x3d8] sm:$0xff]  ;;  %v5900_v20 = vpop.f32.mrf.mxu1 }
 0x142   :  { %3563 = vmatpush.bf16.msrb.mxu1 %v3102_v60  ;;  %v839_v2 = vunpack.c.2.s8 %v495_v11  ;;  %v847_v17 = vunpack.c.3.s8 %v495_v11  ;;  %v3238_v7 = vpack.c.bf16 %v2686_v57, %v2678_v5  ;;  %v2390_v33 = vcvt.s32.f32 %v1366_v58  ;;  %v5898_v5 = vpop.f32.mrf.mxu0  ;;  %v487_v58 = vld [vmem:[#allocation8 + $0x98] sm:$0xff] }
 0x143   :  { %3575 = vmatpush.bf16.msrb.mxu2 %v3174_v54  ;;  %v2398_v37 = vcvt.s32.f32 %v1374_v31  ;;  %v967_v43 = vunpack.c.2.s8 %v527_v44  ;;  %v3030_v50 = vpack.c.bf16 %v2270_v63, %v2262_v6  ;;  %v975_v46 = vunpack.c.3.s8 %v527_v44 }
 0x144   :  { %v1863_v55 = vcvt.s32.f32 %v839_v2  ;;  %v1871_v4 = vcvt.s32.f32 %v847_v17  ;;  %3588 = vmatpush.bf16.msrb.mxu3 %v3238_v7  ;;  %v1510_v13 = vunpack.c.2.s8 %v662_v24  ;;  %v1518_v0 = vunpack.c.3.s8 %v662_v24  ;;  %v519_v17 = vld [vmem:[#allocation8 + $0x198] sm:$0xff] }
 0x145   :  { %v3094_v56 = vpack.c.bf16 %v2398_v37, %v2390_v33  ;;  %v1991_v3 = vcvt.s32.f32 %v967_v43  ;;  %3551 = vmatpush.bf16.msrb.mxu0 %v3030_v50  ;;  %v1999_v59 = vcvt.s32.f32 %v975_v46  ;;  %v1638_v21 = vunpack.c.2.s8 %v694_v53  ;;  %v3334_v7 = vpop.f32.mrf.mxu3 }
 0x146   :  { %v2831_v12 = vpack.c.bf16 %v1871_v4, %v1863_v55  ;;  %v1646_v30 = vunpack.c.3.s8 %v694_v53  ;;  %v2534_v8 = vcvt.s32.f32 %v1510_v13  ;;  %v2542_v32 = vcvt.s32.f32 %v1518_v0 }
 0x147   :  { %3564 = vmatpush.bf16.msrb.mxu1 %v3094_v56  ;;  %v823_v15 = vunpack.c.0.s8 %v495_v11  ;;  %v831_v61 = vunpack.c.1.s8 %v495_v11  ;;  %v2895_v22 = vpack.c.bf16 %v1999_v59, %v1991_v3  ;;  %v2662_v34 = vcvt.s32.f32 %v1638_v21 }
 0x148   :  { %v2670_v35 = vcvt.s32.f32 %v1646_v30  ;;  %v951_v25 = vunpack.c.0.s8 %v527_v44  ;;  %v3166_v51 = vpack.c.bf16 %v2542_v32, %v2534_v8  ;;  %3552 = vmatmul.bf16.vlgmr.msrb.gmra.mxu0 %v5854_v18  ;;  %v959_v23 = vunpack.c.1.s8 %v527_v44 }
 0x149   :  { %3596 = vmatpush.bf16.msra.mxu0 %v2831_v12  ;;  %v1847_v52 = vcvt.s32.f32 %v823_v15  ;;  %v1855_v16 = vcvt.s32.f32 %v831_v61  ;;  %v1494_v42 = vunpack.c.0.s8 %v662_v24  ;;  %v1502_v48 = vunpack.c.1.s8 %v662_v24  ;;  %v3321_v24 = vpop.f32.mrf.mxu2 }
 0x14a   :  { %v3230_v38 = vpack.c.bf16 %v2670_v35, %v2662_v34  ;;  %v1975_v41 = vcvt.s32.f32 %v951_v25  ;;  %3576 = vmatpush.bf16.msrb.mxu2 %v3166_v51  ;;  %3565 = vmatmul.bf16.vlgmr.msrb.gmra.mxu1 %v5856_v36  ;;  %v1983_v49 = vcvt.s32.f32 %v959_v23  ;;  %v1622_v11 = vunpack.c.0.s8 %v694_v53  ;;  %v551_v51 = vld [vmem:[#allocation8 + $0x298] sm:$0xff] }
 0x14b   :  { %3609 = vmatpush.bf16.msra.mxu1 %v2895_v22  ;;  %v2823_v47 = vpack.c.bf16 %v1855_v16, %v1847_v52  ;;  %v1630_v60 = vunpack.c.1.s8 %v694_v53  ;;  %v2518_v27 = vcvt.s32.f32 %v1494_v42  ;;  %v2526_v44 = vcvt.s32.f32 %v1502_v48  ;;  %v3347_v52 = vpop.f32.mrf.mxu0 }
 0x14c   :  { %3589 = vmatpush.bf16.msrb.mxu3 %v3230_v38  ;;  %v1095_v54 = vunpack.c.2.s8 %v5893_v28  ;;  %v1103_v57 = vunpack.c.3.s8 %v5893_v28  ;;  %v2887_v31 = vpack.c.bf16 %v1983_v49, %v1975_v41  ;;  %v2646_v6 = vcvt.s32.f32 %v1622_v11 }
 0x14d   :  { %3597 = vmatpush.bf16.msra.mxu0 %v2823_v47  ;;  %v2654_v63 = vcvt.s32.f32 %v1630_v60  ;;  %v1223_v2 = vunpack.c.2.s8 %v5895_v40  ;;  %v3158_v33 = vpack.c.bf16 %v2526_v44, %v2518_v27  ;;  %v1231_v53 = vunpack.c.3.s8 %v5895_v40  ;;  %v583_v47 = vld [vmem:[#allocation8 + $0x398] sm:$0xff] }
 0x14e   :  { %v2119_v37 = vcvt.s32.f32 %v1095_v54  ;;  %v2127_v43 = vcvt.s32.f32 %v1103_v57  ;;  %v807_v4 = vunpack.c.2.s8 %v487_v58  ;;  %v815_v46 = vunpack.c.3.s8 %v487_v58  ;;  %v479_v27 = vld [vmem:[#allocation8 + $0x58] sm:$0xff] }
 0x14f   :  { %3610 = vmatpush.bf16.msra.mxu1 %v2887_v31  ;;  %v3222_v50 = vpack.c.bf16 %v2654_v63, %v2646_v6  ;;  %v2247_v55 = vcvt.s32.f32 %v1223_v2  ;;  %3577 = vmatpush.bf16.msrb.mxu2 %v3158_v33  ;;  %v2255_v3 = vcvt.s32.f32 %v1231_v53  ;;  %v935_v13 = vunpack.c.2.s8 %v519_v17  ;;  %v511_v6 = vld [vmem:[#allocation8 + $0x158] sm:$0xff] }
 0x150   :  { %v2959_v56 = vpack.c.bf16 %v2127_v43, %v2119_v37  ;;  %v943_v0 = vunpack.c.3.s8 %v519_v17  ;;  %v1831_v12 = vcvt.s32.f32 %v807_v4  ;;  %v1839_v59 = vcvt.s32.f32 %v815_v46 }
 0x151   :  { %3590 = vmatpush.bf16.msrb.mxu3 %v3222_v50  ;;  %v5908_v21 = vadd.f32 %v5886_v39, %v5884_v29  ;;  %v1079_v30 = vunpack.c.0.s8 %v5893_v28  ;;  %v3023_v8 = vpack.c.bf16 %v2255_v3, %v2247_v55  ;;  %v1959_v32 = vcvt.s32.f32 %v935_v13  ;;  %v3360_v29 = vpop.f32.mrf.mxu1 }
 0x152   :  { %v1967_v15 = vcvt.s32.f32 %v943_v0  ;;  %v1087_v61 = vunpack.c.1.s8 %v5893_v28  ;;  %3578 = vmatmul.bf16.vlgmr.msrb.gmra.mxu2 %v5864_v45  ;;  %v2815_v22 = vpack.c.bf16 %v1839_v59, %v1831_v12  ;;  %v1207_v35 = vunpack.c.0.s8 %v5895_v40  ;;  %v543_v29 = vld [vmem:[#allocation8 + $0x258] sm:$0xff] }
 0x153   :  { %3622 = vmatpush.bf16.msra.mxu2 %v2959_v56  ;;  %v2103_v34 = vcvt.s32.f32 %v1079_v30  ;;  %v1215_v25 = vunpack.c.1.s8 %v5895_v40  ;;  %v791_v23 = vunpack.c.0.s8 %v487_v58  ;;  %v799_v38 = vunpack.c.1.s8 %v487_v58 }
 0x154   :  { %v2879_v39 = vpack.c.bf16 %v1967_v15, %v1959_v32  ;;  %v2111_v16 = vcvt.s32.f32 %v1087_v61  ;;  %3591 = vmatmul.bf16.vlgmr.msrb.gmra.mxu3 %v5866_v19  ;;  %3598 = vmatpush.bf16.msra.mxu0 %v2815_v22  ;;  %v2231_v28 = vcvt.s32.f32 %v1207_v35  ;;  %v919_v42 = vunpack.c.0.s8 %v519_v17  ;;  %v5916_v61 = vpop.f32.mrf.mxu2  ;;  %v5918_v22 = vpop.f32.mrf.mxu3 }
 0x155   :  { %3635 = vmatpush.bf16.msra.mxu3 %v3023_v8  ;;  %v2239_v41 = vcvt.s32.f32 %v1215_v25  ;;  %v927_v48 = vunpack.c.1.s8 %v519_v17  ;;  %v1815_v11 = vcvt.s32.f32 %v791_v23  ;;  %v1823_v40 = vcvt.s32.f32 %v799_v38  ;;  %v575_v38 = vld [vmem:[#allocation8 + $0x358] sm:$0xff] }
 0x156   :  { %3611 = vmatpush.bf16.msra.mxu1 %v2879_v39  ;;  %v2951_v49 = vpack.c.bf16 %v2111_v16, %v2103_v34  ;;  %v1063_v60 = vunpack.c.2.s8 %v551_v51  ;;  %v1943_v54 = vcvt.s32.f32 %v919_v42  ;;  %v1071_v31 = vunpack.c.3.s8 %v551_v51 }
 0x157   :  { %v3015_v44 = vpack.c.bf16 %v2239_v41, %v2231_v28  ;;  %v1951_v57 = vcvt.s32.f32 %v927_v48  ;;  %v2807_v58 = vpack.c.bf16 %v1823_v40, %v1815_v11  ;;  %v1191_v2 = vunpack.c.2.s8 %v583_v47 }
 0x158   :  { %3623 = vmatpush.bf16.msra.mxu2 %v2951_v49  ;;  %v2087_v63 = vcvt.s32.f32 %v1063_v60  ;;  %v1199_v24 = vunpack.c.3.s8 %v583_v47  ;;  %v2095_v17 = vcvt.s32.f32 %v1071_v31  ;;  %v775_v33 = vunpack.c.2.s8 %v479_v27 }
 0x159   :  { %3636 = vmatpush.bf16.msra.mxu3 %v3015_v44  ;;  %v2871_v7 = vpack.c.bf16 %v1951_v57, %v1943_v54  ;;  %v783_v37 = vunpack.c.3.s8 %v479_v27  ;;  %3599 = vmatpush.bf16.msra.mxu0 %v2807_v58  ;;  %v2215_v43 = vcvt.s32.f32 %v1191_v2  ;;  %v903_v50 = vunpack.c.2.s8 %v511_v6 }
 0x15a   :  { %v2223_v53 = vcvt.s32.f32 %v1199_v24  ;;  %v911_v55 = vunpack.c.3.s8 %v511_v6  ;;  %v2943_v4 = vpack.c.bf16 %v2095_v17, %v2087_v63  ;;  %v1799_v46 = vcvt.s32.f32 %v775_v33  ;;  %v5923_v24 = vpop.f32.mrf.mxu0 }
 0x15b   :  { %3612 = vmatpush.bf16.msra.mxu1 %v2871_v7  ;;  %v1807_v56 = vcvt.s32.f32 %v783_v37  ;;  %v1047_v3 = vunpack.c.0.s8 %v551_v51  ;;  %v1927_v0 = vcvt.s32.f32 %v903_v50  ;;  %v1055_v59 = vunpack.c.1.s8 %v551_v51 }
 0x15c   :  { %v3007_v13 = vpack.c.bf16 %v2223_v53, %v2215_v43  ;;  %v1935_v12 = vcvt.s32.f32 %v911_v55  ;;  %3624 = vmatpush.bf16.msra.mxu2 %v2943_v4  ;;  %v1175_v32 = vunpack.c.0.s8 %v583_v47  ;;  %v1183_v15 = vunpack.c.1.s8 %v583_v47  ;;  %v471_v47 = vld [vmem:[#allocation8 + $0x18] sm:$0xff]  ;;  %v3373_v50 = vpop.f32.mrf.mxu2  ;;  %v3386_v55 = vpop.f32.mrf.mxu3 }
 0x15d   :  { %v2799_v30 = vpack.c.bf16 %v1807_v56, %v1799_v46  ;;  %v2071_v8 = vcvt.s32.f32 %v1047_v3  ;;  %v2079_v35 = vcvt.s32.f32 %v1055_v59  ;;  %v759_v25 = vunpack.c.0.s8 %v479_v27 }
 0x15e   :  { %3637 = vmatpush.bf16.msra.mxu3 %v3007_v13  ;;  %v2863_v34 = vpack.c.bf16 %v1935_v12, %v1927_v0  ;;  %v767_v52 = vunpack.c.1.s8 %v479_v27  ;;  %v2199_v39 = vcvt.s32.f32 %v1175_v32  ;;  %v2207_v16 = vcvt.s32.f32 %v1183_v15  ;;  %v503_v27 = vld [vmem:[#allocation8 + $0x118] sm:$0xff] }
 0x15f   :  { %3600 = vmatpush.bf16.msra.mxu0 %v2799_v30  ;;  %v887_v23 = vunpack.c.0.s8 %v511_v6  ;;  %v895_v51 = vunpack.c.1.s8 %v511_v6  ;;  %v2935_v28 = vpack.c.bf16 %v2079_v35, %v2071_v8  ;;  %v1783_v41 = vcvt.s32.f32 %v759_v25 }
 0x160   :  { %3613 = vmatpush.bf16.msra.mxu1 %v2863_v34  ;;  %v1791_v42 = vcvt.s32.f32 %v767_v52  ;;  %v3320_v48 = vadd.f32 %v5888_v1, %v5908_v21  ;;  %v2999_v49 = vpack.c.bf16 %v2207_v16, %v2199_v39  ;;  %v1031_v60 = vunpack.c.2.s8 %v543_v29  ;;  %v5925_v1 = vpop.f32.mrf.mxu1  ;;  %v623_v34 = vld [vmem:[#allocation8 + $0x4d8] sm:$0xff] }
 0x161   :  { %v1911_v11 = vcvt.s32.f32 %v887_v23  ;;  %v1919_v40 = vcvt.s32.f32 %v895_v51  ;;  %3625 = vmatpush.bf16.msra.mxu2 %v2935_v28  ;;  %v1039_v57 = vunpack.c.3.s8 %v543_v29  ;;  %v1159_v31 = vunpack.c.2.s8 %v575_v38  ;;  %v655_v28 = vld [vmem:[#allocation8 + $0x5d8] sm:$0xff] }
 0x162   :  { %v2791_v44 = vpack.c.bf16 %v1791_v42, %v1783_v41  ;;  %v3333_v54 = vadd.f32 %v5890_v26, %v3320_v48  ;;  %3638 = vmatpush.bf16.msra.mxu3 %v2999_v49  ;;  %v2055_v58 = vcvt.s32.f32 %v1031_v60  ;;  %v1167_v63 = vunpack.c.3.s8 %v575_v38  ;;  %v535_v48 = vld [vmem:[#allocation8 + $0x218] sm:$0xff]  ;;  %v3399_v49 = vpop.f32.mrf.mxu0 }
 0x163   :  { %v2855_v6 = vpack.c.bf16 %v1919_v40, %v1911_v11  ;;  %v743_v2 = vunpack.c.2.s8 %v471_v47  ;;  %v2063_v21 = vcvt.s32.f32 %v1039_v57  ;;  %v2183_v7 = vcvt.s32.f32 %v1159_v31 }
 0x164   :  { %3601 = vmatpush.bf16.msra.mxu0 %v2791_v44  ;;  %v751_v17 = vunpack.c.3.s8 %v471_v47  ;;  %v871_v33 = vunpack.c.2.s8 %v503_v27  ;;  %v2191_v37 = vcvt.s32.f32 %v1167_v63  ;;  %v879_v26 = vunpack.c.3.s8 %v503_v27 }
 0x165   :  { %3614 = vmatpush.bf16.msra.mxu1 %v2855_v6  ;;  %v1767_v43 = vcvt.s32.f32 %v743_v2  ;;  %v3346_v53 = vadd.f32 %v5898_v5, %v3333_v54  ;;  %v2927_v4 = vpack.c.bf16 %v2063_v21, %v2055_v58  ;;  %v1015_v3 = vunpack.c.0.s8 %v543_v29  ;;  %v567_v54 = vld [vmem:[#allocation8 + $0x318] sm:$0xff] }
 0x166   :  { %v1775_v46 = vcvt.s32.f32 %v751_v17  ;;  %v1895_v56 = vcvt.s32.f32 %v871_v33  ;;  %v2991_v13 = vpack.c.bf16 %v2191_v37, %v2183_v7  ;;  %v1903_v0 = vcvt.s32.f32 %v879_v26 }
 0x167   :  { %v5929_v12 = vadd.f32 %v5900_v20, %v3346_v53  ;;  %v1023_v59 = vunpack.c.1.s8 %v543_v29  ;;  %3626 = vmatpush.bf16.msra.mxu2 %v2927_v4  ;;  %v2039_v8 = vcvt.s32.f32 %v1015_v3  ;;  %v1143_v32 = vunpack.c.0.s8 %v575_v38 }
 0x168   :  { %v2783_v30 = vpack.c.bf16 %v1775_v46, %v1767_v43  ;;  %v1151_v15 = vunpack.c.1.s8 %v575_v38  ;;  %3639 = vmatpush.bf16.msra.mxu3 %v2991_v13  ;;  %v2847_v5 = vpack.c.bf16 %v1903_v0, %v1895_v56  ;;  %v727_v25 = vunpack.c.0.s8 %v471_v47  ;;  %v3412_v38 = vpop.f32.mrf.mxu1 }
 0x169   :  { %v2047_v35 = vcvt.s32.f32 %v1023_v59  ;;  %v735_v52 = vunpack.c.1.s8 %v471_v47  ;;  %v2167_v39 = vcvt.s32.f32 %v1143_v32  ;;  %v855_v23 = vunpack.c.0.s8 %v503_v27  ;;  %v5931_v59 = vld [vmem:[#allocation8 + $0x6d8] sm:$0xff] }
 0x16a   :  { %3602 = vmatpush.bf16.msra.mxu0 %v2783_v30  ;;  %v2175_v16 = vcvt.s32.f32 %v1151_v15  ;;  %v863_v51 = vunpack.c.1.s8 %v503_v27  ;;  %3615 = vmatpush.bf16.msra.mxu1 %v2847_v5  ;;  %v1751_v29 = vcvt.s32.f32 %v727_v25  ;;  %v1351_v42 = vunpack.c.2.s8 %v623_v34  ;;  %v5933_v30 = vpop.f32.mrf.mxu2 }
 0x16b   :  { %v2919_v20 = vpack.c.bf16 %v2047_v35, %v2039_v8  ;;  %v1759_v41 = vcvt.s32.f32 %v735_v52  ;;  %v1879_v40 = vcvt.s32.f32 %v855_v23  ;;  %v1359_v44 = vunpack.c.3.s8 %v623_v34  ;;  %v5935_v8 = vpop.f32.mrf.mxu3 }
 0x16c   :  { %v2983_v11 = vpack.c.bf16 %v2175_v16, %v2167_v39  ;;  %v1887_v60 = vcvt.s32.f32 %v863_v51  ;;  %v2375_v57 = vcvt.s32.f32 %v1351_v42  ;;  %v1479_v31 = vunpack.c.2.s8 %v655_v28  ;;  %v719_v16 = vld [vmem:[#allocation8 + $0x7d8] sm:$0xff] }
 0x16d   :  { %3627 = vmatpush.bf16.msra.mxu2 %v2919_v20  ;;  %v2775_v47 = vpack.c.bf16 %v1759_v41, %v1751_v29  ;;  %v1487_v6 = vunpack.c.3.s8 %v655_v28  ;;  %v2383_v58 = vcvt.s32.f32 %v1359_v44  ;;  %v999_v63 = vunpack.c.2.s8 %v535_v48  ;;  %v647_v44 = vld [vmem:[#allocation8 + $0x598] sm:$0xff] }
 0x16e   :  { %3640 = vmatpush.bf16.msra.mxu3 %v2983_v11  ;;  %v2839_v27 = vpack.c.bf16 %v1887_v60, %v1879_v40  ;;  %v1007_v2 = vunpack.c.3.s8 %v535_v48  ;;  %v2503_v21 = vcvt.s32.f32 %v1479_v31  ;;  %v1127_v17 = vunpack.c.2.s8 %v567_v54 }
 0x16f   :  { %3603 = vmatpush.bf16.msra.mxu0 %v2775_v47  ;;  %v2511_v7 = vcvt.s32.f32 %v1487_v6  ;;  %v1135_v33 = vunpack.c.3.s8 %v567_v54  ;;  %v3087_v37 = vpack.c.bf16 %v2383_v58, %v2375_v57  ;;  %v2023_v43 = vcvt.s32.f32 %v999_v63 }
 0x170   :  { %3616 = vmatpush.bf16.msra.mxu1 %v2839_v27  ;;  %v2031_v26 = vcvt.s32.f32 %v1007_v2  ;;  %v1335_v53 = vunpack.c.0.s8 %v623_v34  ;;  %v2151_v55 = vcvt.s32.f32 %v1127_v17  ;;  %v1343_v46 = vunpack.c.1.s8 %v623_v34  ;;  %v5943_v27 = vld [vmem:[#allocation10] sm:$0xff] }
 0x171   :  { %v3151_v50 = vpack.c.bf16 %v2511_v7, %v2503_v21  ;;  %v2159_v4 = vcvt.s32.f32 %v1135_v33  ;;  %v1463_v13 = vunpack.c.0.s8 %v655_v28  ;;  %v1471_v0 = vunpack.c.1.s8 %v655_v28 }
 0x172   :  { %v2911_v56 = vpack.c.bf16 %v2031_v26, %v2023_v43  ;;  %v2359_v3 = vcvt.s32.f32 %v1335_v53  ;;  %3604 = vmatmul.bf16.vlgmr.msra.gmra.mxu0 %v5755_v62  ;;  %v2367_v15 = vcvt.s32.f32 %v1343_v46  ;;  %v983_v5 = vunpack.c.0.s8 %v535_v48  ;;  %v3425_v33 = vpop.f32.mrf.mxu2 }
 0x173   :  { %3648 = vmatpush.bf16.msrb.mxu0 %v3087_v37  ;;  %v2975_v32 = vpack.c.bf16 %v2159_v4, %v2151_v55  ;;  %v991_v35 = vunpack.c.1.s8 %v535_v48  ;;  %3617 = vmatmul.bf16.vlgmr.msra.gmra.mxu1 %v5757_v14  ;;  %v2487_v34 = vcvt.s32.f32 %v1463_v13  ;;  %v2495_v25 = vcvt.s32.f32 %v1471_v0  ;;  %v615_v48 = vld [vmem:[#allocation8 + $0x498] sm:$0xff]  ;;  %v3438_v37 = vpop.f32.mrf.mxu3 }
 0x174   :  { %3661 = vmatpush.bf16.msrb.mxu1 %v3151_v50  ;;  %3628 = vmatpush.bf16.msra.mxu2 %v2911_v56  ;;  %v1111_v52 = vunpack.c.0.s8 %v567_v54  ;;  %v1119_v39 = vunpack.c.1.s8 %v567_v54  ;;  %v3079_v23 = vpack.c.bf16 %v2367_v15, %v2359_v3  ;;  %v2007_v51 = vcvt.s32.f32 %v983_v5  ;;  %v679_v13 = vld [vmem:[#allocation8 + $0x698] sm:$0xff] }
 0x175   :  { %3641 = vmatpush.bf16.msra.mxu3 %v2975_v32  ;;  %v2015_v28 = vcvt.s32.f32 %v991_v35  ;;  %v1607_v20 = vunpack.c.2.s8 %v5931_v59  ;;  %v3143_v29 = vpack.c.bf16 %v2495_v25, %v2487_v34  ;;  %v1615_v49 = vunpack.c.3.s8 %v5931_v59 }
 0x176   :  { %v2135_v41 = vcvt.s32.f32 %v1111_v52  ;;  %v2143_v42 = vcvt.s32.f32 %v1119_v39  ;;  %v1735_v40 = vunpack.c.2.s8 %v719_v16  ;;  %v1743_v60 = vunpack.c.3.s8 %v719_v16  ;;  %v711_v52 = vld [vmem:[#allocation8 + $0x798] sm:$0xff] }
 0x177   :  { %3649 = vmatpush.bf16.msrb.mxu0 %v3079_v23  ;;  %v2903_v38 = vpack.c.bf16 %v2015_v28, %v2007_v51  ;;  %v2631_v11 = vcvt.s32.f32 %v1607_v20  ;;  %v2639_v47 = vcvt.s32.f32 %v1615_v49  ;;  %v3372_v57 = vadd.f32 %v5916_v61, %v5929_v12  ;;  %v607_v28 = vld [vmem:[#allocation8 + $0x458] sm:$0xff] }
 0x178   :  { %3662 = vmatpush.bf16.msrb.mxu1 %v3143_v29  ;;  %v2967_v54 = vpack.c.bf16 %v2143_v42, %v2135_v41  ;;  %v2759_v31 = vcvt.s32.f32 %v1735_v40  ;;  %v2767_v6 = vcvt.s32.f32 %v1743_v60  ;;  %v1319_v58 = vunpack.c.2.s8 %v615_v48  ;;  %v639_v49 = vld [vmem:[#allocation8 + $0x558] sm:$0xff] }
 0x179   :  { %3629 = vmatpush.bf16.msra.mxu2 %v2903_v38  ;;  %v1327_v63 = vunpack.c.3.s8 %v615_v48  ;;  %v3215_v2 = vpack.c.bf16 %v2639_v47, %v2631_v11  ;;  %v5946_v21 = vadd.f32 %v5918_v22, %v3372_v57  ;;  %v1447_v7 = vunpack.c.2.s8 %v647_v44 }
 0x17a   :  { %3642 = vmatpush.bf16.msra.mxu3 %v2967_v54  ;;  %v1455_v17 = vunpack.c.3.s8 %v647_v44  ;;  %v3279_v43 = vpack.c.bf16 %v2767_v6, %v2759_v31  ;;  %v2343_v26 = vcvt.s32.f32 %v1319_v58  ;;  %v1591_v61 = vunpack.c.0.s8 %v5931_v59 }
 0x17b   :  { %v2351_v53 = vcvt.s32.f32 %v1327_v63  ;;  %v4118_v12 = vperm.slane %v5943_v27, 0  ;;  %v2471_v50 = vcvt.s32.f32 %v1447_v7  ;;  %v1599_v4 = vunpack.c.1.s8 %v5931_v59 }
 0x17c   :  { %v2479_v55 = vcvt.s32.f32 %v1455_v17  ;;  %3630 = vmatmul.bf16.vlgmr.msra.gmra.mxu2 %v5800_v9  ;;  %v2615_v46 = vcvt.s32.f32 %v1591_v61  ;;  %v1719_v56 = vunpack.c.0.s8 %v719_v16  ;;  %v1727_v3 = vunpack.c.1.s8 %v719_v16 }
 0x17d   :  { %3674 = vmatpush.bf16.msrb.mxu2 %v3215_v2  ;;  %v3071_v22 = vpack.c.bf16 %v2351_v53, %v2343_v26  ;;  %3643 = vmatmul.bf16.vlgmr.msra.gmra.mxu3 %v5802_v10  ;;  %v2623_v32 = vcvt.s32.f32 %v1599_v4  ;;  %v5955_v15 = vadd.f32 %v5925_v1, %v5923_v24  ;;  %v1303_v5 = vunpack.c.0.s8 %v615_v48 }
 0x17e   :  { %3687 = vmatpush.bf16.msrb.mxu3 %v3279_v43  ;;  %v3135_v0 = vpack.c.bf16 %v2479_v55, %v2471_v50  ;;  %v2743_v35 = vcvt.s32.f32 %v1719_v56  ;;  %v2751_v59 = vcvt.s32.f32 %v1727_v3  ;;  %v1311_v34 = vunpack.c.1.s8 %v615_v48 }
 0x17f   :  { %3650 = vmatpush.bf16.msrb.mxu0 %v3071_v22  ;;  %v1431_v25 = vunpack.c.0.s8 %v647_v44  ;;  %v3207_v39 = vpack.c.bf16 %v2623_v32, %v2615_v46  ;;  %v2327_v23 = vcvt.s32.f32 %v1303_v5  ;;  %v1439_v16 = vunpack.c.1.s8 %v647_v44  ;;  %v671_v46 = vld [vmem:[#allocation8 + $0x658] sm:$0xff] }
 0x180   :  { %3663 = vmatpush.bf16.msrb.mxu1 %v3135_v0  ;;  %v1575_v51 = vunpack.c.2.s8 %v679_v13  ;;  %v3271_v20 = vpack.c.bf16 %v2751_v59, %v2743_v35  ;;  %v2335_v29 = vcvt.s32.f32 %v1311_v34  ;;  %v1583_v42 = vunpack.c.3.s8 %v679_v13  ;;  %v703_v5 = vld [vmem:[#allocation8 + $0x758] sm:$0xff] }
 0x181   :  { %v2455_v41 = vcvt.s32.f32 %v1431_v25  ;;  %3675 = vmatpush.bf16.msrb.mxu2 %v3207_v39  ;;  %v2463_v24 = vcvt.s32.f32 %v1439_v16  ;;  %v1703_v38 = vunpack.c.2.s8 %v711_v52  ;;  %v1711_v11 = vunpack.c.3.s8 %v711_v52  ;;  %v599_v25 = vld [vmem:[#allocation8 + $0x418] sm:$0xff] }
 0x182   :  { %v2599_v1 = vcvt.s32.f32 %v1575_v51  ;;  %3688 = vmatpush.bf16.msrb.mxu3 %v3271_v20  ;;  %v3063_v48 = vpack.c.bf16 %v2335_v29, %v2327_v23  ;;  %v2607_v40 = vcvt.s32.f32 %v1583_v42  ;;  %v1287_v60 = vunpack.c.2.s8 %v607_v28  ;;  %v5957_v42 = vpop.f32.mrf.mxu0 }
 0x183   :  { %v1295_v54 = vunpack.c.3.s8 %v607_v28  ;;  %v3127_v47 = vpack.c.bf16 %v2463_v24, %v2455_v41  ;;  %v2727_v57 = vcvt.s32.f32 %v1703_v38  ;;  %v2735_v44 = vcvt.s32.f32 %v1711_v11  ;;  %v631_v41 = vld [vmem:[#allocation8 + $0x518] sm:$0xff]  ;;  %v5959_v24 = vpop.f32.mrf.mxu1 }
 0x184   :  { %v1415_v31 = vunpack.c.2.s8 %v639_v49  ;;  %3651 = vmatpush.bf16.msrb.mxu0 %v3063_v48  ;;  %v3199_v6 = vpack.c.bf16 %v2607_v40, %v2599_v1  ;;  %v2311_v58 = vcvt.s32.f32 %v1287_v60  ;;  %v1423_v2 = vunpack.c.3.s8 %v639_v49 }
 0x185   :  { %v2319_v63 = vcvt.s32.f32 %v1295_v54  ;;  %3664 = vmatpush.bf16.msrb.mxu1 %v3127_v47  ;;  %v3263_v7 = vpack.c.bf16 %v2735_v44, %v2727_v57  ;;  %v1559_v33 = vunpack.c.0.s8 %v679_v13  ;;  %v1567_v37 = vunpack.c.1.s8 %v679_v13 }
 0x186   :  { %v2439_v17 = vcvt.s32.f32 %v1415_v31  ;;  %3676 = vmatpush.bf16.msrb.mxu2 %v3199_v6  ;;  %v2447_v26 = vcvt.s32.f32 %v1423_v2  ;;  %v1687_v53 = vunpack.c.0.s8 %v711_v52  ;;  %v1695_v61 = vunpack.c.1.s8 %v711_v52 }
 0x187   :  { %v3055_v43 = vpack.c.bf16 %v2319_v63, %v2311_v58  ;;  %3689 = vmatpush.bf16.msrb.mxu3 %v3263_v7  ;;  %v2583_v50 = vcvt.s32.f32 %v1559_v33  ;;  %v2591_v55 = vcvt.s32.f32 %v1567_v37  ;;  %v1271_v4 = vunpack.c.0.s8 %v607_v28 }
 0x188   :  { %v1279_v22 = vunpack.c.1.s8 %v607_v28  ;;  %v3119_v56 = vpack.c.bf16 %v2447_v26, %v2439_v17  ;;  %v2711_v3 = vcvt.s32.f32 %v1687_v53  ;;  %v2719_v0 = vcvt.s32.f32 %v1695_v61  ;;  %v496_v53 = vld [vmem:[#allocation8 + $0xe0] sm:$0xff] }
 0x189   :  { %3652 = vmatpush.bf16.msrb.mxu0 %v3055_v43  ;;  %v1399_v32 = vunpack.c.0.s8 %v639_v49  ;;  %v3191_v35 = vpack.c.bf16 %v2591_v55, %v2583_v50  ;;  %v2295_v59 = vcvt.s32.f32 %v1271_v4  ;;  %v1407_v34 = vunpack.c.1.s8 %v639_v49  ;;  %v528_v4 = vld [vmem:[#allocation8 + $0x1e0] sm:$0xff] }
 0x18a   :  { %v2303_v13 = vcvt.s32.f32 %v1279_v22  ;;  %3665 = vmatpush.bf16.msrb.mxu1 %v3119_v56  ;;  %v3255_v39 = vpack.c.bf16 %v2719_v0, %v2711_v3  ;;  %v1543_v23 = vunpack.c.2.s8 %v671_v46  ;;  %v1551_v16 = vunpack.c.3.s8 %v671_v46 }
 0x18b   :  { %v2423_v52 = vcvt.s32.f32 %v1399_v32  ;;  %3677 = vmatpush.bf16.msrb.mxu2 %v3191_v35  ;;  %v2431_v28 = vcvt.s32.f32 %v1407_v34  ;;  %v1671_v20 = vunpack.c.2.s8 %v703_v5  ;;  %v1679_v29 = vunpack.c.3.s8 %v703_v5  ;;  %v663_v32 = vld [vmem:[#allocation8 + $0x618] sm:$0xff]  ;;  %v3464_v35 = vpop.f32.mrf.mxu1 }
 0x18c   :  { %v3047_v51 = vpack.c.bf16 %v2303_v13, %v2295_v59  ;;  %3690 = vmatpush.bf16.msrb.mxu3 %v3255_v39  ;;  %v2567_v1 = vcvt.s32.f32 %v1543_v23  ;;  %v2575_v38 = vcvt.s32.f32 %v1551_v16  ;;  %v3424_v49 = vadd.f32 %v5933_v30, %v5955_v15 }
 0x18d   :  { %v1255_v11 = vunpack.c.2.s8 %v599_v25  ;;  %v3111_v48 = vpack.c.bf16 %v2431_v28, %v2423_v52  ;;  %v2695_v40 = vcvt.s32.f32 %v1671_v20  ;;  %v2703_v60 = vcvt.s32.f32 %v1679_v29 }
 0x18e   :  { %3653 = vmatpush.bf16.msrb.mxu0 %v3047_v51  ;;  %v1263_v54 = vunpack.c.3.s8 %v599_v25  ;;  %v3183_v47 = vpack.c.bf16 %v2575_v38, %v2567_v1  ;;  %v5964_v57 = vadd.f32 %v5935_v8, %v3424_v49  ;;  %v1383_v31 = vunpack.c.2.s8 %v631_v41  ;;  %v695_v51 = vld [vmem:[#allocation8 + $0x718] sm:$0xff] }
 0x18f   :  { %v2279_v44 = vcvt.s32.f32 %v1255_v11  ;;  %3666 = vmatpush.bf16.msrb.mxu1 %v3111_v48  ;;  %v3247_v6 = vpack.c.bf16 %v2703_v60, %v2695_v40  ;;  %v1391_v63 = vunpack.c.3.s8 %v631_v41  ;;  %v1527_v2 = vunpack.c.0.s8 %v671_v46 }
 0x190   :  { %v2287_v58 = vcvt.s32.f32 %v1263_v54  ;;  %3678 = vmatpush.bf16.msrb.mxu2 %v3183_v47  ;;  %v2407_v7 = vcvt.s32.f32 %v1383_v31  ;;  %v1535_v30 = vunpack.c.1.s8 %v671_v46  ;;  %v1655_v15 = vunpack.c.0.s8 %v703_v5  ;;  %v3451_v46 = vpop.f32.mrf.mxu0 }
 0x191   :  { %v1663_v17 = vunpack.c.1.s8 %v703_v5  ;;  %3691 = vmatpush.bf16.msrb.mxu3 %v3247_v6  ;;  %v2415_v37 = vcvt.s32.f32 %v1391_v63  ;;  %v2551_v43 = vcvt.s32.f32 %v1527_v2  ;;  %v1239_v26 = vunpack.c.0.s8 %v599_v25 }
 0x192   :  { %v3039_v33 = vpack.c.bf16 %v2287_v58, %v2279_v44  ;;  %v2559_v8 = vcvt.s32.f32 %v1535_v30  ;;  %v2679_v61 = vcvt.s32.f32 %v1655_v15  ;;  %v1247_v55 = vunpack.c.1.s8 %v599_v25  ;;  %v5968_v30 = vpop.f32.mrf.mxu3 }
 0x193   :  { %v2687_v50 = vcvt.s32.f32 %v1663_v17  ;;  %v3103_v22 = vpack.c.bf16 %v2415_v37, %v2407_v7  ;;  %v2263_v56 = vcvt.s32.f32 %v1239_v26  ;;  %v1367_v3 = vunpack.c.0.s8 %v631_v41  ;;  %v5966_v7 = vpop.f32.mrf.mxu2 }
 0x194   :  { %3654 = vmatpush.bf16.msrb.mxu0 %v3039_v33  ;;  %v1375_v0 = vunpack.c.1.s8 %v631_v41  ;;  %v3175_v5 = vpack.c.bf16 %v2559_v8, %v2551_v43  ;;  %v2271_v13 = vcvt.s32.f32 %v1247_v55  ;;  %v840_v34 = vunpack.c.2.s8 %v496_v53  ;;  %v560_v43 = vld [vmem:[#allocation8 + $0x2e0] sm:$0xff] }
 0x195   :  { %v3239_v59 = vpack.c.bf16 %v2687_v50, %v2679_v61  ;;  %3667 = vmatpush.bf16.msrb.mxu1 %v3103_v22  ;;  %v2391_v39 = vcvt.s32.f32 %v1367_v3  ;;  %v848_v23 = vunpack.c.3.s8 %v496_v53  ;;  %v968_v16 = vunpack.c.2.s8 %v528_v4  ;;  %v592_v50 = vld [vmem:[#allocation8 + $0x3e0] sm:$0xff] }
 0x196   :  { %v2399_v52 = vcvt.s32.f32 %v1375_v0  ;;  %3679 = vmatpush.bf16.msrb.mxu2 %v3175_v5  ;;  %v3031_v25 = vpack.c.bf16 %v2271_v13, %v2263_v56  ;;  %v1864_v28 = vcvt.s32.f32 %v840_v34  ;;  %v976_v20 = vunpack.c.3.s8 %v528_v4  ;;  %v488_v5 = vld [vmem:[#allocation8 + $0xa0] sm:$0xff] }
 0x197   :  { %3692 = vmatpush.bf16.msrb.mxu3 %v3239_v59  ;;  %v1511_v29 = vunpack.c.2.s8 %v663_v32  ;;  %v1872_v1 = vcvt.s32.f32 %v848_v23  ;;  %v1992_v38 = vcvt.s32.f32 %v968_v16  ;;  %v1519_v49 = vunpack.c.3.s8 %v663_v32 }
 0x198   :  { %v3095_v41 = vpack.c.bf16 %v2399_v52, %v2391_v39  ;;  %3655 = vmatpush.bf16.msrb.mxu0 %v3031_v25  ;;  %v2000_v11 = vcvt.s32.f32 %v976_v20  ;;  %v1639_v40 = vunpack.c.2.s8 %v695_v51  ;;  %v1647_v60 = vunpack.c.3.s8 %v695_v51 }
 0x199   :  { %v2535_v48 = vcvt.s32.f32 %v1511_v29  ;;  %v2832_v54 = vpack.c.bf16 %v1872_v1, %v1864_v28  ;;  %v2543_v47 = vcvt.s32.f32 %v1519_v49  ;;  %v824_v44 = vunpack.c.0.s8 %v496_v53 }
 0x19a   :  { %3668 = vmatpush.bf16.msrb.mxu1 %v3095_v41  ;;  %v832_v31 = vunpack.c.1.s8 %v496_v53  ;;  %v2896_v6 = vpack.c.bf16 %v2000_v11, %v1992_v38  ;;  %v2663_v58 = vcvt.s32.f32 %v1639_v40  ;;  %v2671_v63 = vcvt.s32.f32 %v1647_v60 }
 0x19b   :  { %v952_v2 = vunpack.c.0.s8 %v528_v4  ;;  %v3167_v15 = vpack.c.bf16 %v2543_v47, %v2535_v48  ;;  %v1848_v17 = vcvt.s32.f32 %v824_v44  ;;  %v960_v37 = vunpack.c.1.s8 %v528_v4  ;;  %3656 = vmatmul.bf16.vlgmr.msrb.gmra.mxu0 %v5854_v18  ;;  %v3477_v11 = vpop.f32.mrf.mxu2  ;;  %v3490_v48 = vpop.f32.mrf.mxu3 }
 0x19c   :  { %3700 = vmatpush.bf16.msra.mxu0 %v2832_v54  ;;  %v1856_v33 = vcvt.s32.f32 %v832_v31  ;;  %v3231_v26 = vpack.c.bf16 %v2671_v63, %v2663_v58  ;;  %v1495_v53 = vunpack.c.0.s8 %v663_v32  ;;  %v1503_v61 = vunpack.c.1.s8 %v663_v32  ;;  %v520_v32 = vld [vmem:[#allocation8 + $0x1a0] sm:$0xff] }
 0x19d   :  { %v1976_v8 = vcvt.s32.f32 %v952_v2  ;;  %3680 = vmatpush.bf16.msrb.mxu2 %v3167_v15  ;;  %3669 = vmatmul.bf16.vlgmr.msrb.gmra.mxu1 %v5856_v36  ;;  %v1984_v22 = vcvt.s32.f32 %v960_v37  ;;  %v1623_v56 = vunpack.c.0.s8 %v695_v51  ;;  %v1631_v3 = vunpack.c.1.s8 %v695_v51 }
 0x19e   :  { %3713 = vmatpush.bf16.msra.mxu1 %v2896_v6  ;;  %v2824_v55 = vpack.c.bf16 %v1856_v33, %v1848_v17  ;;  %3693 = vmatpush.bf16.msrb.mxu3 %v3231_v26  ;;  %v2519_v0 = vcvt.s32.f32 %v1495_v53  ;;  %v2527_v46 = vcvt.s32.f32 %v1503_v61  ;;  %v1096_v4 = vunpack.c.2.s8 %v560_v43  ;;  %v552_v33 = vld [vmem:[#allocation8 + $0x2a0] sm:$0xff] }
 0x19f   :  { %v1104_v35 = vunpack.c.3.s8 %v560_v43  ;;  %v2888_v59 = vpack.c.bf16 %v1984_v22, %v1976_v8  ;;  %v2647_v13 = vcvt.s32.f32 %v1623_v56  ;;  %v2655_v34 = vcvt.s32.f32 %v1631_v3  ;;  %v584_v56 = vld [vmem:[#allocation8 + $0x3a0] sm:$0xff] }
 0x1a0   :  { %3701 = vmatpush.bf16.msra.mxu0 %v2824_v55  ;;  %v1224_v39 = vunpack.c.2.s8 %v592_v50  ;;  %v3159_v52 = vpack.c.bf16 %v2527_v46, %v2519_v0  ;;  %v2120_v23 = vcvt.s32.f32 %v1096_v4  ;;  %v1232_v25 = vunpack.c.3.s8 %v592_v50  ;;  %v480_v4 = vld [vmem:[#allocation8 + $0x60] sm:$0xff] }
 0x1a1   :  { %v2128_v16 = vcvt.s32.f32 %v1104_v35  ;;  %v3223_v28 = vpack.c.bf16 %v2655_v34, %v2647_v13  ;;  %v808_v51 = vunpack.c.2.s8 %v488_v5  ;;  %v816_v29 = vunpack.c.3.s8 %v488_v5  ;;  %v512_v13 = vld [vmem:[#allocation8 + $0x160] sm:$0xff] }
 0x1a2   :  { %3714 = vmatpush.bf16.msra.mxu1 %v2888_v59  ;;  %v2248_v20 = vcvt.s32.f32 %v1224_v39  ;;  %3681 = vmatpush.bf16.msrb.mxu2 %v3159_v52  ;;  %v2256_v1 = vcvt.s32.f32 %v1232_v25  ;;  %v936_v38 = vunpack.c.2.s8 %v520_v32  ;;  %v944_v49 = vunpack.c.3.s8 %v520_v32 }
 0x1a3   :  { %v2960_v41 = vpack.c.bf16 %v2128_v16, %v2120_v23  ;;  %3694 = vmatpush.bf16.msrb.mxu3 %v3223_v28  ;;  %v1832_v40 = vcvt.s32.f32 %v808_v51  ;;  %v1840_v60 = vcvt.s32.f32 %v816_v29  ;;  %v1080_v54 = vunpack.c.0.s8 %v560_v43 }
 0x1a4   :  { %v1088_v47 = vunpack.c.1.s8 %v560_v43  ;;  %v3024_v44 = vpack.c.bf16 %v2256_v1, %v2248_v20  ;;  %v1960_v31 = vcvt.s32.f32 %v936_v38  ;;  %v1968_v6 = vcvt.s32.f32 %v944_v49 }
 0x1a5   :  { %v1208_v58 = vunpack.c.0.s8 %v592_v50  ;;  %3682 = vmatmul.bf16.vlgmr.msrb.gmra.mxu2 %v5864_v45  ;;  %v2816_v63 = vpack.c.bf16 %v1840_v60, %v1832_v40  ;;  %v2104_v2 = vcvt.s32.f32 %v1080_v54  ;;  %v1216_v17 = vunpack.c.1.s8 %v592_v50 }
 0x1a6   :  { %3726 = vmatpush.bf16.msra.mxu2 %v2960_v41  ;;  %v2112_v15 = vcvt.s32.f32 %v1088_v47  ;;  %v2880_v37 = vpack.c.bf16 %v1968_v6, %v1960_v31  ;;  %v3450_v8 = vadd.f32 %v5957_v42, %v5964_v57  ;;  %v792_v53 = vunpack.c.0.s8 %v488_v5  ;;  %3695 = vmatmul.bf16.vlgmr.msrb.gmra.mxu3 %v5866_v19 }
 0x1a7   :  { %3739 = vmatpush.bf16.msra.mxu3 %v3024_v44  ;;  %v2232_v26 = vcvt.s32.f32 %v1208_v58  ;;  %3702 = vmatpush.bf16.msra.mxu0 %v2816_v63  ;;  %v2240_v61 = vcvt.s32.f32 %v1216_v17  ;;  %v800_v55 = vunpack.c.1.s8 %v488_v5  ;;  %v920_v22 = vunpack.c.0.s8 %v520_v32 }
 0x1a8   :  { %v2952_v43 = vpack.c.bf16 %v2112_v15, %v2104_v2  ;;  %3715 = vmatpush.bf16.msra.mxu1 %v2880_v37  ;;  %v5977_v3 = vadd.f32 %v5959_v24, %v3450_v8  ;;  %v1816_v50 = vcvt.s32.f32 %v792_v53  ;;  %v928_v0 = vunpack.c.1.s8 %v520_v32  ;;  %v544_v2 = vld [vmem:[#allocation8 + $0x260] sm:$0xff] }
 0x1a9   :  { %v1064_v46 = vunpack.c.2.s8 %v552_v33  ;;  %v3016_v35 = vpack.c.bf16 %v2240_v61, %v2232_v26  ;;  %v1824_v42 = vcvt.s32.f32 %v800_v55  ;;  %v1944_v57 = vcvt.s32.f32 %v920_v22  ;;  %v576_v8 = vld [vmem:[#allocation8 + $0x360] sm:$0xff] }
 0x1aa   :  { %3727 = vmatpush.bf16.msra.mxu2 %v2952_v43  ;;  %v1072_v59 = vunpack.c.3.s8 %v552_v33  ;;  %v1952_v34 = vcvt.s32.f32 %v928_v0  ;;  %v1192_v52 = vunpack.c.2.s8 %v584_v56  ;;  %v1200_v5 = vunpack.c.3.s8 %v584_v56 }
 0x1ab   :  { %v2088_v39 = vcvt.s32.f32 %v1064_v46  ;;  %3740 = vmatpush.bf16.msra.mxu3 %v3016_v35  ;;  %v2808_v23 = vpack.c.bf16 %v1824_v42, %v1816_v50  ;;  %v776_v25 = vunpack.c.2.s8 %v480_v4  ;;  %v784_v24 = vunpack.c.3.s8 %v480_v4  ;;  %v472_v42 = vld [vmem:[#allocation8 + $0x20] sm:$0xff] }
 0x1ac   :  { %v2096_v16 = vcvt.s32.f32 %v1072_v59  ;;  %v2872_v28 = vpack.c.bf16 %v1952_v34, %v1944_v57  ;;  %v2216_v20 = vcvt.s32.f32 %v1192_v52  ;;  %v2224_v32 = vcvt.s32.f32 %v1200_v5 }
 0x1ad   :  { %v904_v51 = vunpack.c.2.s8 %v512_v13  ;;  %3703 = vmatpush.bf16.msra.mxu0 %v2808_v23  ;;  %v1800_v41 = vcvt.s32.f32 %v776_v25  ;;  %v1808_v1 = vcvt.s32.f32 %v784_v24  ;;  %v912_v38 = vunpack.c.3.s8 %v512_v13 }
 0x1ae   :  { %v2944_v29 = vpack.c.bf16 %v2096_v16, %v2088_v39  ;;  %3716 = vmatpush.bf16.msra.mxu1 %v2872_v28  ;;  %v3008_v49 = vpack.c.bf16 %v2224_v32, %v2216_v20  ;;  %v1048_v48 = vunpack.c.0.s8 %v552_v33  ;;  %v1056_v40 = vunpack.c.1.s8 %v552_v33 }
 0x1af   :  { %v1928_v11 = vcvt.s32.f32 %v904_v51  ;;  %v2800_v60 = vpack.c.bf16 %v1808_v1, %v1800_v41  ;;  %v1936_v54 = vcvt.s32.f32 %v912_v38  ;;  %v1176_v47 = vunpack.c.0.s8 %v584_v56 }
 0x1b0   :  { %3728 = vmatpush.bf16.msra.mxu2 %v2944_v29  ;;  %v1184_v44 = vunpack.c.1.s8 %v584_v56  ;;  %3741 = vmatpush.bf16.msra.mxu3 %v3008_v49  ;;  %v2072_v31 = vcvt.s32.f32 %v1048_v48  ;;  %v2080_v6 = vcvt.s32.f32 %v1056_v40  ;;  %v760_v58 = vunpack.c.0.s8 %v480_v4  ;;  %v5988_v48 = vpop.f32.mrf.mxu1 }
 0x1b1   :  { %v768_v63 = vunpack.c.1.s8 %v480_v4  ;;  %3704 = vmatpush.bf16.msra.mxu0 %v2800_v60  ;;  %v2864_v15 = vpack.c.bf16 %v1936_v54, %v1928_v11  ;;  %v2200_v17 = vcvt.s32.f32 %v1176_v47  ;;  %v888_v26 = vunpack.c.0.s8 %v512_v13 }
 0x1b2   :  { %v2208_v37 = vcvt.s32.f32 %v1184_v44  ;;  %v2936_v53 = vpack.c.bf16 %v2080_v6, %v2072_v31  ;;  %v1784_v43 = vcvt.s32.f32 %v760_v58  ;;  %v896_v61 = vunpack.c.1.s8 %v512_v13  ;;  %v504_v13 = vld [vmem:[#allocation8 + $0x120] sm:$0xff] }
 0x1b3   :  { %v1792_v33 = vcvt.s32.f32 %v768_v63  ;;  %3717 = vmatpush.bf16.msra.mxu1 %v2864_v15  ;;  %v1912_v22 = vcvt.s32.f32 %v888_v26  ;;  %v1032_v56 = vunpack.c.2.s8 %v544_v2  ;;  %v1040_v50 = vunpack.c.3.s8 %v544_v2 }
 0x1b4   :  { %v3000_v55 = vpack.c.bf16 %v2208_v37, %v2200_v17  ;;  %3729 = vmatpush.bf16.msra.mxu2 %v2936_v53  ;;  %v1920_v46 = vcvt.s32.f32 %v896_v61  ;;  %v1160_v4 = vunpack.c.2.s8 %v576_v8  ;;  %v1168_v35 = vunpack.c.3.s8 %v576_v8  ;;  %v656_v53 = vld [vmem:[#allocation8 + $0x5e0] sm:$0xff] }
 0x1b5   :  { %v2792_v0 = vpack.c.bf16 %v1792_v33, %v1784_v43  ;;  %v2056_v57 = vcvt.s32.f32 %v1032_v56  ;;  %v2064_v59 = vcvt.s32.f32 %v1040_v50  ;;  %v3476_v34 = vadd.f32 %v5966_v7, %v5977_v3  ;;  %v536_v61 = vld [vmem:[#allocation8 + $0x220] sm:$0xff] }
 0x1b6   :  { %3742 = vmatpush.bf16.msra.mxu3 %v3000_v55  ;;  %v4119_v39 = vperm.slane %v5943_v27, 1  ;;  %v2856_v52 = vpack.c.bf16 %v1920_v46, %v1912_v22  ;;  %v2184_v5 = vcvt.s32.f32 %v1160_v4  ;;  %v2192_v23 = vcvt.s32.f32 %v1168_v35  ;;  %v568_v35 = vld [vmem:[#allocation8 + $0x320] sm:$0xff] }
 0x1b7   :  { %3705 = vmatpush.bf16.msra.mxu0 %v2792_v0  ;;  %v2928_v16 = vpack.c.bf16 %v2064_v59, %v2056_v57  ;;  %v3489_v25 = vadd.f32 %v5968_v30, %v3476_v34  ;;  %v744_v24 = vunpack.c.2.s8 %v472_v42  ;;  %v752_v20 = vunpack.c.3.s8 %v472_v42  ;;  %v5986_v30 = vpop.f32.mrf.mxu0 }
 0x1b8   :  { %3718 = vmatpush.bf16.msra.mxu1 %v2856_v52  ;;  %v2992_v28 = vpack.c.bf16 %v2192_v23, %v2184_v5  ;;  %v872_v32 = vunpack.c.2.s8 %v504_v13  ;;  %v880_v51 = vunpack.c.3.s8 %v504_v13  ;;  %v4134_v7 = vmul.f32 %v4118_v12, %v5946_v21  ;;  %v624_v12 = vld [vmem:[#allocation8 + $0x4e0] sm:$0xff]  ;;  %v3516_v46 = vpop.f32.mrf.mxu1 }
 0x1b9   :  { %3730 = vmatpush.bf16.msra.mxu2 %v2928_v16  ;;  %v4135_v3 = vmul.f32 %v4119_v39, %v3489_v25  ;;  %v1768_v29 = vcvt.s32.f32 %v744_v24  ;;  %v1016_v41 = vunpack.c.0.s8 %v544_v2  ;;  %v1776_v1 = vcvt.s32.f32 %v752_v20 }
 0x1ba   :  { %3743 = vmatpush.bf16.msra.mxu3 %v2992_v28  ;;  %v1896_v38 = vcvt.s32.f32 %v872_v32  ;;  %v1904_v49 = vcvt.s32.f32 %v880_v51  ;;  %v1024_v11 = vunpack.c.1.s8 %v544_v2  ;;  %v1144_v21 = vunpack.c.0.s8 %v576_v8 }
 0x1bb   :  { %v5990_v40 = vpack.c.bf16 %v4135_v3, %v4134_v7  ;;  %v2040_v60 = vcvt.s32.f32 %v1016_v41  ;;  %v2784_v54 = vpack.c.bf16 %v1776_v1, %v1768_v29  ;;  %v1152_v31 = vunpack.c.1.s8 %v576_v8  ;;  %v5994_v29 = vpop.f32.mrf.mxu2  ;;  %v5996_v41 = vpop.f32.mrf.mxu3 }
 0x1bc   :  { %v2848_v47 = vpack.c.bf16 %v1904_v49, %v1896_v38  ;;  %v2048_v27 = vcvt.s32.f32 %v1024_v11  ;;  %v2168_v6 = vcvt.s32.f32 %v1144_v21  ;;  %v728_v58 = vunpack.c.0.s8 %v472_v42 }
 0x1bd   :  { %3706 = vmatpush.bf16.msra.mxu0 %v2784_v54  ;;  %v736_v63 = vunpack.c.1.s8 %v472_v42  ;;  %v856_v2 = vunpack.c.0.s8 %v504_v13  ;;  %v2176_v15 = vcvt.s32.f32 %v1152_v31  ;;  %v864_v37 = vunpack.c.1.s8 %v504_v13 }
 0x1be   :  { %3719 = vmatpush.bf16.msra.mxu1 %v2848_v47  ;;  %v2920_v44 = vpack.c.bf16 %v2048_v27, %v2040_v60  ;;  %v1752_v17 = vcvt.s32.f32 %v728_v58  ;;  %v1352_v26 = vunpack.c.2.s8 %v624_v12  ;;  %v1360_v56 = vunpack.c.3.s8 %v624_v12  ;;  %v688_v60 = vld [vmem:[#allocation8 + $0x6e0] sm:$0xff] }
 0x1bf   :  { %v1760_v43 = vcvt.s32.f32 %v736_v63  ;;  %v1880_v33 = vcvt.s32.f32 %v856_v2  ;;  %v2984_v55 = vpack.c.bf16 %v2176_v15, %v2168_v6  ;;  %v1888_v22 = vcvt.s32.f32 %v864_v37  ;;  %v3503_v0 = vpop.f32.mrf.mxu0  ;;  %v5998_v63 = vld [vmem:[#allocation8 + $0x4a0] sm:$0xff] }
 0x1c0   :  { %3731 = vmatpush.bf16.msra.mxu2 %v2920_v44  ;;  %v2376_v50 = vcvt.s32.f32 %v1352_v26  ;;  %v1480_v4 = vunpack.c.2.s8 %v656_v53  ;;  %v2384_v57 = vcvt.s32.f32 %v1360_v56  ;;  %v1488_v59 = vunpack.c.3.s8 %v656_v53 }
 0x1c1   :  { %v2776_v8 = vpack.c.bf16 %v1760_v43, %v1752_v17  ;;  %3744 = vmatpush.bf16.msra.mxu3 %v2984_v55  ;;  %v2840_v42 = vpack.c.bf16 %v1888_v22, %v1880_v33  ;;  %v1000_v34 = vunpack.c.2.s8 %v536_v61  ;;  %v1008_v13 = vunpack.c.3.s8 %v536_v61  ;;  %v648_v55 = vld [vmem:[#allocation8 + $0x5a0] sm:$0xff] }
 0x1c2   :  { %v2504_v39 = vcvt.s32.f32 %v1480_v4  ;;  %v3088_v52 = vpack.c.bf16 %v2384_v57, %v2376_v50  ;;  %v2512_v5 = vcvt.s32.f32 %v1488_v59  ;;  %v1128_v16 = vunpack.c.2.s8 %v568_v35 }
 0x1c3   :  { %3707 = vmatpush.bf16.msra.mxu0 %v2776_v8  ;;  %3720 = vmatpush.bf16.msra.mxu1 %v2840_v42  ;;  %v2024_v23 = vcvt.s32.f32 %v1000_v34  ;;  %v2032_v25 = vcvt.s32.f32 %v1008_v13  ;;  %v1136_v24 = vunpack.c.3.s8 %v568_v35  ;;  %v1336_v32 = vunpack.c.0.s8 %v624_v12  ;;  %v3529_v34 = vpop.f32.mrf.mxu2 }
 0x1c4   :  { %v3152_v28 = vpack.c.bf16 %v2512_v5, %v2504_v39  ;;  %v2152_v20 = vcvt.s32.f32 %v1128_v16  ;;  %v1344_v51 = vunpack.c.1.s8 %v624_v12  ;;  %v1464_v49 = vunpack.c.0.s8 %v656_v53  ;;  %v720_v12 = vld [vmem:[#allocation8 + $0x7e0] sm:$0xff]  ;;  %v3542_v39 = vpop.f32.mrf.mxu3 }
 0x1c5   :  { %v2912_v7 = vpack.c.bf16 %v2032_v25, %v2024_v23  ;;  %v2160_v3 = vcvt.s32.f32 %v1136_v24  ;;  %v2360_v1 = vcvt.s32.f32 %v1336_v32  ;;  %v1472_v11 = vunpack.c.1.s8 %v656_v53 }
 0x1c6   :  { %3708 = vmatmul.bf16.vlgmr.msra.gmra.mxu0 %v5755_v62  ;;  %3721 = vmatmul.bf16.vlgmr.msra.gmra.mxu1 %v5757_v14  ;;  %v2368_v38 = vcvt.s32.f32 %v1344_v51  ;;  %v984_v47 = vunpack.c.0.s8 %v536_v61  ;;  %v992_v27 = vunpack.c.1.s8 %v536_v61  ;;  %v1112_v21 = vunpack.c.0.s8 %v568_v35 }
 0x1c7   :  { %3752 = vmatpush.bf16.msrb.mxu0 %v3088_v52  ;;  %3765 = vmatpush.bf16.msrb.mxu1 %v3152_v28  ;;  %v2976_v54 = vpack.c.bf16 %v2160_v3, %v2152_v20  ;;  %v2488_v31 = vcvt.s32.f32 %v1464_v49  ;;  %v2496_v6 = vcvt.s32.f32 %v1472_v11  ;;  %v1120_v58 = vunpack.c.1.s8 %v568_v35  ;;  %v680_v3 = vld [vmem:[#allocation8 + $0x6a0] sm:$0xff] }
 0x1c8   :  { %3732 = vmatpush.bf16.msra.mxu2 %v2912_v7  ;;  %v3080_v44 = vpack.c.bf16 %v2368_v38, %v2360_v1  ;;  %v2008_v2 = vcvt.s32.f32 %v984_v47  ;;  %v2016_v15 = vcvt.s32.f32 %v992_v27  ;;  %v2136_v17 = vcvt.s32.f32 %v1112_v21 }
 0x1c9   :  { %3745 = vmatpush.bf16.msra.mxu3 %v2976_v54  ;;  %v1608_v37 = vunpack.c.2.s8 %v688_v60  ;;  %v3144_v26 = vpack.c.bf16 %v2496_v6, %v2488_v31  ;;  %v2144_v53 = vcvt.s32.f32 %v1120_v58  ;;  %v1616_v43 = vunpack.c.3.s8 %v688_v60  ;;  %v608_v58 = vld [vmem:[#allocation8 + $0x460] sm:$0xff] }
 0x1ca   :  { %v1736_v33 = vunpack.c.2.s8 %v720_v12  ;;  %v2904_v61 = vpack.c.bf16 %v2016_v15, %v2008_v2  ;;  %v1744_v56 = vunpack.c.3.s8 %v720_v12  ;;  %v1320_v50 = vunpack.c.2.s8 %v5998_v63 }
 0x1cb   :  { %3753 = vmatpush.bf16.msrb.mxu0 %v3080_v44  ;;  %v2632_v22 = vcvt.s32.f32 %v1608_v37  ;;  %3766 = vmatpush.bf16.msrb.mxu1 %v3144_v26  ;;  %v2968_v0 = vpack.c.bf16 %v2144_v53, %v2136_v17  ;;  %v2640_v46 = vcvt.s32.f32 %v1616_v43  ;;  %v1328_v4 = vunpack.c.3.s8 %v5998_v63  ;;  %v640_v17 = vld [vmem:[#allocation8 + $0x560] sm:$0xff] }
 0x1cc   :  { %v2760_v8 = vcvt.s32.f32 %v1736_v33  ;;  %3733 = vmatpush.bf16.msra.mxu2 %v2904_v61  ;;  %v2768_v35 = vcvt.s32.f32 %v1744_v56  ;;  %v2344_v42 = vcvt.s32.f32 %v1320_v50  ;;  %v1448_v57 = vunpack.c.2.s8 %v648_v55 }
 0x1cd   :  { %v1456_v59 = vunpack.c.3.s8 %v648_v55  ;;  %3746 = vmatpush.bf16.msra.mxu3 %v2968_v0  ;;  %v3216_v13 = vpack.c.bf16 %v2640_v46, %v2632_v22  ;;  %v2352_v52 = vcvt.s32.f32 %v1328_v4  ;;  %v1592_v5 = vunpack.c.0.s8 %v688_v60 }
 0x1ce   :  { %v1600_v23 = vunpack.c.1.s8 %v688_v60  ;;  %v3280_v16 = vpack.c.bf16 %v2768_v35, %v2760_v8  ;;  %v2472_v25 = vcvt.s32.f32 %v1448_v57  ;;  %v1720_v28 = vunpack.c.0.s8 %v720_v12  ;;  %v712_v60 = vld [vmem:[#allocation8 + $0x7a0] sm:$0xff] }
 0x1cf   :  { %v2480_v24 = vcvt.s32.f32 %v1456_v59  ;;  %v3072_v20 = vpack.c.bf16 %v2352_v52, %v2344_v42  ;;  %v2616_v32 = vcvt.s32.f32 %v1592_v5  ;;  %v1728_v7 = vunpack.c.1.s8 %v720_v12  ;;  %3734 = vmatmul.bf16.vlgmr.msra.gmra.mxu2 %v5800_v9 }
 0x1d0   :  { %3778 = vmatpush.bf16.msrb.mxu2 %v3216_v13  ;;  %v2624_v51 = vcvt.s32.f32 %v1600_v23  ;;  %v2744_v38 = vcvt.s32.f32 %v1720_v28  ;;  %v6005_v49 = vadd.f32 %v5988_v48, %v5986_v30  ;;  %v1304_v11 = vunpack.c.0.s8 %v5998_v63  ;;  %3747 = vmatmul.bf16.vlgmr.msra.gmra.mxu3 %v5802_v10  ;;  %v672_v23 = vld [vmem:[#allocation8 + $0x660] sm:$0xff] }
 0x1d1   :  { %3791 = vmatpush.bf16.msrb.mxu3 %v3280_v16  ;;  %v3136_v1 = vpack.c.bf16 %v2480_v24, %v2472_v25  ;;  %3754 = vmatpush.bf16.msrb.mxu0 %v3072_v20  ;;  %v2752_v47 = vcvt.s32.f32 %v1728_v7  ;;  %v1312_v27 = vunpack.c.1.s8 %v5998_v63  ;;  %v1432_v21 = vunpack.c.0.s8 %v648_v55 }
 0x1d2   :  { %v3208_v54 = vpack.c.bf16 %v2624_v51, %v2616_v32  ;;  %v2328_v12 = vcvt.s32.f32 %v1304_v11  ;;  %v1440_v44 = vunpack.c.1.s8 %v648_v55  ;;  %v1576_v31 = vunpack.c.2.s8 %v680_v3 }
 0x1d3   :  { %3767 = vmatpush.bf16.msrb.mxu1 %v3136_v1  ;;  %v1584_v6 = vunpack.c.3.s8 %v680_v3  ;;  %v3272_v30 = vpack.c.bf16 %v2752_v47, %v2744_v38  ;;  %v2336_v48 = vcvt.s32.f32 %v1312_v27  ;;  %v2456_v2 = vcvt.s32.f32 %v1432_v21  ;;  %v704_v1 = vld [vmem:[#allocation8 + $0x760] sm:$0xff] }
 0x1d4   :  { %3779 = vmatpush.bf16.msrb.mxu2 %v3208_v54  ;;  %v1704_v15 = vunpack.c.2.s8 %v712_v60  ;;  %v2464_v37 = vcvt.s32.f32 %v1440_v44  ;;  %v2600_v26 = vcvt.s32.f32 %v1576_v31  ;;  %v1712_v43 = vunpack.c.3.s8 %v712_v60  ;;  %v600_v47 = vld [vmem:[#allocation8 + $0x420] sm:$0xff]  ;;  %v6010_v31 = vpop.f32.mrf.mxu0 }
 0x1d5   :  { %v2608_v53 = vcvt.s32.f32 %v1584_v6  ;;  %3792 = vmatpush.bf16.msrb.mxu3 %v3272_v30  ;;  %v3064_v33 = vpack.c.bf16 %v2336_v48, %v2328_v12  ;;  %v1288_v61 = vunpack.c.2.s8 %v608_v58  ;;  %v1296_v22 = vunpack.c.3.s8 %v608_v58  ;;  %v632_v44 = vld [vmem:[#allocation8 + $0x520] sm:$0xff]  ;;  %v6012_v6 = vpop.f32.mrf.mxu1 }
 0x1d6   :  { %v2728_v63 = vcvt.s32.f32 %v1704_v15  ;;  %v3128_v56 = vpack.c.bf16 %v2464_v37, %v2456_v2  ;;  %v2736_v50 = vcvt.s32.f32 %v1712_v43  ;;  %v1416_v0 = vunpack.c.2.s8 %v640_v17 }
 0x1d7   :  { %v3200_v55 = vpack.c.bf16 %v2608_v53, %v2600_v26  ;;  %3755 = vmatpush.bf16.msrb.mxu0 %v3064_v33  ;;  %v2312_v46 = vcvt.s32.f32 %v1288_v61  ;;  %v2320_v8 = vcvt.s32.f32 %v1296_v22  ;;  %v1424_v4 = vunpack.c.3.s8 %v640_v17 }
 0x1d8   :  { %v1560_v35 = vunpack.c.0.s8 %v680_v3  ;;  %3768 = vmatpush.bf16.msrb.mxu1 %v3128_v56  ;;  %v3264_v42 = vpack.c.bf16 %v2736_v50, %v2728_v63  ;;  %v2440_v57 = vcvt.s32.f32 %v1416_v0  ;;  %v1568_v59 = vunpack.c.1.s8 %v680_v3 }
 0x1d9   :  { %3780 = vmatpush.bf16.msrb.mxu2 %v3200_v55  ;;  %v1688_v34 = vunpack.c.0.s8 %v712_v60  ;;  %v3056_v39 = vpack.c.bf16 %v2320_v8, %v2312_v46  ;;  %v2448_v13 = vcvt.s32.f32 %v1424_v4  ;;  %v1696_v5 = vunpack.c.1.s8 %v712_v60 }
 0x1da   :  { %v2584_v52 = vcvt.s32.f32 %v1560_v35  ;;  %3793 = vmatpush.bf16.msrb.mxu3 %v3264_v42  ;;  %v2592_v16 = vcvt.s32.f32 %v1568_v59  ;;  %v1272_v24 = vunpack.c.0.s8 %v608_v58  ;;  %v1280_v28 = vunpack.c.1.s8 %v608_v58 }
 0x1db   :  { %v2712_v25 = vcvt.s32.f32 %v1688_v34  ;;  %3756 = vmatpush.bf16.msrb.mxu0 %v3056_v39  ;;  %v3120_v20 = vpack.c.bf16 %v2448_v13, %v2440_v57  ;;  %v2720_v32 = vcvt.s32.f32 %v1696_v5  ;;  %v1400_v51 = vunpack.c.0.s8 %v640_v17  ;;  %v497_v39 = vld [vmem:[#allocation8 + $0xe8] sm:$0xff] }
 0x1dc   :  { %v1408_v7 = vunpack.c.1.s8 %v640_v17  ;;  %v3192_v38 = vpack.c.bf16 %v2592_v16, %v2584_v52  ;;  %v2296_v11 = vcvt.s32.f32 %v1272_v24  ;;  %v2304_v3 = vcvt.s32.f32 %v1280_v28  ;;  %v529_v16 = vld [vmem:[#allocation8 + $0x1e8] sm:$0xff] }
 0x1dd   :  { %v1544_v54 = vunpack.c.2.s8 %v672_v23  ;;  %3769 = vmatpush.bf16.msrb.mxu1 %v3120_v20  ;;  %v3256_v27 = vpack.c.bf16 %v2720_v32, %v2712_v25  ;;  %v2424_v60 = vcvt.s32.f32 %v1400_v51  ;;  %v1552_v12 = vunpack.c.3.s8 %v672_v23  ;;  %v3555_v25 = vpop.f32.mrf.mxu0  ;;  %v3568_v24 = vpop.f32.mrf.mxu1  ;;  %v664_v51 = vld [vmem:[#allocation8 + $0x620] sm:$0xff] }
 0x1de   :  { %v2432_v21 = vcvt.s32.f32 %v1408_v7  ;;  %3781 = vmatpush.bf16.msrb.mxu2 %v3192_v38  ;;  %v3048_v58 = vpack.c.bf16 %v2304_v3, %v2296_v11  ;;  %v1672_v48 = vunpack.c.2.s8 %v704_v1  ;;  %v1680_v2 = vunpack.c.3.s8 %v704_v1  ;;  %v696_v3 = vld [vmem:[#allocation8 + $0x720] sm:$0xff]  ;;  %v6025_v25 = vld [vmem:[#allocation8 + $0xa8] sm:$0xff] }
 0x1df   :  { %v2568_v30 = vcvt.s32.f32 %v1544_v54  ;;  %3794 = vmatpush.bf16.msrb.mxu3 %v3256_v27  ;;  %v2576_v17 = vcvt.s32.f32 %v1552_v12  ;;  %v3528_v37 = vadd.f32 %v5994_v29, %v6005_v49  ;;  %v1256_v26 = vunpack.c.2.s8 %v600_v47 }
 0x1e0   :  { %v3112_v15 = vpack.c.bf16 %v2432_v21, %v2424_v60  ;;  %3757 = vmatpush.bf16.msrb.mxu0 %v3048_v58  ;;  %v2696_v53 = vcvt.s32.f32 %v1672_v48  ;;  %v2704_v43 = vcvt.s32.f32 %v1680_v2  ;;  %v1264_v33 = vunpack.c.3.s8 %v600_v47 }
 0x1e1   :  { %v1384_v63 = vunpack.c.2.s8 %v632_v44  ;;  %v3184_v61 = vpack.c.bf16 %v2576_v17, %v2568_v30  ;;  %v6017_v22 = vadd.f32 %v5996_v41, %v3528_v37  ;;  %v2280_v56 = vcvt.s32.f32 %v1256_v26 }
 0x1e2   :  { %3770 = vmatpush.bf16.msrb.mxu1 %v3112_v15  ;;  %v1392_v55 = vunpack.c.3.s8 %v632_v44  ;;  %v3248_v50 = vpack.c.bf16 %v2704_v43, %v2696_v53  ;;  %v2288_v0 = vcvt.s32.f32 %v1264_v33  ;;  %v1528_v8 = vunpack.c.0.s8 %v672_v23 }
 0x1e3   :  { %v2408_v46 = vcvt.s32.f32 %v1384_v63  ;;  %3782 = vmatpush.bf16.msrb.mxu2 %v3184_v61  ;;  %v1536_v29 = vunpack.c.1.s8 %v672_v23  ;;  %v1656_v49 = vunpack.c.0.s8 %v704_v1  ;;  %v1664_v35 = vunpack.c.1.s8 %v704_v1 }
 0x1e4   :  { %v2416_v4 = vcvt.s32.f32 %v1392_v55  ;;  %3795 = vmatpush.bf16.msrb.mxu3 %v3248_v50  ;;  %v3040_v42 = vpack.c.bf16 %v2288_v0, %v2280_v56  ;;  %v2552_v57 = vcvt.s32.f32 %v1528_v8  ;;  %v1240_v59 = vunpack.c.0.s8 %v600_v47  ;;  %v6021_v8 = vpop.f32.mrf.mxu3 }
 0x1e5   :  { %v1248_v34 = vunpack.c.1.s8 %v600_v47  ;;  %v2560_v41 = vcvt.s32.f32 %v1536_v29  ;;  %v2680_v52 = vcvt.s32.f32 %v1656_v49  ;;  %v2688_v5 = vcvt.s32.f32 %v1664_v35 }
 0x1e6   :  { %v3104_v13 = vpack.c.bf16 %v2416_v4, %v2408_v46  ;;  %3758 = vmatpush.bf16.msrb.mxu0 %v3040_v42  ;;  %v2264_v28 = vcvt.s32.f32 %v1240_v59  ;;  %v1368_v32 = vunpack.c.0.s8 %v632_v44  ;;  %v1376_v23 = vunpack.c.1.s8 %v632_v44  ;;  %v6019_v46 = vpop.f32.mrf.mxu2  ;;  %v561_v42 = vld [vmem:[#allocation8 + $0x2e8] sm:$0xff] }
 0x1e7   :  { %v2272_v20 = vcvt.s32.f32 %v1248_v34  ;;  %v3176_v7 = vpack.c.bf16 %v2560_v41, %v2552_v57  ;;  %v3240_v1 = vpack.c.bf16 %v2688_v5, %v2680_v52  ;;  %v841_v38 = vunpack.c.2.s8 %v497_v39 }
 0x1e8   :  { %3771 = vmatpush.bf16.msrb.mxu1 %v3104_v13  ;;  %v849_v11 = vunpack.c.3.s8 %v497_v39  ;;  %v2392_v47 = vcvt.s32.f32 %v1368_v32  ;;  %v2400_v27 = vcvt.s32.f32 %v1376_v23  ;;  %v969_v60 = vunpack.c.2.s8 %v529_v16  ;;  %v593_v13 = vld [vmem:[#allocation8 + $0x3e8] sm:$0xff] }
 0x1e9   :  { %v3032_v54 = vpack.c.bf16 %v2272_v20, %v2264_v28  ;;  %3783 = vmatpush.bf16.msrb.mxu2 %v3176_v7  ;;  %3796 = vmatpush.bf16.msrb.mxu3 %v3240_v1  ;;  %v1865_v21 = vcvt.s32.f32 %v841_v38  ;;  %v977_v58 = vunpack.c.3.s8 %v529_v16  ;;  %v1512_v30 = vunpack.c.2.s8 %v664_v51  ;;  %v521_v38 = vld [vmem:[#allocation8 + $0x1a8] sm:$0xff] }
 0x1ea   :  { %v1873_v12 = vcvt.s32.f32 %v849_v11  ;;  %v3096_v48 = vpack.c.bf16 %v2400_v27, %v2392_v47  ;;  %v1993_v44 = vcvt.s32.f32 %v969_v60  ;;  %v1520_v2 = vunpack.c.3.s8 %v664_v51 }
 0x1eb   :  { %3759 = vmatpush.bf16.msrb.mxu0 %v3032_v54  ;;  %v1640_v15 = vunpack.c.2.s8 %v696_v3  ;;  %v2001_v37 = vcvt.s32.f32 %v977_v58  ;;  %v2536_v26 = vcvt.s32.f32 %v1512_v30  ;;  %v1648_v53 = vunpack.c.3.s8 %v696_v3 }
 0x1ec   :  { %v2833_v17 = vpack.c.bf16 %v1873_v12, %v1865_v21  ;;  %3772 = vmatpush.bf16.msrb.mxu1 %v3096_v48  ;;  %v2544_v43 = vcvt.s32.f32 %v1520_v2  ;;  %v825_v63 = vunpack.c.0.s8 %v497_v39  ;;  %v833_v61 = vunpack.c.1.s8 %v497_v39 }
 0x1ed   :  { %v2664_v33 = vcvt.s32.f32 %v1640_v15  ;;  %v2897_v56 = vpack.c.bf16 %v2001_v37, %v1993_v44  ;;  %v2672_v55 = vcvt.s32.f32 %v1648_v53  ;;  %v953_v50 = vunpack.c.0.s8 %v529_v16  ;;  %v3594_v15 = vpop.f32.mrf.mxu3 }
 0x1ee   :  { %v961_v0 = vunpack.c.1.s8 %v529_v16  ;;  %v3168_v4 = vpack.c.bf16 %v2544_v43, %v2536_v26  ;;  %3760 = vmatmul.bf16.vlgmr.msrb.gmra.mxu0 %v5854_v18  ;;  %v1849_v29 = vcvt.s32.f32 %v825_v63  ;;  %v1857_v49 = vcvt.s32.f32 %v833_v61  ;;  %v3581_v2 = vpop.f32.mrf.mxu2 }
 0x1ef   :  { %3804 = vmatpush.bf16.msra.mxu0 %v2833_v17  ;;  %v1496_v35 = vunpack.c.0.s8 %v664_v51  ;;  %v3232_v57 = vpack.c.bf16 %v2672_v55, %v2664_v33  ;;  %v1977_v59 = vcvt.s32.f32 %v953_v50  ;;  %v1504_v39 = vunpack.c.1.s8 %v664_v51  ;;  %3773 = vmatmul.bf16.vlgmr.msrb.gmra.mxu1 %v5856_v36 }
 0x1f0   :  { %3817 = vmatpush.bf16.msra.mxu1 %v2897_v56  ;;  %v1985_v34 = vcvt.s32.f32 %v961_v0  ;;  %3784 = vmatpush.bf16.msrb.mxu2 %v3168_v4  ;;  %v2825_v41 = vpack.c.bf16 %v1857_v49, %v1849_v29  ;;  %v1624_v5 = vunpack.c.0.s8 %v696_v3  ;;  %v1632_v16 = vunpack.c.1.s8 %v696_v3  ;;  %v553_v4 = vld [vmem:[#allocation8 + $0x2a8] sm:$0xff] }
 0x1f1   :  { %v2520_v52 = vcvt.s32.f32 %v1496_v35  ;;  %3797 = vmatpush.bf16.msrb.mxu3 %v3232_v57  ;;  %v2528_v28 = vcvt.s32.f32 %v1504_v39  ;;  %v1097_v20 = vunpack.c.2.s8 %v561_v42  ;;  %v1105_v32 = vunpack.c.3.s8 %v561_v42  ;;  %v585_v57 = vld [vmem:[#allocation8 + $0x3a8] sm:$0xff] }
 0x1f2   :  { %v2889_v24 = vpack.c.bf16 %v1985_v34, %v1977_v59  ;;  %v2648_v23 = vcvt.s32.f32 %v1624_v5  ;;  %v2656_v7 = vcvt.s32.f32 %v1632_v16  ;;  %v1225_v1 = vunpack.c.2.s8 %v593_v13 }
 0x1f3   :  { %3805 = vmatpush.bf16.msra.mxu0 %v2825_v41  ;;  %v1233_v51 = vunpack.c.3.s8 %v593_v13  ;;  %v3160_v11 = vpack.c.bf16 %v2528_v28, %v2520_v52  ;;  %v2121_v54 = vcvt.s32.f32 %v1097_v20  ;;  %v2129_v47 = vcvt.s32.f32 %v1105_v32  ;;  %v481_v41 = vld [vmem:[#allocation8 + $0x68] sm:$0xff] }
 0x1f4   :  { %3818 = vmatpush.bf16.msra.mxu1 %v2889_v24  ;;  %v809_v27 = vunpack.c.2.s8 %v6025_v25  ;;  %v3224_v3 = vpack.c.bf16 %v2656_v7, %v2648_v23  ;;  %v2249_v60 = vcvt.s32.f32 %v1225_v1  ;;  %v817_v12 = vunpack.c.3.s8 %v6025_v25  ;;  %v513_v32 = vld [vmem:[#allocation8 + $0x168] sm:$0xff] }
 0x1f5   :  { %v2257_v21 = vcvt.s32.f32 %v1233_v51  ;;  %3785 = vmatpush.bf16.msrb.mxu2 %v3160_v11  ;;  %v2961_v58 = vpack.c.bf16 %v2129_v47, %v2121_v54  ;;  %v937_v48 = vunpack.c.2.s8 %v521_v38  ;;  %v945_v44 = vunpack.c.3.s8 %v521_v38 }
 0x1f6   :  { %v1833_v30 = vcvt.s32.f32 %v809_v27  ;;  %3798 = vmatpush.bf16.msrb.mxu3 %v3224_v3  ;;  %v1841_v37 = vcvt.s32.f32 %v817_v12  ;;  %v1081_v26 = vunpack.c.0.s8 %v561_v42  ;;  %v1089_v53 = vunpack.c.1.s8 %v561_v42 }
 0x1f7   :  { %v3025_v17 = vpack.c.bf16 %v2257_v21, %v2249_v60  ;;  %v1961_v43 = vcvt.s32.f32 %v937_v48  ;;  %v1969_v33 = vcvt.s32.f32 %v945_v44  ;;  %v1209_v63 = vunpack.c.0.s8 %v593_v13 }
 0x1f8   :  { %v1217_v61 = vunpack.c.1.s8 %v593_v13  ;;  %3786 = vmatmul.bf16.vlgmr.msrb.gmra.mxu2 %v5864_v45  ;;  %v2817_v56 = vpack.c.bf16 %v1841_v37, %v1833_v30  ;;  %v2105_v55 = vcvt.s32.f32 %v1081_v26  ;;  %v2113_v50 = vcvt.s32.f32 %v1089_v53  ;;  %v545_v53 = vld [vmem:[#allocation8 + $0x268] sm:$0xff] }
 0x1f9   :  { %3830 = vmatpush.bf16.msra.mxu2 %v2961_v58  ;;  %v3554_v0 = vadd.f32 %v6010_v31, %v6017_v22  ;;  %3799 = vmatmul.bf16.vlgmr.msrb.gmra.mxu3 %v5866_v19  ;;  %v2881_v29 = vpack.c.bf16 %v1969_v33, %v1961_v43  ;;  %v2233_v49 = vcvt.s32.f32 %v1209_v63  ;;  %v793_v42 = vunpack.c.0.s8 %v6025_v25 }
 0x1fa   :  { %3843 = vmatpush.bf16.msra.mxu3 %v3025_v17  ;;  %v2241_v35 = vcvt.s32.f32 %v1217_v61  ;;  %3806 = vmatpush.bf16.msra.mxu0 %v2817_v56  ;;  %v2953_v59 = vpack.c.bf16 %v2113_v50, %v2105_v55  ;;  %v801_v39 = vunpack.c.1.s8 %v6025_v25  ;;  %v921_v13 = vunpack.c.0.s8 %v521_v38 }
 0x1fb   :  { %v6035_v34 = vadd.f32 %v6012_v6, %v3554_v0  ;;  %3819 = vmatpush.bf16.msra.mxu1 %v2881_v29  ;;  %v1817_v22 = vcvt.s32.f32 %v793_v42  ;;  %v929_v52 = vunpack.c.1.s8 %v521_v38  ;;  %v1065_v5 = vunpack.c.2.s8 %v553_v4  ;;  %v577_v29 = vld [vmem:[#allocation8 + $0x368] sm:$0xff] }
 0x1fc   :  { %v3017_v31 = vpack.c.bf16 %v2241_v35, %v2233_v49  ;;  %v1825_v16 = vcvt.s32.f32 %v801_v39  ;;  %v1945_v24 = vcvt.s32.f32 %v921_v13  ;;  %v1073_v28 = vunpack.c.3.s8 %v553_v4 }
 0x1fd   :  { %3831 = vmatpush.bf16.msra.mxu2 %v2953_v59  ;;  %v1193_v20 = vunpack.c.2.s8 %v585_v57  ;;  %v1953_v23 = vcvt.s32.f32 %v929_v52  ;;  %v2089_v7 = vcvt.s32.f32 %v1065_v5  ;;  %v1201_v6 = vunpack.c.3.s8 %v585_v57 }
 0x1fe   :  { %3844 = vmatpush.bf16.msra.mxu3 %v3017_v31  ;;  %v777_v1 = vunpack.c.2.s8 %v481_v41  ;;  %v2809_v51 = vpack.c.bf16 %v1825_v16, %v1817_v22  ;;  %v2097_v25 = vcvt.s32.f32 %v1073_v28  ;;  %v785_v54 = vunpack.c.3.s8 %v481_v41  ;;  %v473_v31 = vld [vmem:[#allocation8 + $0x28] sm:$0xff]  ;;  %v6040_v28 = vpop.f32.mrf.mxu1 }
 0x1ff   :  { %v2217_v11 = vcvt.s32.f32 %v1193_v20  ;;  %v2873_v47 = vpack.c.bf16 %v1953_v23, %v1945_v24  ;;  %v2225_v27 = vcvt.s32.f32 %v1201_v6  ;;  %v905_v38 = vunpack.c.2.s8 %v513_v32  ;;  %v505_v16 = vld [vmem:[#allocation8 + $0x128] sm:$0xff]  ;;  %v6038_v24 = vpop.f32.mrf.mxu0 }
 0x200   :  { %v1801_v3 = vcvt.s32.f32 %v777_v1  ;;  %3807 = vmatpush.bf16.msra.mxu0 %v2809_v51  ;;  %v2945_v60 = vpack.c.bf16 %v2097_v25, %v2089_v7  ;;  %v1809_v21 = vcvt.s32.f32 %v785_v54  ;;  %v913_v12 = vunpack.c.3.s8 %v513_v32 }
 0x201   :  { %v1049_v58 = vunpack.c.0.s8 %v553_v4  ;;  %3820 = vmatpush.bf16.msra.mxu1 %v2873_v47  ;;  %v3009_v30 = vpack.c.bf16 %v2225_v27, %v2217_v11  ;;  %v1929_v48 = vcvt.s32.f32 %v905_v38  ;;  %v1057_v44 = vunpack.c.1.s8 %v553_v4 }
 0x202   :  { %v1177_v2 = vunpack.c.0.s8 %v585_v57  ;;  %3832 = vmatpush.bf16.msra.mxu2 %v2945_v60  ;;  %v2801_v15 = vpack.c.bf16 %v1809_v21, %v1801_v3  ;;  %v1937_v17 = vcvt.s32.f32 %v913_v12  ;;  %v1185_v26 = vunpack.c.1.s8 %v585_v57  ;;  %v6047_v21 = vld [vmem:[#allocation10] sm:$0xff] }
 0x203   :  { %v2073_v37 = vcvt.s32.f32 %v1049_v58  ;;  %3845 = vmatpush.bf16.msra.mxu3 %v3009_v30  ;;  %v2081_v43 = vcvt.s32.f32 %v1057_v44  ;;  %v761_v63 = vunpack.c.0.s8 %v481_v41  ;;  %v769_v61 = vunpack.c.1.s8 %v481_v41 }
 0x204   :  { %v2201_v33 = vcvt.s32.f32 %v1177_v2  ;;  %3808 = vmatpush.bf16.msra.mxu0 %v2801_v15  ;;  %v2865_v56 = vpack.c.bf16 %v1937_v17, %v1929_v48  ;;  %v2209_v55 = vcvt.s32.f32 %v1185_v26  ;;  %v889_v50 = vunpack.c.0.s8 %v513_v32  ;;  %v625_v2 = vld [vmem:[#allocation8 + $0x4e8] sm:$0xff] }
 0x205   :  { %v897_v0 = vunpack.c.1.s8 %v513_v32  ;;  %v2937_v49 = vpack.c.bf16 %v2081_v43, %v2073_v37  ;;  %v1785_v4 = vcvt.s32.f32 %v761_v63  ;;  %v1793_v35 = vcvt.s32.f32 %v769_v61 }
 0x206   :  { %v1033_v42 = vunpack.c.2.s8 %v545_v53  ;;  %3821 = vmatpush.bf16.msra.mxu1 %v2865_v56  ;;  %v3001_v59 = vpack.c.bf16 %v2209_v55, %v2201_v33  ;;  %v1913_v39 = vcvt.s32.f32 %v889_v50  ;;  %v1041_v13 = vunpack.c.3.s8 %v545_v53  ;;  %v657_v56 = vld [vmem:[#allocation8 + $0x5e8] sm:$0xff]  ;;  %v3620_v50 = vpop.f32.mrf.mxu1 }
 0x207   :  { %v1921_v57 = vcvt.s32.f32 %v897_v0  ;;  %3833 = vmatpush.bf16.msra.mxu2 %v2937_v49  ;;  %v2793_v22 = vpack.c.bf16 %v1793_v35, %v1785_v4  ;;  %v1161_v41 = vunpack.c.2.s8 %v577_v29  ;;  %v1169_v5 = vunpack.c.3.s8 %v577_v29  ;;  %v3607_v55 = vpop.f32.mrf.mxu0  ;;  %v537_v35 = vld [vmem:[#allocation8 + $0x228] sm:$0xff] }
 0x208   :  { %v2057_v52 = vcvt.s32.f32 %v1033_v42  ;;  %3846 = vmatpush.bf16.msra.mxu3 %v3001_v59  ;;  %v2065_v32 = vcvt.s32.f32 %v1041_v13  ;;  %v3580_v23 = vadd.f32 %v6019_v46, %v6035_v34  ;;  %v745_v1 = vunpack.c.2.s8 %v473_v31 }
 0x209   :  { %v2857_v20 = vpack.c.bf16 %v1921_v57, %v1913_v39  ;;  %3809 = vmatpush.bf16.msra.mxu0 %v2793_v22  ;;  %v2185_v7 = vcvt.s32.f32 %v1161_v41  ;;  %v2193_v6 = vcvt.s32.f32 %v1169_v5  ;;  %v753_v51 = vunpack.c.3.s8 %v473_v31  ;;  %v569_v57 = vld [vmem:[#allocation8 + $0x328] sm:$0xff] }
 0x20a   :  { %v2929_v25 = vpack.c.bf16 %v2065_v32, %v2057_v52  ;;  %v6045_v11 = vadd.f32 %v6021_v8, %v3580_v23  ;;  %v873_v54 = vunpack.c.2.s8 %v505_v16  ;;  %v881_v47 = vunpack.c.3.s8 %v505_v16 }
 0x20b   :  { %3822 = vmatpush.bf16.msra.mxu1 %v2857_v20  ;;  %v2993_v27 = vpack.c.bf16 %v2193_v6, %v2185_v7  ;;  %v1769_v3 = vcvt.s32.f32 %v745_v1  ;;  %v1777_v38 = vcvt.s32.f32 %v753_v51  ;;  %v1017_v60 = vunpack.c.0.s8 %v545_v53 }
 0x20c   :  { %3834 = vmatpush.bf16.msra.mxu2 %v2929_v25  ;;  %v4120_v46 = vperm.slane %v6047_v21, 2  ;;  %v1897_v34 = vcvt.s32.f32 %v873_v54  ;;  %v1905_v12 = vcvt.s32.f32 %v881_v47  ;;  %v1025_v58 = vunpack.c.1.s8 %v545_v53 }
 0x20d   :  { %3847 = vmatpush.bf16.msra.mxu3 %v2993_v27  ;;  %v2785_v30 = vpack.c.bf16 %v1777_v38, %v1769_v3  ;;  %v2041_v48 = vcvt.s32.f32 %v1017_v60  ;;  %v1145_v44 = vunpack.c.0.s8 %v577_v29  ;;  %v1153_v8 = vunpack.c.1.s8 %v577_v29  ;;  %v6050_v60 = vpop.f32.mrf.mxu2 }
 0x20e   :  { %v2849_v15 = vpack.c.bf16 %v1905_v12, %v1897_v34  ;;  %v2049_v17 = vcvt.s32.f32 %v1025_v58  ;;  %v729_v37 = vunpack.c.0.s8 %v473_v31  ;;  %v737_v26 = vunpack.c.1.s8 %v473_v31  ;;  %v6052_v34 = vpop.f32.mrf.mxu3 }
 0x20f   :  { %3810 = vmatpush.bf16.msra.mxu0 %v2785_v30  ;;  %v2169_v43 = vcvt.s32.f32 %v1145_v44  ;;  %v2177_v33 = vcvt.s32.f32 %v1153_v8  ;;  %v857_v63 = vunpack.c.0.s8 %v505_v16  ;;  %v865_v61 = vunpack.c.1.s8 %v505_v16  ;;  %v689_v44 = vld [vmem:[#allocation8 + $0x6e8] sm:$0xff] }
 0x210   :  { %3823 = vmatpush.bf16.msra.mxu1 %v2849_v15  ;;  %v2921_v53 = vpack.c.bf16 %v2049_v17, %v2041_v48  ;;  %v1753_v0 = vcvt.s32.f32 %v729_v37  ;;  %v1761_v49 = vcvt.s32.f32 %v737_v26  ;;  %v1353_v4 = vunpack.c.2.s8 %v625_v2 }
 0x211   :  { %v2985_v29 = vpack.c.bf16 %v2177_v33, %v2169_v43  ;;  %v1881_v42 = vcvt.s32.f32 %v857_v63  ;;  %v1889_v59 = vcvt.s32.f32 %v865_v61  ;;  %v1361_v39 = vunpack.c.3.s8 %v625_v2  ;;  %v721_v63 = vld [vmem:[#allocation8 + $0x7e8] sm:$0xff] }
 0x212   :  { %3835 = vmatpush.bf16.msra.mxu2 %v2921_v53  ;;  %v2777_v13 = vpack.c.bf16 %v1761_v49, %v1753_v0  ;;  %v2377_v31 = vcvt.s32.f32 %v1353_v4  ;;  %v1481_v22 = vunpack.c.2.s8 %v657_v56  ;;  %v1489_v52 = vunpack.c.3.s8 %v657_v56  ;;  %v617_v53 = vld [vmem:[#allocation8 + $0x4a8] sm:$0xff] }
 0x213   :  { %3848 = vmatpush.bf16.msra.mxu3 %v2985_v29  ;;  %v2841_v41 = vpack.c.bf16 %v1889_v59, %v1881_v42  ;;  %v2385_v5 = vcvt.s32.f32 %v1361_v39  ;;  %v1001_v16 = vunpack.c.2.s8 %v537_v35  ;;  %v1009_v20 = vunpack.c.3.s8 %v537_v35  ;;  %v649_v42 = vld [vmem:[#allocation8 + $0x5a8] sm:$0xff] }
 0x214   :  { %3811 = vmatpush.bf16.msra.mxu0 %v2777_v13  ;;  %v2505_v32 = vcvt.s32.f32 %v1481_v22  ;;  %v2513_v23 = vcvt.s32.f32 %v1489_v52  ;;  %v1129_v7 = vunpack.c.2.s8 %v569_v57  ;;  %v1137_v6 = vunpack.c.3.s8 %v569_v57 }
 0x215   :  { %3824 = vmatpush.bf16.msra.mxu1 %v2841_v41  ;;  %v3089_v1 = vpack.c.bf16 %v2385_v5, %v2377_v31  ;;  %v2025_v51 = vcvt.s32.f32 %v1001_v16  ;;  %v2033_v25 = vcvt.s32.f32 %v1009_v20  ;;  %v1337_v54 = vunpack.c.0.s8 %v625_v2 }
 0x216   :  { %v3153_v47 = vpack.c.bf16 %v2513_v23, %v2505_v32  ;;  %v2153_v27 = vcvt.s32.f32 %v1129_v7  ;;  %v2161_v3 = vcvt.s32.f32 %v1137_v6  ;;  %v1345_v38 = vunpack.c.1.s8 %v625_v2  ;;  %v3633_v32 = vpop.f32.mrf.mxu2  ;;  %v3646_v23 = vpop.f32.mrf.mxu3 }
 0x217   :  { %v2913_v12 = vpack.c.bf16 %v2033_v25, %v2025_v51  ;;  %v2361_v58 = vcvt.s32.f32 %v1337_v54  ;;  %v1465_v30 = vunpack.c.0.s8 %v657_v56  ;;  %v1473_v48 = vunpack.c.1.s8 %v657_v56  ;;  %3812 = vmatmul.bf16.vlgmr.msra.gmra.mxu0 %v5755_v62 }
 0x218   :  { %3856 = vmatpush.bf16.msrb.mxu0 %v3089_v1  ;;  %v2977_v8 = vpack.c.bf16 %v2161_v3, %v2153_v27  ;;  %v2369_v15 = vcvt.s32.f32 %v1345_v38  ;;  %v985_v17 = vunpack.c.0.s8 %v537_v35  ;;  %v993_v37 = vunpack.c.1.s8 %v537_v35  ;;  %3825 = vmatmul.bf16.vlgmr.msra.gmra.mxu1 %v5757_v14 }
 0x219   :  { %3869 = vmatpush.bf16.msrb.mxu1 %v3153_v47  ;;  %3836 = vmatpush.bf16.msra.mxu2 %v2913_v12  ;;  %v2489_v2 = vcvt.s32.f32 %v1465_v30  ;;  %v2497_v26 = vcvt.s32.f32 %v1473_v48  ;;  %v1113_v43 = vunpack.c.0.s8 %v569_v57  ;;  %v1121_v33 = vunpack.c.1.s8 %v569_v57  ;;  %v681_v30 = vld [vmem:[#allocation8 + $0x6a8] sm:$0xff] }
 0x21a   :  { %3849 = vmatpush.bf16.msra.mxu3 %v2977_v8  ;;  %v3081_v61 = vpack.c.bf16 %v2369_v15, %v2361_v58  ;;  %v2009_v55 = vcvt.s32.f32 %v985_v17  ;;  %v2017_v56 = vcvt.s32.f32 %v993_v37  ;;  %v1609_v50 = vunpack.c.2.s8 %v689_v44 }
 0x21b   :  { %v3145_v0 = vpack.c.bf16 %v2497_v26, %v2489_v2  ;;  %v2137_v49 = vcvt.s32.f32 %v1113_v43  ;;  %v2145_v4 = vcvt.s32.f32 %v1121_v33  ;;  %v1617_v29 = vunpack.c.3.s8 %v689_v44  ;;  %v713_v43 = vld [vmem:[#allocation8 + $0x7a8] sm:$0xff] }
 0x21c   :  { %3857 = vmatpush.bf16.msrb.mxu0 %v3081_v61  ;;  %v2905_v35 = vpack.c.bf16 %v2017_v56, %v2009_v55  ;;  %v2633_v59 = vcvt.s32.f32 %v1609_v50  ;;  %v1737_v39 = vunpack.c.2.s8 %v721_v63  ;;  %v1745_v13 = vunpack.c.3.s8 %v721_v63  ;;  %v609_v56 = vld [vmem:[#allocation8 + $0x468] sm:$0xff] }
 0x21d   :  { %3870 = vmatpush.bf16.msrb.mxu1 %v3145_v0  ;;  %v2969_v31 = vpack.c.bf16 %v2145_v4, %v2137_v49  ;;  %v2641_v57 = vcvt.s32.f32 %v1617_v29  ;;  %v1321_v22 = vunpack.c.2.s8 %v617_v53  ;;  %v1329_v52 = vunpack.c.3.s8 %v617_v53 }
 0x21e   :  { %3837 = vmatpush.bf16.msra.mxu2 %v2905_v35  ;;  %v2761_v41 = vcvt.s32.f32 %v1737_v39  ;;  %v2769_v5 = vcvt.s32.f32 %v1745_v13  ;;  %v1449_v16 = vunpack.c.2.s8 %v649_v42  ;;  %v1457_v20 = vunpack.c.3.s8 %v649_v42 }
 0x21f   :  { %3850 = vmatpush.bf16.msra.mxu3 %v2969_v31  ;;  %v3217_v7 = vpack.c.bf16 %v2641_v57, %v2633_v59  ;;  %v2345_v6 = vcvt.s32.f32 %v1321_v22  ;;  %v2353_v1 = vcvt.s32.f32 %v1329_v52  ;;  %v1593_v51 = vunpack.c.0.s8 %v689_v44 }
 0x220   :  { %v3281_v25 = vpack.c.bf16 %v2769_v5, %v2761_v41  ;;  %v2473_v54 = vcvt.s32.f32 %v1449_v16  ;;  %v2481_v47 = vcvt.s32.f32 %v1457_v20  ;;  %v1601_v27 = vunpack.c.1.s8 %v689_v44 }
 0x221   :  { %v3073_v3 = vpack.c.bf16 %v2353_v1, %v2345_v6  ;;  %v2617_v38 = vcvt.s32.f32 %v1593_v51  ;;  %v1721_v12 = vunpack.c.0.s8 %v721_v63  ;;  %v1729_v58 = vunpack.c.1.s8 %v721_v63  ;;  %3838 = vmatmul.bf16.vlgmr.msra.gmra.mxu2 %v5800_v9 }
 0x222   :  { %3882 = vmatpush.bf16.msrb.mxu2 %v3217_v7  ;;  %v3137_v48 = vpack.c.bf16 %v2481_v47, %v2473_v54  ;;  %v2625_v8 = vcvt.s32.f32 %v1601_v27  ;;  %v6059_v15 = vadd.f32 %v6040_v28, %v6038_v24  ;;  %v1305_v17 = vunpack.c.0.s8 %v617_v53  ;;  %3851 = vmatmul.bf16.vlgmr.msra.gmra.mxu3 %v5802_v10  ;;  %v641_v28 = vld [vmem:[#allocation8 + $0x568] sm:$0xff] }
 0x223   :  { %3895 = vmatpush.bf16.msrb.mxu3 %v3281_v25  ;;  %3858 = vmatpush.bf16.msrb.mxu0 %v3073_v3  ;;  %v2745_v44 = vcvt.s32.f32 %v1721_v12  ;;  %v2753_v37 = vcvt.s32.f32 %v1729_v58  ;;  %v1313_v2 = vunpack.c.1.s8 %v617_v53  ;;  %v1433_v26 = vunpack.c.0.s8 %v649_v42  ;;  %v673_v12 = vld [vmem:[#allocation8 + $0x668] sm:$0xff] }
 0x224   :  { %3871 = vmatpush.bf16.msrb.mxu1 %v3137_v48  ;;  %v3209_v33 = vpack.c.bf16 %v2625_v8, %v2617_v38  ;;  %v2329_v63 = vcvt.s32.f32 %v1305_v17  ;;  %v1441_v61 = vunpack.c.1.s8 %v649_v42  ;;  %v1577_v55 = vunpack.c.2.s8 %v681_v30 }
 0x225   :  { %v3273_v50 = vpack.c.bf16 %v2753_v37, %v2745_v44  ;;  %v2337_v0 = vcvt.s32.f32 %v1313_v2  ;;  %v2457_v49 = vcvt.s32.f32 %v1433_v26  ;;  %v1585_v24 = vunpack.c.3.s8 %v681_v30  ;;  %v705_v44 = vld [vmem:[#allocation8 + $0x768] sm:$0xff] }
 0x226   :  { %3883 = vmatpush.bf16.msrb.mxu2 %v3209_v33  ;;  %v2465_v4 = vcvt.s32.f32 %v1441_v61  ;;  %v2601_v29 = vcvt.s32.f32 %v1577_v55  ;;  %v1705_v35 = vunpack.c.2.s8 %v713_v43  ;;  %v1713_v59 = vunpack.c.3.s8 %v713_v43  ;;  %v601_v33 = vld [vmem:[#allocation8 + $0x428] sm:$0xff] }
 0x227   :  { %3896 = vmatpush.bf16.msrb.mxu3 %v3273_v50  ;;  %v3065_v53 = vpack.c.bf16 %v2337_v0, %v2329_v63  ;;  %v2609_v39 = vcvt.s32.f32 %v1585_v24  ;;  %v1289_v13 = vunpack.c.2.s8 %v609_v56  ;;  %v1297_v31 = vunpack.c.3.s8 %v609_v56  ;;  %v633_v24 = vld [vmem:[#allocation8 + $0x528] sm:$0xff] }
 0x228   :  { %v3129_v57 = vpack.c.bf16 %v2465_v4, %v2457_v49  ;;  %v2729_v22 = vcvt.s32.f32 %v1705_v35  ;;  %v2737_v42 = vcvt.s32.f32 %v1713_v59  ;;  %v1417_v52 = vunpack.c.2.s8 %v641_v28  ;;  %v6062_v4 = vpop.f32.mrf.mxu0 }
 0x229   :  { %3859 = vmatpush.bf16.msrb.mxu0 %v3065_v53  ;;  %v3201_v41 = vpack.c.bf16 %v2609_v39, %v2601_v29  ;;  %v2313_v5 = vcvt.s32.f32 %v1289_v13  ;;  %v2321_v16 = vcvt.s32.f32 %v1297_v31  ;;  %v1425_v20 = vunpack.c.3.s8 %v641_v28  ;;  %v6064_v29 = vpop.f32.mrf.mxu1 }
 0x22a   :  { %3872 = vmatpush.bf16.msrb.mxu1 %v3129_v57  ;;  %v3265_v32 = vpack.c.bf16 %v2737_v42, %v2729_v22  ;;  %v2441_v23 = vcvt.s32.f32 %v1417_v52  ;;  %v1561_v7 = vunpack.c.0.s8 %v681_v30  ;;  %v1569_v6 = vunpack.c.1.s8 %v681_v30 }
 0x22b   :  { %3884 = vmatpush.bf16.msrb.mxu2 %v3201_v41  ;;  %v3057_v1 = vpack.c.bf16 %v2321_v16, %v2313_v5  ;;  %v2449_v51 = vcvt.s32.f32 %v1425_v20  ;;  %v1689_v25 = vunpack.c.0.s8 %v713_v43  ;;  %v1697_v54 = vunpack.c.1.s8 %v713_v43 }
 0x22c   :  { %3897 = vmatpush.bf16.msrb.mxu3 %v3265_v32  ;;  %v2585_v47 = vcvt.s32.f32 %v1561_v7  ;;  %v2593_v27 = vcvt.s32.f32 %v1569_v6  ;;  %v1273_v3 = vunpack.c.0.s8 %v609_v56  ;;  %v1281_v38 = vunpack.c.1.s8 %v609_v56 }
 0x22d   :  { %3860 = vmatpush.bf16.msrb.mxu0 %v3057_v1  ;;  %v3121_v58 = vpack.c.bf16 %v2449_v51, %v2441_v23  ;;  %v2713_v48 = vcvt.s32.f32 %v1689_v25  ;;  %v2721_v8 = vcvt.s32.f32 %v1697_v54  ;;  %v1401_v17 = vunpack.c.0.s8 %v641_v28  ;;  %v498_v54 = vld [vmem:[#allocation8 + $0xf0] sm:$0xff] }
 0x22e   :  { %v3193_v37 = vpack.c.bf16 %v2593_v27, %v2585_v47  ;;  %v2297_v2 = vcvt.s32.f32 %v1273_v3  ;;  %v2305_v30 = vcvt.s32.f32 %v1281_v38  ;;  %v1409_v26 = vunpack.c.1.s8 %v641_v28  ;;  %v530_v38 = vld [vmem:[#allocation8 + $0x1f0] sm:$0xff] }
 0x22f   :  { %3873 = vmatpush.bf16.msrb.mxu1 %v3121_v58  ;;  %v3257_v63 = vpack.c.bf16 %v2721_v8, %v2713_v48  ;;  %v2425_v43 = vcvt.s32.f32 %v1401_v17  ;;  %v1545_v61 = vunpack.c.2.s8 %v673_v12  ;;  %v1553_v55 = vunpack.c.3.s8 %v673_v12 }
 0x230   :  { %3885 = vmatpush.bf16.msrb.mxu2 %v3193_v37  ;;  %v3049_v50 = vpack.c.bf16 %v2305_v30, %v2297_v2  ;;  %v2433_v56 = vcvt.s32.f32 %v1409_v26  ;;  %v1673_v0 = vunpack.c.2.s8 %v705_v44  ;;  %v1681_v49 = vunpack.c.3.s8 %v705_v44  ;;  %v665_v37 = vld [vmem:[#allocation8 + $0x628] sm:$0xff] }
 0x231   :  { %3898 = vmatpush.bf16.msrb.mxu3 %v3257_v63  ;;  %v2569_v35 = vcvt.s32.f32 %v1545_v61  ;;  %v2577_v59 = vcvt.s32.f32 %v1553_v55  ;;  %v3632_v28 = vadd.f32 %v6050_v60, %v6059_v15  ;;  %v1257_v53 = vunpack.c.2.s8 %v601_v33  ;;  %v3672_v2 = vpop.f32.mrf.mxu1 }
 0x232   :  { %3861 = vmatpush.bf16.msrb.mxu0 %v3049_v50  ;;  %v3113_v39 = vpack.c.bf16 %v2433_v56, %v2425_v43  ;;  %v2697_v13 = vcvt.s32.f32 %v1673_v0  ;;  %v2705_v31 = vcvt.s32.f32 %v1681_v49  ;;  %v1265_v57 = vunpack.c.3.s8 %v601_v33  ;;  %v697_v56 = vld [vmem:[#allocation8 + $0x728] sm:$0xff] }
 0x233   :  { %v3185_v22 = vpack.c.bf16 %v2577_v59, %v2569_v35  ;;  %v6069_v42 = vadd.f32 %v6052_v34, %v3632_v28  ;;  %v2281_v52 = vcvt.s32.f32 %v1257_v53  ;;  %v1385_v41 = vunpack.c.2.s8 %v633_v24 }
 0x234   :  { %3874 = vmatpush.bf16.msrb.mxu1 %v3113_v39  ;;  %v3249_v5 = vpack.c.bf16 %v2705_v31, %v2697_v13  ;;  %v2289_v16 = vcvt.s32.f32 %v1265_v57  ;;  %v1393_v20 = vunpack.c.3.s8 %v633_v24  ;;  %v1529_v32 = vunpack.c.0.s8 %v673_v12 }
 0x235   :  { %3886 = vmatpush.bf16.msrb.mxu2 %v3185_v22  ;;  %v2409_v23 = vcvt.s32.f32 %v1385_v41  ;;  %v1537_v60 = vunpack.c.1.s8 %v673_v12  ;;  %v1657_v15 = vunpack.c.0.s8 %v705_v44  ;;  %v1665_v7 = vunpack.c.1.s8 %v705_v44  ;;  %v3659_v12 = vpop.f32.mrf.mxu0 }
 0x236   :  { %3899 = vmatpush.bf16.msrb.mxu3 %v3249_v5  ;;  %v3041_v6 = vpack.c.bf16 %v2289_v16, %v2281_v52  ;;  %v2417_v1 = vcvt.s32.f32 %v1393_v20  ;;  %v2553_v51 = vcvt.s32.f32 %v1529_v32  ;;  %v1241_v25 = vunpack.c.0.s8 %v601_v33 }
 0x237   :  { %v2561_v34 = vcvt.s32.f32 %v1537_v60  ;;  %v2681_v47 = vcvt.s32.f32 %v1657_v15  ;;  %v2689_v27 = vcvt.s32.f32 %v1665_v7  ;;  %v1249_v3 = vunpack.c.1.s8 %v601_v33  ;;  %v6071_v60 = vpop.f32.mrf.mxu2  ;;  %v6073_v15 = vpop.f32.mrf.mxu3 }
 0x238   :  { %3862 = vmatpush.bf16.msrb.mxu0 %v3041_v6  ;;  %v3105_v58 = vpack.c.bf16 %v2417_v1, %v2409_v23  ;;  %v2265_v48 = vcvt.s32.f32 %v1241_v25  ;;  %v1369_v8 = vunpack.c.0.s8 %v633_v24  ;;  %v1377_v17 = vunpack.c.1.s8 %v633_v24  ;;  %v562_v25 = vld [vmem:[#allocation8 + $0x2f0] sm:$0xff] }
 0x239   :  { %v3177_v44 = vpack.c.bf16 %v2561_v34, %v2553_v51  ;;  %v3241_v30 = vpack.c.bf16 %v2689_v27, %v2681_v47  ;;  %v2273_v26 = vcvt.s32.f32 %v1249_v3  ;;  %v842_v63 = vunpack.c.2.s8 %v498_v54  ;;  %v594_v3 = vld [vmem:[#allocation8 + $0x3f0] sm:$0xff] }
 0x23a   :  { %3875 = vmatpush.bf16.msrb.mxu1 %v3105_v58  ;;  %v2393_v43 = vcvt.s32.f32 %v1369_v8  ;;  %v2401_v61 = vcvt.s32.f32 %v1377_v17  ;;  %v850_v55 = vunpack.c.3.s8 %v498_v54  ;;  %v970_v50 = vunpack.c.2.s8 %v530_v38 }
 0x23b   :  { %3887 = vmatpush.bf16.msrb.mxu2 %v3177_v44  ;;  %3900 = vmatpush.bf16.msrb.mxu3 %v3241_v30  ;;  %v3033_v33 = vpack.c.bf16 %v2273_v26, %v2265_v48  ;;  %v1866_v0 = vcvt.s32.f32 %v842_v63  ;;  %v978_v49 = vunpack.c.3.s8 %v530_v38  ;;  %v1513_v35 = vunpack.c.2.s8 %v665_v37  ;;  %v490_v30 = vld [vmem:[#allocation8 + $0xb0] sm:$0xff] }
 0x23c   :  { %v3097_v24 = vpack.c.bf16 %v2401_v61, %v2393_v43  ;;  %v1874_v59 = vcvt.s32.f32 %v850_v55  ;;  %v1994_v28 = vcvt.s32.f32 %v970_v50  ;;  %v1521_v53 = vunpack.c.3.s8 %v665_v37 }
 0x23d   :  { %3863 = vmatpush.bf16.msrb.mxu0 %v3033_v33  ;;  %v2002_v39 = vcvt.s32.f32 %v978_v49  ;;  %v2537_v13 = vcvt.s32.f32 %v1513_v35  ;;  %v1641_v31 = vunpack.c.2.s8 %v697_v56  ;;  %v1649_v57 = vunpack.c.3.s8 %v697_v56 }
 0x23e   :  { %3876 = vmatpush.bf16.msrb.mxu1 %v3097_v24  ;;  %v2834_v22 = vpack.c.bf16 %v1874_v59, %v1866_v0  ;;  %v2545_v52 = vcvt.s32.f32 %v1521_v53  ;;  %v826_v41 = vunpack.c.0.s8 %v498_v54  ;;  %v834_v5 = vunpack.c.1.s8 %v498_v54 }
 0x23f   :  { %v2898_v16 = vpack.c.bf16 %v2002_v39, %v1994_v28  ;;  %v2665_v20 = vcvt.s32.f32 %v1641_v31  ;;  %v2673_v32 = vcvt.s32.f32 %v1649_v57  ;;  %v954_v23 = vunpack.c.0.s8 %v530_v38  ;;  %v3698_v31 = vpop.f32.mrf.mxu3 }
 0x240   :  { %v3169_v7 = vpack.c.bf16 %v2545_v52, %v2537_v13  ;;  %v1850_v6 = vcvt.s32.f32 %v826_v41  ;;  %v1858_v1 = vcvt.s32.f32 %v834_v5  ;;  %v962_v51 = vunpack.c.1.s8 %v530_v38  ;;  %3864 = vmatmul.bf16.vlgmr.msrb.gmra.mxu0 %v5854_v18  ;;  %v3685_v13 = vpop.f32.mrf.mxu2 }
 0x241   :  { %3908 = vmatpush.bf16.msra.mxu0 %v2834_v22  ;;  %v3233_v34 = vpack.c.bf16 %v2673_v32, %v2665_v20  ;;  %v1978_v47 = vcvt.s32.f32 %v954_v23  ;;  %v1497_v54 = vunpack.c.0.s8 %v665_v37  ;;  %v1505_v27 = vunpack.c.1.s8 %v665_v37  ;;  %3877 = vmatmul.bf16.vlgmr.msrb.gmra.mxu1 %v5856_v36  ;;  %v522_v37 = vld [vmem:[#allocation8 + $0x1b0] sm:$0xff] }
 0x242   :  { %3921 = vmatpush.bf16.msra.mxu1 %v2898_v16  ;;  %3888 = vmatpush.bf16.msrb.mxu2 %v3169_v7  ;;  %v2826_v58 = vpack.c.bf16 %v1858_v1, %v1850_v6  ;;  %v1986_v48 = vcvt.s32.f32 %v962_v51  ;;  %v1625_v8 = vunpack.c.0.s8 %v697_v56  ;;  %v1633_v17 = vunpack.c.1.s8 %v697_v56  ;;  %v554_v51 = vld [vmem:[#allocation8 + $0x2b0] sm:$0xff] }
 0x243   :  { %3901 = vmatpush.bf16.msrb.mxu3 %v3233_v34  ;;  %v2521_v12 = vcvt.s32.f32 %v1497_v54  ;;  %v2529_v2 = vcvt.s32.f32 %v1505_v27  ;;  %v1098_v38 = vunpack.c.2.s8 %v562_v25  ;;  %v1106_v44 = vunpack.c.3.s8 %v562_v25 }
 0x244   :  { %v2890_v26 = vpack.c.bf16 %v1986_v48, %v1978_v47  ;;  %v2649_v63 = vcvt.s32.f32 %v1625_v8  ;;  %v2657_v43 = vcvt.s32.f32 %v1633_v17  ;;  %v1226_v61 = vunpack.c.2.s8 %v594_v3  ;;  %v586_v17 = vld [vmem:[#allocation8 + $0x3b0] sm:$0xff] }
 0x245   :  { %3909 = vmatpush.bf16.msra.mxu0 %v2826_v58  ;;  %v3161_v55 = vpack.c.bf16 %v2529_v2, %v2521_v12  ;;  %v2122_v50 = vcvt.s32.f32 %v1098_v38  ;;  %v2130_v33 = vcvt.s32.f32 %v1106_v44  ;;  %v1234_v0 = vunpack.c.3.s8 %v594_v3  ;;  %v482_v44 = vld [vmem:[#allocation8 + $0x70] sm:$0xff] }
 0x246   :  { %3922 = vmatpush.bf16.msra.mxu1 %v2890_v26  ;;  %v3225_v49 = vpack.c.bf16 %v2657_v43, %v2649_v63  ;;  %v2250_v35 = vcvt.s32.f32 %v1226_v61  ;;  %v810_v56 = vunpack.c.2.s8 %v490_v30  ;;  %v818_v24 = vunpack.c.3.s8 %v490_v30  ;;  %v514_v43 = vld [vmem:[#allocation8 + $0x170] sm:$0xff] }
 0x247   :  { %3889 = vmatpush.bf16.msrb.mxu2 %v3161_v55  ;;  %v2962_v59 = vpack.c.bf16 %v2130_v33, %v2122_v50  ;;  %v2258_v28 = vcvt.s32.f32 %v1234_v0  ;;  %v938_v53 = vunpack.c.2.s8 %v522_v37  ;;  %v946_v39 = vunpack.c.3.s8 %v522_v37 }
 0x248   :  { %3902 = vmatpush.bf16.msrb.mxu3 %v3225_v49  ;;  %v1834_v57 = vcvt.s32.f32 %v810_v56  ;;  %v1842_v22 = vcvt.s32.f32 %v818_v24  ;;  %v1082_v52 = vunpack.c.0.s8 %v562_v25  ;;  %v1090_v41 = vunpack.c.1.s8 %v562_v25 }
 0x249   :  { %v3026_v5 = vpack.c.bf16 %v2258_v28, %v2250_v35  ;;  %v1962_v16 = vcvt.s32.f32 %v938_v53  ;;  %v1970_v20 = vcvt.s32.f32 %v946_v39  ;;  %v1210_v32 = vunpack.c.0.s8 %v594_v3 }
 0x24a   :  { %3890 = vmatmul.bf16.vlgmr.msrb.gmra.mxu2 %v5864_v45  ;;  %v2818_v23 = vpack.c.bf16 %v1842_v22, %v1834_v57  ;;  %v2106_v7 = vcvt.s32.f32 %v1082_v52  ;;  %v2114_v6 = vcvt.s32.f32 %v1090_v41  ;;  %v1218_v1 = vunpack.c.1.s8 %v594_v3 }
 0x24b   :  { %3934 = vmatpush.bf16.msra.mxu2 %v2962_v59  ;;  %v2882_v34 = vpack.c.bf16 %v1970_v20, %v1962_v16  ;;  %v2234_v47 = vcvt.s32.f32 %v1210_v32  ;;  %v3658_v54 = vadd.f32 %v6062_v4, %v6069_v42  ;;  %v794_v27 = vunpack.c.0.s8 %v490_v30  ;;  %3903 = vmatmul.bf16.vlgmr.msrb.gmra.mxu3 %v5866_v19 }
 0x24c   :  { %3947 = vmatpush.bf16.msra.mxu3 %v3026_v5  ;;  %3910 = vmatpush.bf16.msra.mxu0 %v2818_v23  ;;  %v2954_v25 = vpack.c.bf16 %v2114_v6, %v2106_v7  ;;  %v2242_v58 = vcvt.s32.f32 %v1218_v1  ;;  %v802_v48 = vunpack.c.1.s8 %v490_v30  ;;  %v922_v8 = vunpack.c.0.s8 %v522_v37  ;;  %v546_v6 = vld [vmem:[#allocation8 + $0x270] sm:$0xff] }
 0x24d   :  { %3923 = vmatpush.bf16.msra.mxu1 %v2882_v34  ;;  %v6082_v12 = vadd.f32 %v6064_v29, %v3658_v54  ;;  %v1818_v3 = vcvt.s32.f32 %v794_v27  ;;  %v930_v2 = vunpack.c.1.s8 %v522_v37  ;;  %v1066_v38 = vunpack.c.2.s8 %v554_v51  ;;  %v578_v27 = vld [vmem:[#allocation8 + $0x370] sm:$0xff] }
 0x24e   :  { %v3018_v26 = vpack.c.bf16 %v2242_v58, %v2234_v47  ;;  %v1826_v4 = vcvt.s32.f32 %v802_v48  ;;  %v1946_v42 = vcvt.s32.f32 %v922_v8  ;;  %v1074_v63 = vunpack.c.3.s8 %v554_v51 }
 0x24f   :  { %3935 = vmatpush.bf16.msra.mxu2 %v2954_v25  ;;  %v1954_v61 = vcvt.s32.f32 %v930_v2  ;;  %v2090_v55 = vcvt.s32.f32 %v1066_v38  ;;  %v1194_v50 = vunpack.c.2.s8 %v586_v17  ;;  %v1202_v30 = vunpack.c.3.s8 %v586_v17 }
 0x250   :  { %3948 = vmatpush.bf16.msra.mxu3 %v3018_v26  ;;  %v2810_v33 = vpack.c.bf16 %v1826_v4, %v1818_v3  ;;  %v2098_v0 = vcvt.s32.f32 %v1074_v63  ;;  %v778_v49 = vunpack.c.2.s8 %v482_v44  ;;  %v786_v29 = vunpack.c.3.s8 %v482_v44 }
 0x251   :  { %v2874_v35 = vpack.c.bf16 %v1954_v61, %v1946_v42  ;;  %v2218_v56 = vcvt.s32.f32 %v1194_v50  ;;  %v2226_v37 = vcvt.s32.f32 %v1202_v30  ;;  %v906_v24 = vunpack.c.2.s8 %v514_v43  ;;  %v474_v42 = vld [vmem:[#allocation8 + $0x30] sm:$0xff] }
 0x252   :  { %3911 = vmatpush.bf16.msra.mxu0 %v2810_v33  ;;  %v2946_v59 = vpack.c.bf16 %v2098_v0, %v2090_v55  ;;  %v1802_v28 = vcvt.s32.f32 %v778_v49  ;;  %v1810_v53 = vcvt.s32.f32 %v786_v29  ;;  %v914_v39 = vunpack.c.3.s8 %v514_v43 }
 0x253   :  { %3924 = vmatpush.bf16.msra.mxu1 %v2874_v35  ;;  %v3010_v13 = vpack.c.bf16 %v2226_v37, %v2218_v56  ;;  %v1930_v31 = vcvt.s32.f32 %v906_v24  ;;  %v1050_v57 = vunpack.c.0.s8 %v554_v51  ;;  %v1058_v22 = vunpack.c.1.s8 %v554_v51 }
 0x254   :  { %3936 = vmatpush.bf16.msra.mxu2 %v2946_v59  ;;  %v2802_v52 = vpack.c.bf16 %v1810_v53, %v1802_v28  ;;  %v1938_v41 = vcvt.s32.f32 %v914_v39  ;;  %v1178_v5 = vunpack.c.0.s8 %v586_v17  ;;  %v1186_v16 = vunpack.c.1.s8 %v586_v17 }
 0x255   :  { %3949 = vmatpush.bf16.msra.mxu3 %v3010_v13  ;;  %v2074_v20 = vcvt.s32.f32 %v1050_v57  ;;  %v2082_v32 = vcvt.s32.f32 %v1058_v22  ;;  %v762_v23 = vunpack.c.0.s8 %v482_v44  ;;  %v770_v7 = vunpack.c.1.s8 %v482_v44  ;;  %v6093_v22 = vpop.f32.mrf.mxu1 }
 0x256   :  { %3912 = vmatpush.bf16.msra.mxu0 %v2802_v52  ;;  %v2866_v1 = vpack.c.bf16 %v1938_v41, %v1930_v31  ;;  %v2202_v34 = vcvt.s32.f32 %v1178_v5  ;;  %v2210_v47 = vcvt.s32.f32 %v1186_v16  ;;  %v890_v54 = vunpack.c.0.s8 %v514_v43 }
 0x257   :  { %v2938_v25 = vpack.c.bf16 %v2082_v32, %v2074_v20  ;;  %v1786_v58 = vcvt.s32.f32 %v762_v23  ;;  %v1794_v51 = vcvt.s32.f32 %v770_v7  ;;  %v898_v48 = vunpack.c.1.s8 %v514_v43  ;;  %v506_v43 = vld [vmem:[#allocation8 + $0x130] sm:$0xff] }
 0x258   :  { %3925 = vmatpush.bf16.msra.mxu1 %v2866_v1  ;;  %v3002_v8 = vpack.c.bf16 %v2210_v47, %v2202_v34  ;;  %v1914_v3 = vcvt.s32.f32 %v890_v54  ;;  %v1034_v17 = vunpack.c.2.s8 %v546_v6  ;;  %v1042_v2 = vunpack.c.3.s8 %v546_v6 }
 0x259   :  { %3937 = vmatpush.bf16.msra.mxu2 %v2938_v25  ;;  %v2794_v38 = vpack.c.bf16 %v1794_v51, %v1786_v58  ;;  %v1922_v26 = vcvt.s32.f32 %v898_v48  ;;  %v1162_v44 = vunpack.c.2.s8 %v578_v27  ;;  %v1170_v4 = vunpack.c.3.s8 %v578_v27  ;;  %v658_v58 = vld [vmem:[#allocation8 + $0x5f0] sm:$0xff] }
 0x25a   :  { %3950 = vmatpush.bf16.msra.mxu3 %v3002_v8  ;;  %v2058_v63 = vcvt.s32.f32 %v1034_v17  ;;  %v2066_v61 = vcvt.s32.f32 %v1042_v2  ;;  %v3684_v55 = vadd.f32 %v6071_v60, %v6082_v12  ;;  %v4121_v50 = vperm.slane %v6047_v21, 3  ;;  %v538_v8 = vld [vmem:[#allocation8 + $0x230] sm:$0xff] }
 0x25b   :  { %3913 = vmatpush.bf16.msra.mxu0 %v2794_v38  ;;  %v2858_v30 = vpack.c.bf16 %v1922_v26, %v1914_v3  ;;  %v2186_v33 = vcvt.s32.f32 %v1162_v44  ;;  %v2194_v0 = vcvt.s32.f32 %v1170_v4  ;;  %v746_v35 = vunpack.c.2.s8 %v474_v42 }
 0x25c   :  { %v2930_v49 = vpack.c.bf16 %v2066_v61, %v2058_v63  ;;  %v3697_v29 = vadd.f32 %v6073_v15, %v3684_v55  ;;  %v754_v37 = vunpack.c.3.s8 %v474_v42  ;;  %v874_v24 = vunpack.c.2.s8 %v506_v43  ;;  %v6091_v15 = vpop.f32.mrf.mxu0  ;;  %v570_v63 = vld [vmem:[#allocation8 + $0x330] sm:$0xff] }
 0x25d   :  { %3926 = vmatpush.bf16.msra.mxu1 %v2858_v30  ;;  %v2994_v56 = vpack.c.bf16 %v2194_v0, %v2186_v33  ;;  %v882_v59 = vunpack.c.3.s8 %v506_v43  ;;  %v4136_v60 = vmul.f32 %v4120_v46, %v6045_v11  ;;  %v1770_v28 = vcvt.s32.f32 %v746_v35  ;;  %v626_v46 = vld [vmem:[#allocation8 + $0x4f0] sm:$0xff]  ;;  %v3724_v44 = vpop.f32.mrf.mxu1  ;;  %v6097_v33 = vld [vmem:[#allocation11] sm:$0xff] }
 0x25e   :  { %3938 = vmatpush.bf16.msra.mxu2 %v2930_v49  ;;  %v4137_v12 = vmul.f32 %v4121_v50, %v3697_v29  ;;  %v1018_v53 = vunpack.c.0.s8 %v546_v6  ;;  %v1778_v39 = vcvt.s32.f32 %v754_v37  ;;  %v1898_v13 = vcvt.s32.f32 %v874_v24 }
 0x25f   :  { %3951 = vmatpush.bf16.msra.mxu3 %v2994_v56  ;;  %v1906_v31 = vcvt.s32.f32 %v882_v59  ;;  %v1026_v57 = vunpack.c.1.s8 %v546_v6  ;;  %v1146_v11 = vunpack.c.0.s8 %v578_v27  ;;  %v1154_v32 = vunpack.c.1.s8 %v578_v27 }
 0x260   :  { %v6095_v52 = vpack.c.bf16 %v4137_v12, %v4136_v60  ;;  %v2042_v41 = vcvt.s32.f32 %v1018_v53  ;;  %v2786_v5 = vpack.c.bf16 %v1778_v39, %v1770_v28  ;;  %v730_v7 = vunpack.c.0.s8 %v474_v42 }
 0x261   :  { %v2850_v16 = vpack.c.bf16 %v1906_v31, %v1898_v13  ;;  %v2050_v21 = vcvt.s32.f32 %v1026_v57  ;;  %v2170_v23 = vcvt.s32.f32 %v1146_v11  ;;  %v738_v1 = vunpack.c.1.s8 %v474_v42  ;;  %v6103_v31 = vpop.f32.mrf.mxu2  ;;  %v6105_v57 = vpop.f32.mrf.mxu3  ;;  %v690_v11 = vld [vmem:[#allocation8 + $0x6f0] sm:$0xff] }
 0x262   :  { %3914 = vmatpush.bf16.msra.mxu0 %v2786_v5  ;;  %v858_v6 = vunpack.c.0.s8 %v506_v43  ;;  %v2178_v34 = vcvt.s32.f32 %v1154_v32  ;;  %v1754_v47 = vcvt.s32.f32 %v730_v7  ;;  %v866_v54 = vunpack.c.1.s8 %v506_v43  ;;  %v722_v7 = vld [vmem:[#allocation8 + $0x7f0] sm:$0xff] }
 0x263   :  { %3927 = vmatpush.bf16.msra.mxu1 %v2850_v16  ;;  %v2922_v20 = vpack.c.bf16 %v2050_v21, %v2042_v41  ;;  %v1354_v25 = vunpack.c.2.s8 %v626_v46  ;;  %v1762_v51 = vcvt.s32.f32 %v738_v1  ;;  %v1362_v2 = vunpack.c.3.s8 %v626_v46 }
 0x264   :  { %v1882_v48 = vcvt.s32.f32 %v858_v6  ;;  %v2986_v3 = vpack.c.bf16 %v2178_v34, %v2170_v23  ;;  %v1890_v17 = vcvt.s32.f32 %v866_v54  ;;  %v3711_v26 = vpop.f32.mrf.mxu0  ;;  %v1482_v4 = vunpack.c.2.s8 %v658_v58  ;;  %v6107_v54 = vld [vmem:[#allocation8 + $0x4b0] sm:$0xff] }
 0x265   :  { %3939 = vmatpush.bf16.msra.mxu2 %v2922_v20  ;;  %v2378_v38 = vcvt.s32.f32 %v1354_v25  ;;  %v2778_v27 = vpack.c.bf16 %v1762_v51, %v1754_v47  ;;  %v2386_v61 = vcvt.s32.f32 %v1362_v2  ;;  %v1490_v55 = vunpack.c.3.s8 %v658_v58  ;;  %v650_v26 = vld [vmem:[#allocation8 + $0x5b0] sm:$0xff] }
 0x266   :  { %3952 = vmatpush.bf16.msra.mxu3 %v2986_v3  ;;  %v2842_v42 = vpack.c.bf16 %v1890_v17, %v1882_v48  ;;  %v1002_v50 = vunpack.c.2.s8 %v538_v8  ;;  %v2506_v43 = vcvt.s32.f32 %v1482_v4  ;;  %v1010_v30 = vunpack.c.3.s8 %v538_v8 }
 0x267   :  { %3915 = vmatpush.bf16.msra.mxu0 %v2778_v27  ;;  %v3090_v0 = vpack.c.bf16 %v2386_v61, %v2378_v38  ;;  %v2514_v49 = vcvt.s32.f32 %v1490_v55  ;;  %v1130_v35 = vunpack.c.2.s8 %v570_v63  ;;  %v1138_v37 = vunpack.c.3.s8 %v570_v63 }
 0x268   :  { %3928 = vmatpush.bf16.msra.mxu1 %v2842_v42  ;;  %v2026_v29 = vcvt.s32.f32 %v1002_v50  ;;  %v2034_v56 = vcvt.s32.f32 %v1010_v30  ;;  %v1338_v60 = vunpack.c.0.s8 %v626_v46  ;;  %v1346_v12 = vunpack.c.1.s8 %v626_v46 }
 0x269   :  { %v3154_v24 = vpack.c.bf16 %v2514_v49, %v2506_v43  ;;  %v2154_v59 = vcvt.s32.f32 %v1130_v35  ;;  %v4148_v28 = vperm.slane %v6097_v33, 0  ;;  %v4149_v53 = vperm.slane %v6097_v33, 1  ;;  %v3737_v49 = vpop.f32.mrf.mxu2 }
 0x26a   :  { %v2914_v39 = vpack.c.bf16 %v2034_v56, %v2026_v29  ;;  %v2162_v13 = vcvt.s32.f32 %v1138_v37  ;;  %3916 = vmatmul.bf16.vlgmr.msra.gmra.mxu0 %v5755_v62  ;;  %v2362_v41 = vcvt.s32.f32 %v1338_v60  ;;  %v2370_v5 = vcvt.s32.f32 %v1346_v12  ;;  %v3750_v29 = vpop.f32.mrf.mxu3 }
 0x26b   :  { %3960 = vmatpush.bf16.msrb.mxu0 %v3090_v0  ;;  %3929 = vmatmul.bf16.vlgmr.msra.gmra.mxu1 %v5757_v14  ;;  %v1466_v16 = vunpack.c.0.s8 %v658_v58  ;;  %v1474_v21 = vunpack.c.1.s8 %v658_v58  ;;  %v986_v20 = vunpack.c.0.s8 %v538_v8  ;;  %v994_v32 = vunpack.c.1.s8 %v538_v8 }
 0x26c   :  { %3973 = vmatpush.bf16.msrb.mxu1 %v3154_v24  ;;  %3940 = vmatpush.bf16.msra.mxu2 %v2914_v39  ;;  %v2978_v46 = vpack.c.bf16 %v2162_v13, %v2154_v59  ;;  %v1114_v23 = vunpack.c.0.s8 %v570_v63  ;;  %v3082_v1 = vpack.c.bf16 %v2370_v5, %v2362_v41  ;;  %v1122_v47 = vunpack.c.1.s8 %v570_v63 }
 0x26d   :  { %v2490_v6 = vcvt.s32.f32 %v1466_v16  ;;  %v2498_v34 = vcvt.s32.f32 %v1474_v21  ;;  %v2010_v25 = vcvt.s32.f32 %v986_v20  ;;  %v2018_v51 = vcvt.s32.f32 %v994_v32  ;;  %v682_v21 = vld [vmem:[#allocation8 + $0x6b0] sm:$0xff] }
 0x26e   :  { %3953 = vmatpush.bf16.msra.mxu3 %v2978_v46  ;;  %v2138_v48 = vcvt.s32.f32 %v1114_v23  ;;  %v1610_v3 = vunpack.c.2.s8 %v690_v11  ;;  %v2146_v17 = vcvt.s32.f32 %v1122_v47  ;;  %v1618_v2 = vunpack.c.3.s8 %v690_v11  ;;  %v714_v23 = vld [vmem:[#allocation8 + $0x7b0] sm:$0xff] }
 0x26f   :  { %3961 = vmatpush.bf16.msrb.mxu0 %v3082_v1  ;;  %v3146_v58 = vpack.c.bf16 %v2498_v34, %v2490_v6  ;;  %v1738_v38 = vunpack.c.2.s8 %v722_v7  ;;  %v2906_v8 = vpack.c.bf16 %v2018_v51, %v2010_v25  ;;  %v1746_v27 = vunpack.c.3.s8 %v722_v7 }
 0x270   :  { %v2634_v44 = vcvt.s32.f32 %v1610_v3  ;;  %v1322_v4 = vunpack.c.2.s8 %v6107_v54  ;;  %v2970_v63 = vpack.c.bf16 %v2146_v17, %v2138_v48  ;;  %v2642_v42 = vcvt.s32.f32 %v1618_v2  ;;  %v610_v3 = vld [vmem:[#allocation8 + $0x470] sm:$0xff] }
 0x271   :  { %3974 = vmatpush.bf16.msrb.mxu1 %v3146_v58  ;;  %v2762_v61 = vcvt.s32.f32 %v1738_v38  ;;  %v1330_v55 = vunpack.c.3.s8 %v6107_v54  ;;  %3941 = vmatpush.bf16.msra.mxu2 %v2906_v8  ;;  %v2770_v50 = vcvt.s32.f32 %v1746_v27  ;;  %v1450_v30 = vunpack.c.2.s8 %v650_v26  ;;  %v642_v2 = vld [vmem:[#allocation8 + $0x570] sm:$0xff] }
 0x272   :  { %v2346_v43 = vcvt.s32.f32 %v1322_v4  ;;  %v1458_v0 = vunpack.c.3.s8 %v650_v26  ;;  %3954 = vmatpush.bf16.msra.mxu3 %v2970_v63  ;;  %v3218_v35 = vpack.c.bf16 %v2642_v42, %v2634_v44  ;;  %v1594_v37 = vunpack.c.0.s8 %v690_v11 }
 0x273   :  { %v2354_v56 = vcvt.s32.f32 %v1330_v55  ;;  %v1602_v24 = vunpack.c.1.s8 %v690_v11  ;;  %v3282_v59 = vpack.c.bf16 %v2770_v50, %v2762_v61  ;;  %v2474_v60 = vcvt.s32.f32 %v1450_v30 }
 0x274   :  { %v2482_v12 = vcvt.s32.f32 %v1458_v0  ;;  %v1722_v39 = vunpack.c.0.s8 %v722_v7  ;;  %v2618_v41 = vcvt.s32.f32 %v1594_v37  ;;  %v1730_v16 = vunpack.c.1.s8 %v722_v7  ;;  %3942 = vmatmul.bf16.vlgmr.msra.gmra.mxu2 %v5800_v9 }
 0x275   :  { %3986 = vmatpush.bf16.msrb.mxu2 %v3218_v35  ;;  %v3074_v13 = vpack.c.bf16 %v2354_v56, %v2346_v43  ;;  %v2626_v5 = vcvt.s32.f32 %v1602_v24  ;;  %v6114_v32 = vadd.f32 %v6093_v22, %v6091_v15  ;;  %v1306_v11 = vunpack.c.0.s8 %v6107_v54  ;;  %3955 = vmatmul.bf16.vlgmr.msra.gmra.mxu3 %v5802_v10 }
 0x276   :  { %3999 = vmatpush.bf16.msrb.mxu3 %v3282_v59  ;;  %v3138_v46 = vpack.c.bf16 %v2482_v12, %v2474_v60  ;;  %v2746_v20 = vcvt.s32.f32 %v1722_v39  ;;  %v2754_v6 = vcvt.s32.f32 %v1730_v16  ;;  %v1314_v7 = vunpack.c.1.s8 %v6107_v54  ;;  %v674_v39 = vld [vmem:[#allocation8 + $0x670] sm:$0xff] }
 0x277   :  { %3962 = vmatpush.bf16.msrb.mxu0 %v3074_v13  ;;  %v3210_v1 = vpack.c.bf16 %v2626_v5, %v2618_v41  ;;  %v1434_v34 = vunpack.c.0.s8 %v650_v26  ;;  %v2330_v47 = vcvt.s32.f32 %v1306_v11  ;;  %v1442_v25 = vunpack.c.1.s8 %v650_v26 }
 0x278   :  { %3975 = vmatpush.bf16.msrb.mxu1 %v3138_v46  ;;  %v1578_v51 = vunpack.c.2.s8 %v682_v21  ;;  %v1586_v48 = vunpack.c.3.s8 %v682_v21  ;;  %v3274_v15 = vpack.c.bf16 %v2754_v6, %v2746_v20  ;;  %v2338_v22 = vcvt.s32.f32 %v1314_v7  ;;  %v706_v6 = vld [vmem:[#allocation8 + $0x770] sm:$0xff] }
 0x279   :  { %3987 = vmatpush.bf16.msrb.mxu2 %v3210_v1  ;;  %v2458_v58 = vcvt.s32.f32 %v1434_v34  ;;  %v1706_v17 = vunpack.c.2.s8 %v714_v23  ;;  %v2466_v38 = vcvt.s32.f32 %v1442_v25  ;;  %v1714_v27 = vunpack.c.3.s8 %v714_v23  ;;  %v602_v25 = vld [vmem:[#allocation8 + $0x430] sm:$0xff] }
 0x27a   :  { %v2602_v8 = vcvt.s32.f32 %v1578_v51  ;;  %v2610_v44 = vcvt.s32.f32 %v1586_v48  ;;  %4000 = vmatpush.bf16.msrb.mxu3 %v3274_v15  ;;  %v3066_v4 = vpack.c.bf16 %v2338_v22, %v2330_v47  ;;  %v1290_v63 = vunpack.c.2.s8 %v610_v3  ;;  %v634_v22 = vld [vmem:[#allocation8 + $0x530] sm:$0xff] }
 0x27b   :  { %v2730_v54 = vcvt.s32.f32 %v1706_v17  ;;  %v1298_v42 = vunpack.c.3.s8 %v610_v3  ;;  %v3130_v61 = vpack.c.bf16 %v2466_v38, %v2458_v58  ;;  %v2738_v55 = vcvt.s32.f32 %v1714_v27  ;;  %v6119_v58 = vpop.f32.mrf.mxu0 }
 0x27c   :  { %v3202_v26 = vpack.c.bf16 %v2610_v44, %v2602_v8  ;;  %v1418_v50 = vunpack.c.2.s8 %v642_v2  ;;  %3963 = vmatpush.bf16.msrb.mxu0 %v3066_v4  ;;  %v2314_v43 = vcvt.s32.f32 %v1290_v63  ;;  %v1426_v0 = vunpack.c.3.s8 %v642_v2 }
 0x27d   :  { %v2322_v30 = vcvt.s32.f32 %v1298_v42  ;;  %v1562_v49 = vunpack.c.0.s8 %v682_v21  ;;  %3976 = vmatpush.bf16.msrb.mxu1 %v3130_v61  ;;  %v3266_v29 = vpack.c.bf16 %v2738_v55, %v2730_v54  ;;  %v1570_v56 = vunpack.c.1.s8 %v682_v21 }
 0x27e   :  { %3988 = vmatpush.bf16.msrb.mxu2 %v3202_v26  ;;  %v2442_v35 = vcvt.s32.f32 %v1418_v50  ;;  %v1690_v37 = vunpack.c.0.s8 %v714_v23  ;;  %v2450_v59 = vcvt.s32.f32 %v1426_v0  ;;  %v1698_v12 = vunpack.c.1.s8 %v714_v23 }
 0x27f   :  { %v3058_v24 = vpack.c.bf16 %v2322_v30, %v2314_v43  ;;  %v2586_v60 = vcvt.s32.f32 %v1562_v49  ;;  %4001 = vmatpush.bf16.msrb.mxu3 %v3266_v29  ;;  %v2594_v13 = vcvt.s32.f32 %v1570_v56  ;;  %v1274_v5 = vunpack.c.0.s8 %v610_v3 }
 0x280   :  { %v2714_v41 = vcvt.s32.f32 %v1690_v37  ;;  %v1282_v16 = vunpack.c.1.s8 %v610_v3  ;;  %v3122_v46 = vpack.c.bf16 %v2450_v59, %v2442_v35  ;;  %v2722_v20 = vcvt.s32.f32 %v1698_v12  ;;  %v6121_v3 = vpop.f32.mrf.mxu1 }
 0x281   :  { %3964 = vmatpush.bf16.msrb.mxu0 %v3058_v24  ;;  %v1402_v11 = vunpack.c.0.s8 %v642_v2  ;;  %v1410_v1 = vunpack.c.1.s8 %v642_v2  ;;  %v3194_v7 = vpack.c.bf16 %v2594_v13, %v2586_v60  ;;  %v2298_v34 = vcvt.s32.f32 %v1274_v5  ;;  %v499_v13 = vld [vmem:[#allocation8 + $0xf8] sm:$0xff] }
 0x282   :  { %v2306_v21 = vcvt.s32.f32 %v1282_v16  ;;  %v1546_v47 = vunpack.c.2.s8 %v674_v39  ;;  %3977 = vmatpush.bf16.msrb.mxu1 %v3122_v46  ;;  %v3258_v51 = vpack.c.bf16 %v2722_v20, %v2714_v41  ;;  %v1554_v15 = vunpack.c.3.s8 %v674_v39  ;;  %v531_v46 = vld [vmem:[#allocation8 + $0x1f8] sm:$0xff] }
 0x283   :  { %v2426_v23 = vcvt.s32.f32 %v1402_v11  ;;  %v2434_v48 = vcvt.s32.f32 %v1410_v1  ;;  %3989 = vmatpush.bf16.msrb.mxu2 %v3194_v7  ;;  %v1674_v2 = vunpack.c.2.s8 %v706_v6  ;;  %v1682_v8 = vunpack.c.3.s8 %v706_v6  ;;  %v3763_v20 = vpop.f32.mrf.mxu0 }
 0x284   :  { %v3050_v17 = vpack.c.bf16 %v2306_v21, %v2298_v34  ;;  %v2570_v38 = vcvt.s32.f32 %v1546_v47  ;;  %4002 = vmatpush.bf16.msrb.mxu3 %v3258_v51  ;;  %v2578_v27 = vcvt.s32.f32 %v1554_v15  ;;  %v3736_v4 = vadd.f32 %v6103_v31, %v6114_v32  ;;  %v666_v21 = vld [vmem:[#allocation8 + $0x630] sm:$0xff]  ;;  %v595_v20 = vld [vmem:[#allocation8 + $0x3f8] sm:$0xff] }
 0x285   :  { %v3114_v44 = vpack.c.bf16 %v2434_v48, %v2426_v23  ;;  %v1258_v54 = vunpack.c.2.s8 %v602_v25  ;;  %v2698_v63 = vcvt.s32.f32 %v1674_v2  ;;  %v2706_v42 = vcvt.s32.f32 %v1682_v8 }
 0x286   :  { %3965 = vmatpush.bf16.msrb.mxu0 %v3050_v17  ;;  %v1266_v61 = vunpack.c.3.s8 %v602_v25  ;;  %v1386_v26 = vunpack.c.2.s8 %v634_v22  ;;  %v3186_v55 = vpack.c.bf16 %v2578_v27, %v2570_v38  ;;  %v6126_v50 = vadd.f32 %v6105_v57, %v3736_v4 }
 0x287   :  { %3978 = vmatpush.bf16.msrb.mxu1 %v3114_v44  ;;  %v2282_v43 = vcvt.s32.f32 %v1258_v54  ;;  %v1394_v30 = vunpack.c.3.s8 %v634_v22  ;;  %v3250_v0 = vpack.c.bf16 %v2706_v42, %v2698_v63  ;;  %v1530_v35 = vunpack.c.0.s8 %v674_v39 }
 0x288   :  { %v2290_v49 = vcvt.s32.f32 %v1266_v61  ;;  %v2410_v29 = vcvt.s32.f32 %v1386_v26  ;;  %3990 = vmatpush.bf16.msrb.mxu2 %v3186_v55  ;;  %v1538_v31 = vunpack.c.1.s8 %v674_v39  ;;  %v1658_v32 = vunpack.c.0.s8 %v706_v6  ;;  %v3776_v11 = vpop.f32.mrf.mxu1 }
 0x289   :  { %v2418_v56 = vcvt.s32.f32 %v1394_v30  ;;  %v1666_v37 = vunpack.c.1.s8 %v706_v6  ;;  %4003 = vmatpush.bf16.msrb.mxu3 %v3250_v0  ;;  %v2554_v59 = vcvt.s32.f32 %v1530_v35  ;;  %v1242_v60 = vunpack.c.0.s8 %v602_v25 }
 0x28a   :  { %v3042_v24 = vpack.c.bf16 %v2290_v49, %v2282_v43  ;;  %v1250_v12 = vunpack.c.1.s8 %v602_v25  ;;  %v2562_v57 = vcvt.s32.f32 %v1538_v31  ;;  %v2682_v5 = vcvt.s32.f32 %v1658_v32  ;;  %v698_v25 = vld [vmem:[#allocation8 + $0x730] sm:$0xff]  ;;  %v6128_v32 = vpop.f32.mrf.mxu2 }
 0x28b   :  { %v3106_v41 = vpack.c.bf16 %v2418_v56, %v2410_v29  ;;  %v2690_v16 = vcvt.s32.f32 %v1666_v37  ;;  %v2266_v1 = vcvt.s32.f32 %v1242_v60  ;;  %v1370_v34 = vunpack.c.0.s8 %v634_v22  ;;  %v6130_v37 = vpop.f32.mrf.mxu3 }
 0x28c   :  { %3966 = vmatpush.bf16.msrb.mxu0 %v3042_v24  ;;  %v2274_v7 = vcvt.s32.f32 %v1250_v12  ;;  %v1378_v39 = vunpack.c.1.s8 %v634_v22  ;;  %v3178_v6 = vpack.c.bf16 %v2562_v57, %v2554_v59  ;;  %v843_v51 = vunpack.c.2.s8 %v499_v13 }
 0x28d   :  { %3979 = vmatpush.bf16.msrb.mxu1 %v3106_v41  ;;  %v3242_v47 = vpack.c.bf16 %v2690_v16, %v2682_v5  ;;  %v851_v23 = vunpack.c.3.s8 %v499_v13  ;;  %v2394_v15 = vcvt.s32.f32 %v1370_v34  ;;  %v971_v38 = vunpack.c.2.s8 %v531_v46  ;;  %v563_v41 = vld [vmem:[#allocation8 + $0x2f8] sm:$0xff] }
 0x28e   :  { %v3034_v48 = vpack.c.bf16 %v2274_v7, %v2266_v1  ;;  %v2402_v17 = vcvt.s32.f32 %v1378_v39  ;;  %3991 = vmatpush.bf16.msrb.mxu2 %v3178_v6  ;;  %v1867_v2 = vcvt.s32.f32 %v843_v51  ;;  %v979_v44 = vunpack.c.3.s8 %v531_v46  ;;  %v6134_v34 = vld [vmem:[#allocation8 + $0xb8] sm:$0xff] }
 0x28f   :  { %4004 = vmatpush.bf16.msrb.mxu3 %v3242_v47  ;;  %v1875_v8 = vcvt.s32.f32 %v851_v23  ;;  %v1514_v27 = vunpack.c.2.s8 %v666_v21  ;;  %v1995_v22 = vcvt.s32.f32 %v971_v38  ;;  %v1522_v54 = vunpack.c.3.s8 %v666_v21 }
 0x290   :  { %3967 = vmatpush.bf16.msrb.mxu0 %v3034_v48  ;;  %v3098_v4 = vpack.c.bf16 %v2402_v17, %v2394_v15  ;;  %v1642_v63 = vunpack.c.2.s8 %v698_v25  ;;  %v2003_v61 = vcvt.s32.f32 %v979_v44  ;;  %v1650_v55 = vunpack.c.3.s8 %v698_v25  ;;  %v523_v17 = vld [vmem:[#allocation8 + $0x1b8] sm:$0xff] }
 0x291   :  { %v2835_v42 = vpack.c.bf16 %v1875_v8, %v1867_v2  ;;  %v2538_v26 = vcvt.s32.f32 %v1514_v27  ;;  %v2546_v43 = vcvt.s32.f32 %v1522_v54  ;;  %v827_v0 = vunpack.c.0.s8 %v499_v13 }
 0x292   :  { %3980 = vmatpush.bf16.msrb.mxu1 %v3098_v4  ;;  %v2666_v30 = vcvt.s32.f32 %v1642_v63  ;;  %v835_v49 = vunpack.c.1.s8 %v499_v13  ;;  %v2899_v29 = vpack.c.bf16 %v2003_v61, %v1995_v22  ;;  %v2674_v35 = vcvt.s32.f32 %v1650_v55 }
 0x293   :  { %v955_v56 = vunpack.c.0.s8 %v531_v46  ;;  %v963_v31 = vunpack.c.1.s8 %v531_v46  ;;  %v3170_v24 = vpack.c.bf16 %v2546_v43, %v2538_v26  ;;  %3968 = vmatmul.bf16.vlgmr.msrb.gmra.mxu0 %v5854_v18  ;;  %v1851_v59 = vcvt.s32.f32 %v827_v0  ;;  %v3789_v26 = vpop.f32.mrf.mxu2  ;;  %v3802_v55 = vpop.f32.mrf.mxu3 }
 0x294   :  { %4012 = vmatpush.bf16.msra.mxu0 %v2835_v42  ;;  %v1859_v60 = vcvt.s32.f32 %v835_v49  ;;  %v1498_v12 = vunpack.c.0.s8 %v666_v21  ;;  %v3234_v57 = vpack.c.bf16 %v2674_v35, %v2666_v30  ;;  %v1506_v16 = vunpack.c.1.s8 %v666_v21 }
 0x295   :  { %v1979_v5 = vcvt.s32.f32 %v955_v56  ;;  %v1987_v13 = vcvt.s32.f32 %v963_v31  ;;  %3992 = vmatpush.bf16.msrb.mxu2 %v3170_v24  ;;  %3981 = vmatmul.bf16.vlgmr.msrb.gmra.mxu1 %v5856_v36  ;;  %v1626_v1 = vunpack.c.0.s8 %v698_v25  ;;  %v1634_v7 = vunpack.c.1.s8 %v698_v25 }
 0x296   :  { %4025 = vmatpush.bf16.msra.mxu1 %v2899_v29  ;;  %v2827_v46 = vpack.c.bf16 %v1859_v60, %v1851_v59  ;;  %v2522_v11 = vcvt.s32.f32 %v1498_v12  ;;  %4005 = vmatpush.bf16.msrb.mxu3 %v3234_v57  ;;  %v2530_v6 = vcvt.s32.f32 %v1506_v16  ;;  %v1099_v47 = vunpack.c.2.s8 %v563_v41  ;;  %v555_v57 = vld [vmem:[#allocation8 + $0x2b8] sm:$0xff] }
 0x297   :  { %v2891_v39 = vpack.c.bf16 %v1987_v13, %v1979_v5  ;;  %v1107_v51 = vunpack.c.3.s8 %v563_v41  ;;  %v2650_v23 = vcvt.s32.f32 %v1626_v1  ;;  %v2658_v48 = vcvt.s32.f32 %v1634_v7 }
 0x298   :  { %4013 = vmatpush.bf16.msra.mxu0 %v2827_v46  ;;  %v1227_v15 = vunpack.c.2.s8 %v595_v20  ;;  %v1235_v21 = vunpack.c.3.s8 %v595_v20  ;;  %v3162_v38 = vpack.c.bf16 %v2530_v6, %v2522_v11  ;;  %v2123_v2 = vcvt.s32.f32 %v1099_v47  ;;  %v587_v46 = vld [vmem:[#allocation8 + $0x3b8] sm:$0xff] }
 0x299   :  { %v2131_v8 = vcvt.s32.f32 %v1107_v51  ;;  %v811_v44 = vunpack.c.2.s8 %v6134_v34  ;;  %v3226_v25 = vpack.c.bf16 %v2658_v48, %v2650_v23  ;;  %v819_v22 = vunpack.c.3.s8 %v6134_v34 }
 0x29a   :  { %4026 = vmatpush.bf16.msra.mxu1 %v2891_v39  ;;  %v2251_v27 = vcvt.s32.f32 %v1227_v15  ;;  %v2259_v4 = vcvt.s32.f32 %v1235_v21  ;;  %3993 = vmatpush.bf16.msrb.mxu2 %v3162_v38  ;;  %v939_v42 = vunpack.c.2.s8 %v523_v17  ;;  %v947_v61 = vunpack.c.3.s8 %v523_v17  ;;  %v483_v39 = vld [vmem:[#allocation8 + $0x78] sm:$0xff] }
 0x29b   :  { %v2963_v54 = vpack.c.bf16 %v2131_v8, %v2123_v2  ;;  %v1835_v63 = vcvt.s32.f32 %v811_v44  ;;  %4006 = vmatpush.bf16.msrb.mxu3 %v3226_v25  ;;  %v1843_v30 = vcvt.s32.f32 %v819_v22  ;;  %v1083_v0 = vunpack.c.0.s8 %v563_v41  ;;  %v515_v21 = vld [vmem:[#allocation8 + $0x178] sm:$0xff] }
 0x29c   :  { %v3027_v43 = vpack.c.bf16 %v2259_v4, %v2251_v27  ;;  %v1091_v49 = vunpack.c.1.s8 %v563_v41  ;;  %v1963_v29 = vcvt.s32.f32 %v939_v42  ;;  %v1971_v35 = vcvt.s32.f32 %v947_v61 }
 0x29d   :  { %v1211_v56 = vunpack.c.0.s8 %v595_v20  ;;  %v1219_v31 = vunpack.c.1.s8 %v595_v20  ;;  %3994 = vmatmul.bf16.vlgmr.msrb.gmra.mxu2 %v5864_v45  ;;  %v2819_v24 = vpack.c.bf16 %v1843_v30, %v1835_v63  ;;  %v2107_v59 = vcvt.s32.f32 %v1083_v0 }
 0x29e   :  { %4038 = vmatpush.bf16.msra.mxu2 %v2963_v54  ;;  %v2115_v60 = vcvt.s32.f32 %v1091_v49  ;;  %v3762_v12 = vadd.f32 %v6119_v58, %v6126_v50  ;;  %4007 = vmatmul.bf16.vlgmr.msrb.gmra.mxu3 %v5866_v19  ;;  %v2883_v5 = vpack.c.bf16 %v1971_v35, %v1963_v29  ;;  %v795_v16 = vunpack.c.0.s8 %v6134_v34 }
 0x29f   :  { %4051 = vmatpush.bf16.msra.mxu3 %v3027_v43  ;;  %v2235_v13 = vcvt.s32.f32 %v1211_v56  ;;  %v2243_v41 = vcvt.s32.f32 %v1219_v31  ;;  %4014 = vmatpush.bf16.msra.mxu0 %v2819_v24  ;;  %v803_v1 = vunpack.c.1.s8 %v6134_v34  ;;  %v923_v7 = vunpack.c.0.s8 %v523_v17  ;;  %v547_v31 = vld [vmem:[#allocation8 + $0x278] sm:$0xff] }
 0x2a0   :  { %v2955_v20 = vpack.c.bf16 %v2115_v60, %v2107_v59  ;;  %v6144_v11 = vadd.f32 %v6121_v3, %v3762_v12  ;;  %4027 = vmatpush.bf16.msra.mxu1 %v2883_v5  ;;  %v1819_v50 = vcvt.s32.f32 %v795_v16  ;;  %v931_v6 = vunpack.c.1.s8 %v523_v17 }
 0x2a1   :  { %v3019_v58 = vpack.c.bf16 %v2243_v41, %v2235_v13  ;;  %v1067_v47 = vunpack.c.2.s8 %v555_v57  ;;  %v1827_v51 = vcvt.s32.f32 %v803_v1  ;;  %v1947_v23 = vcvt.s32.f32 %v923_v7 }
 0x2a2   :  { %4039 = vmatpush.bf16.msra.mxu2 %v2955_v20  ;;  %v1075_v48 = vunpack.c.3.s8 %v555_v57  ;;  %v1195_v15 = vunpack.c.2.s8 %v587_v46  ;;  %v1955_v38 = vcvt.s32.f32 %v931_v6  ;;  %v1203_v3 = vunpack.c.3.s8 %v587_v46  ;;  %v579_v20 = vld [vmem:[#allocation8 + $0x378] sm:$0xff] }
 0x2a3   :  { %4052 = vmatpush.bf16.msra.mxu3 %v3019_v58  ;;  %v2091_v2 = vcvt.s32.f32 %v1067_v47  ;;  %v779_v8 = vunpack.c.2.s8 %v483_v39  ;;  %v2811_v44 = vpack.c.bf16 %v1827_v51, %v1819_v50  ;;  %v787_v27 = vunpack.c.3.s8 %v483_v39  ;;  %v475_v51 = vld [vmem:[#allocation8 + $0x38] sm:$0xff] }
 0x2a4   :  { %v2099_v34 = vcvt.s32.f32 %v1075_v48  ;;  %v2219_v25 = vcvt.s32.f32 %v1195_v15  ;;  %v2875_v4 = vpack.c.bf16 %v1955_v38, %v1947_v23  ;;  %v2227_v22 = vcvt.s32.f32 %v1203_v3  ;;  %v507_v38 = vld [vmem:[#allocation8 + $0x138] sm:$0xff] }
 0x2a5   :  { %v1803_v54 = vcvt.s32.f32 %v779_v8  ;;  %v907_v17 = vunpack.c.2.s8 %v515_v21  ;;  %4015 = vmatpush.bf16.msra.mxu0 %v2811_v44  ;;  %v1811_v42 = vcvt.s32.f32 %v787_v27  ;;  %v915_v61 = vunpack.c.3.s8 %v515_v21 }
 0x2a6   :  { %v2947_v63 = vpack.c.bf16 %v2099_v34, %v2091_v2  ;;  %v1051_v26 = vunpack.c.0.s8 %v555_v57  ;;  %4028 = vmatpush.bf16.msra.mxu1 %v2875_v4  ;;  %v3011_v55 = vpack.c.bf16 %v2227_v22, %v2219_v25  ;;  %v1059_v30 = vunpack.c.1.s8 %v555_v57  ;;  %v6147_v2 = vpop.f32.mrf.mxu0 }
 0x2a7   :  { %v1931_v43 = vcvt.s32.f32 %v907_v17  ;;  %v1179_v0 = vunpack.c.0.s8 %v587_v46  ;;  %v2803_v49 = vpack.c.bf16 %v1811_v42, %v1803_v54  ;;  %v1939_v29 = vcvt.s32.f32 %v915_v61 }
 0x2a8   :  { %4040 = vmatpush.bf16.msra.mxu2 %v2947_v63  ;;  %v2075_v35 = vcvt.s32.f32 %v1051_v26  ;;  %v1187_v56 = vunpack.c.1.s8 %v587_v46  ;;  %4053 = vmatpush.bf16.msra.mxu3 %v3011_v55  ;;  %v2083_v24 = vcvt.s32.f32 %v1059_v30  ;;  %v763_v60 = vunpack.c.0.s8 %v483_v39 }
 0x2a9   :  { %v2203_v59 = vcvt.s32.f32 %v1179_v0  ;;  %v771_v12 = vunpack.c.1.s8 %v483_v39  ;;  %4016 = vmatpush.bf16.msra.mxu0 %v2803_v49  ;;  %v2867_v5 = vpack.c.bf16 %v1939_v29, %v1931_v43  ;;  %v891_v41 = vunpack.c.0.s8 %v515_v21 }
 0x2aa   :  { %v2211_v13 = vcvt.s32.f32 %v1187_v56  ;;  %v899_v16 = vunpack.c.1.s8 %v515_v21  ;;  %v2939_v1 = vpack.c.bf16 %v2083_v24, %v2075_v35  ;;  %v1787_v57 = vcvt.s32.f32 %v763_v60  ;;  %v6149_v21 = vpop.f32.mrf.mxu1  ;;  %v627_v35 = vld [vmem:[#allocation8 + $0x4f8] sm:$0xff] }
 0x2ab   :  { %v1795_v7 = vcvt.s32.f32 %v771_v12  ;;  %v1035_v58 = vunpack.c.2.s8 %v547_v31  ;;  %4029 = vmatpush.bf16.msra.mxu1 %v2867_v5  ;;  %v1915_v6 = vcvt.s32.f32 %v891_v41  ;;  %v1043_v47 = vunpack.c.3.s8 %v547_v31  ;;  %v659_v41 = vld [vmem:[#allocation8 + $0x5f8] sm:$0xff] }
 0x2ac   :  { %v3003_v50 = vpack.c.bf16 %v2211_v13, %v2203_v59  ;;  %v1923_v46 = vcvt.s32.f32 %v899_v16  ;;  %4041 = vmatpush.bf16.msra.mxu2 %v2939_v1  ;;  %v1163_v39 = vunpack.c.2.s8 %v579_v20  ;;  %v1171_v15 = vunpack.c.3.s8 %v579_v20 }
 0x2ad   :  { %v2795_v23 = vpack.c.bf16 %v1795_v7, %v1787_v57  ;;  %v2059_v48 = vcvt.s32.f32 %v1035_v58  ;;  %v6155_v3 = vpack.c.bf16 %v4149_v53, %v4148_v28  ;;  %v2067_v44 = vcvt.s32.f32 %v1043_v47 }
 0x2ae   :  { %4054 = vmatpush.bf16.msra.mxu3 %v3003_v50  ;;  %v2859_v8 = vpack.c.bf16 %v1923_v46, %v1915_v6  ;;  %v3788_v34 = vadd.f32 %v6128_v32, %v6144_v11  ;;  %v2187_v25 = vcvt.s32.f32 %v1163_v39  ;;  %v2195_v27 = vcvt.s32.f32 %v1171_v15  ;;  %v3815_v16 = vpop.f32.mrf.mxu0  ;;  %v539_v50 = vld [vmem:[#allocation8 + $0x238] sm:$0xff] }
 0x2af   :  { %4017 = vmatpush.bf16.msra.mxu0 %v2795_v23  ;;  %v747_v4 = vunpack.c.2.s8 %v475_v51  ;;  %v755_v22 = vunpack.c.3.s8 %v475_v51  ;;  %v2931_v54 = vpack.c.bf16 %v2067_v44, %v2059_v48  ;;  %v875_v63 = vunpack.c.2.s8 %v507_v38  ;;  %v571_v23 = vld [vmem:[#allocation8 + $0x338] sm:$0xff] }
 0x2b0   :  { %4030 = vmatpush.bf16.msra.mxu1 %v2859_v8  ;;  %v6160_v17 = vadd.f32 %v6130_v37, %v3788_v34  ;;  %v883_v42 = vunpack.c.3.s8 %v507_v38  ;;  %v2995_v28 = vpack.c.bf16 %v2195_v27, %v2187_v25  ;;  %v1019_v26 = vunpack.c.0.s8 %v547_v31  ;;  %v723_v16 = vld [vmem:[#allocation8 + $0x7f8] sm:$0xff] }
 0x2b1   :  { %v1771_v53 = vcvt.s32.f32 %v747_v4  ;;  %v1779_v61 = vcvt.s32.f32 %v755_v22  ;;  %v4150_v55 = vperm.slane %v6097_v33, 2  ;;  %4042 = vmatpush.bf16.msra.mxu2 %v2931_v54  ;;  %v1899_v32 = vcvt.s32.f32 %v875_v63  ;;  %v5279_v33 = vld [vmem:[#allocation13 + $0xb0] sm:$0xff] }
 0x2b2   :  { %v1907_v11 = vcvt.s32.f32 %v883_v42  ;;  %v1027_v43 = vunpack.c.1.s8 %v547_v31  ;;  %4055 = vmatpush.bf16.msra.mxu3 %v2995_v28  ;;  %v2043_v0 = vcvt.s32.f32 %v1019_v26  ;;  %v1147_v49 = vunpack.c.0.s8 %v579_v20  ;;  %v3828_v1 = vpop.f32.mrf.mxu1 }
 0x2b3   :  { %v2787_v30 = vpack.c.bf16 %v1779_v61, %v1771_v53  ;;  %v1155_v29 = vunpack.c.1.s8 %v579_v20  ;;  %v731_v24 = vunpack.c.0.s8 %v475_v51  ;;  %v739_v59 = vunpack.c.1.s8 %v475_v51 }
 0x2b4   :  { %v2851_v37 = vpack.c.bf16 %v1907_v11, %v1899_v32  ;;  %v2051_v56 = vcvt.s32.f32 %v1027_v43  ;;  %v2171_v60 = vcvt.s32.f32 %v1147_v49  ;;  %v859_v5 = vunpack.c.0.s8 %v507_v38  ;;  %v6163_v11 = vpop.f32.mrf.mxu2  ;;  %v6165_v43 = vpop.f32.mrf.mxu3 }
 0x2b5   :  { %4018 = vmatpush.bf16.msra.mxu0 %v2787_v30  ;;  %v2179_v12 = vcvt.s32.f32 %v1155_v29  ;;  %v867_v13 = vunpack.c.1.s8 %v507_v38  ;;  %v1755_v57 = vcvt.s32.f32 %v731_v24  ;;  %v1763_v7 = vcvt.s32.f32 %v739_v59 }
 0x2b6   :  { %4031 = vmatpush.bf16.msra.mxu1 %v2851_v37  ;;  %v2923_v31 = vpack.c.bf16 %v2051_v56, %v2043_v0  ;;  %v1355_v58 = vunpack.c.2.s8 %v627_v35  ;;  %v1883_v6 = vcvt.s32.f32 %v859_v5  ;;  %v1363_v47 = vunpack.c.3.s8 %v627_v35  ;;  %v691_v37 = vld [vmem:[#allocation8 + $0x6f8] sm:$0xff] }
 0x2b7   :  { %v2987_v20 = vpack.c.bf16 %v2179_v12, %v2171_v60  ;;  %v1891_v46 = vcvt.s32.f32 %v867_v13  ;;  %v2779_v51 = vpack.c.bf16 %v1763_v7, %v1755_v57  ;;  %v1483_v39 = vunpack.c.2.s8 %v659_v41  ;;  %v619_v7 = vld [vmem:[#allocation8 + $0x4b8] sm:$0xff] }
 0x2b8   :  { %4043 = vmatpush.bf16.msra.mxu2 %v2923_v31  ;;  %v2379_v48 = vcvt.s32.f32 %v1355_v58  ;;  %v1491_v15 = vunpack.c.3.s8 %v659_v41  ;;  %v2387_v8 = vcvt.s32.f32 %v1363_v47  ;;  %v1003_v44 = vunpack.c.2.s8 %v539_v50 }
 0x2b9   :  { %4056 = vmatpush.bf16.msra.mxu3 %v2987_v20  ;;  %v2843_v38 = vpack.c.bf16 %v1891_v46, %v1883_v6  ;;  %v1011_v34 = vunpack.c.3.s8 %v539_v50  ;;  %4019 = vmatpush.bf16.msra.mxu0 %v2779_v51  ;;  %v2507_v25 = vcvt.s32.f32 %v1483_v39  ;;  %v1131_v4 = vunpack.c.2.s8 %v571_v23  ;;  %v651_v46 = vld [vmem:[#allocation8 + $0x5b8] sm:$0xff] }
 0x2ba   :  { %v2515_v27 = vcvt.s32.f32 %v1491_v15  ;;  %v1139_v22 = vunpack.c.3.s8 %v571_v23  ;;  %v3091_v54 = vpack.c.bf16 %v2387_v8, %v2379_v48  ;;  %v2027_v63 = vcvt.s32.f32 %v1003_v44 }
 0x2bb   :  { %4032 = vmatpush.bf16.msra.mxu1 %v2843_v38  ;;  %v2035_v42 = vcvt.s32.f32 %v1011_v34  ;;  %v1339_v28 = vunpack.c.0.s8 %v627_v35  ;;  %v2155_v61 = vcvt.s32.f32 %v1131_v4  ;;  %v1347_v32 = vunpack.c.1.s8 %v627_v35 }
 0x2bc   :  { %v3155_v53 = vpack.c.bf16 %v2515_v27, %v2507_v25  ;;  %v2163_v26 = vcvt.s32.f32 %v1139_v22  ;;  %v1467_v49 = vunpack.c.0.s8 %v659_v41  ;;  %v1475_v29 = vunpack.c.1.s8 %v659_v41  ;;  %4020 = vmatmul.bf16.vlgmr.msra.gmra.mxu0 %v5755_v62  ;;  %v3841_v25 = vpop.f32.mrf.mxu2  ;;  %v3854_v27 = vpop.f32.mrf.mxu3 }
 0x2bd   :  { %4064 = vmatpush.bf16.msrb.mxu0 %v3091_v54  ;;  %v2915_v30 = vpack.c.bf16 %v2035_v42, %v2027_v63  ;;  %v2363_v0 = vcvt.s32.f32 %v1339_v28  ;;  %v2371_v24 = vcvt.s32.f32 %v1347_v32  ;;  %v987_v59 = vunpack.c.0.s8 %v539_v50 }
 0x2be   :  { %v2979_v56 = vpack.c.bf16 %v2163_v26, %v2155_v61  ;;  %v995_v60 = vunpack.c.1.s8 %v539_v50  ;;  %4033 = vmatmul.bf16.vlgmr.msra.gmra.mxu1 %v5757_v14  ;;  %v2491_v35 = vcvt.s32.f32 %v1467_v49  ;;  %v2499_v12 = vcvt.s32.f32 %v1475_v29  ;;  %v683_v49 = vld [vmem:[#allocation8 + $0x6b8] sm:$0xff] }
 0x2bf   :  { %4077 = vmatpush.bf16.msrb.mxu1 %v3155_v53  ;;  %4044 = vmatpush.bf16.msra.mxu2 %v2915_v30  ;;  %v1115_v5 = vunpack.c.0.s8 %v571_v23  ;;  %v1123_v13 = vunpack.c.1.s8 %v571_v23  ;;  %v3083_v1 = vpack.c.bf16 %v2371_v24, %v2363_v0  ;;  %v2011_v31 = vcvt.s32.f32 %v987_v59 }
 0x2c0   :  { %4057 = vmatpush.bf16.msra.mxu3 %v2979_v56  ;;  %v2019_v41 = vcvt.s32.f32 %v995_v60  ;;  %v1611_v57 = vunpack.c.2.s8 %v691_v37  ;;  %v3147_v58 = vpack.c.bf16 %v2499_v12, %v2491_v35  ;;  %v1619_v6 = vunpack.c.3.s8 %v691_v37 }
 0x2c1   :  { %v2139_v20 = vcvt.s32.f32 %v1115_v5  ;;  %v2147_v62 = vcvt.s32.f32 %v1123_v13  ;;  %4065 = vmatpush.bf16.msrb.mxu0 %v3083_v1  ;;  %v1739_v14 = vunpack.c.2.s8 %v723_v16  ;;  %v1747_v51 = vunpack.c.3.s8 %v723_v16  ;;  %v715_v5 = vld [vmem:[#allocation8 + $0x7b8] sm:$0xff] }
 0x2c2   :  { %v2907_v50 = vpack.c.bf16 %v2019_v41, %v2011_v31  ;;  %v2635_v47 = vcvt.s32.f32 %v1611_v57  ;;  %v2643_v23 = vcvt.s32.f32 %v1619_v6  ;;  %v1323_v39 = vunpack.c.2.s8 %v619_v7  ;;  %v611_v31 = vld [vmem:[#allocation8 + $0x478] sm:$0xff] }
 0x2c3   :  { %4078 = vmatpush.bf16.msrb.mxu1 %v3147_v58  ;;  %v2971_v48 = vpack.c.bf16 %v2147_v62, %v2139_v20  ;;  %v1331_v15 = vunpack.c.3.s8 %v619_v7  ;;  %v2763_v38 = vcvt.s32.f32 %v1739_v14  ;;  %v2771_v8 = vcvt.s32.f32 %v1747_v51 }
 0x2c4   :  { %4045 = vmatpush.bf16.msra.mxu2 %v2907_v50  ;;  %v1451_v44 = vunpack.c.2.s8 %v651_v46  ;;  %v1459_v34 = vunpack.c.3.s8 %v651_v46  ;;  %v3219_v4 = vpack.c.bf16 %v2643_v23, %v2635_v47  ;;  %v2347_v22 = vcvt.s32.f32 %v1323_v39 }
 0x2c5   :  { %4058 = vmatpush.bf16.msra.mxu3 %v2971_v48  ;;  %v2355_v54 = vcvt.s32.f32 %v1331_v15  ;;  %v1595_v63 = vunpack.c.0.s8 %v691_v37  ;;  %v3283_v42 = vpack.c.bf16 %v2771_v8, %v2763_v38  ;;  %v1603_v61 = vunpack.c.1.s8 %v691_v37 }
 0x2c6   :  { %v2475_v28 = vcvt.s32.f32 %v1451_v44  ;;  %v2483_v53 = vcvt.s32.f32 %v1459_v34  ;;  %v1723_v30 = vunpack.c.0.s8 %v723_v16  ;;  %v1731_v0 = vunpack.c.1.s8 %v723_v16 }
 0x2c7   :  { %v3075_v26 = vpack.c.bf16 %v2355_v54, %v2347_v22  ;;  %v2619_v32 = vcvt.s32.f32 %v1595_v63  ;;  %4046 = vmatmul.bf16.vlgmr.msra.gmra.mxu2 %v5800_v9  ;;  %v2627_v56 = vcvt.s32.f32 %v1603_v61  ;;  %v6172_v24 = vadd.f32 %v6149_v21, %v6147_v2  ;;  %v643_v21 = vld [vmem:[#allocation8 + $0x578] sm:$0xff]  ;;  %v6177_v22 = vpop.f32.mrf.mxu1 }
 0x2c8   :  { %4090 = vmatpush.bf16.msrb.mxu2 %v3219_v4  ;;  %v3139_v29 = vpack.c.bf16 %v2483_v53, %v2475_v28  ;;  %v1307_v59 = vunpack.c.0.s8 %v619_v7  ;;  %4059 = vmatmul.bf16.vlgmr.msra.gmra.mxu3 %v5802_v10  ;;  %v2747_v37 = vcvt.s32.f32 %v1723_v30  ;;  %v2755_v60 = vcvt.s32.f32 %v1731_v0  ;;  %v6175_v4 = vpop.f32.mrf.mxu0  ;;  %v675_v30 = vld [vmem:[#allocation8 + $0x678] sm:$0xff] }
 0x2c9   :  { %4103 = vmatpush.bf16.msrb.mxu3 %v3283_v42  ;;  %4066 = vmatpush.bf16.msrb.mxu0 %v3075_v26  ;;  %v1315_v35 = vunpack.c.1.s8 %v619_v7  ;;  %v1435_v12 = vunpack.c.0.s8 %v651_v46  ;;  %v3211_v13 = vpack.c.bf16 %v2627_v56, %v2619_v32  ;;  %v1443_v1 = vunpack.c.1.s8 %v651_v46 }
 0x2ca   :  { %4079 = vmatpush.bf16.msrb.mxu1 %v3139_v29  ;;  %v2331_v16 = vcvt.s32.f32 %v1307_v59  ;;  %v1579_v9 = vunpack.c.2.s8 %v683_v49  ;;  %v3275_v41 = vpack.c.bf16 %v2755_v60, %v2747_v37  ;;  %v1587_v2 = vunpack.c.3.s8 %v683_v49  ;;  %v707_v59 = vld [vmem:[#allocation8 + $0x778] sm:$0xff] }
 0x2cb   :  { %v2339_v57 = vcvt.s32.f32 %v1315_v35  ;;  %v2459_v58 = vcvt.s32.f32 %v1435_v12  ;;  %v2467_v20 = vcvt.s32.f32 %v1443_v1  ;;  %v1707_v62 = vunpack.c.2.s8 %v715_v5 }
 0x2cc   :  { %4091 = vmatpush.bf16.msrb.mxu2 %v3211_v13  ;;  %v2603_v10 = vcvt.s32.f32 %v1579_v9  ;;  %v1715_v6 = vunpack.c.3.s8 %v715_v5  ;;  %v2611_v50 = vcvt.s32.f32 %v1587_v2  ;;  %v1291_v47 = vunpack.c.2.s8 %v611_v31  ;;  %v603_v13 = vld [vmem:[#allocation8 + $0x438] sm:$0xff] }
 0x2cd   :  { %4104 = vmatpush.bf16.msrb.mxu3 %v3275_v41  ;;  %v3067_v7 = vpack.c.bf16 %v2339_v57, %v2331_v16  ;;  %v1299_v14 = vunpack.c.3.s8 %v611_v31  ;;  %v3131_v51 = vpack.c.bf16 %v2467_v20, %v2459_v58  ;;  %v2731_v48 = vcvt.s32.f32 %v1707_v62  ;;  %v635_v2 = vld [vmem:[#allocation8 + $0x538] sm:$0xff] }
 0x2ce   :  { %v2739_v46 = vcvt.s32.f32 %v1715_v6  ;;  %v1419_v23 = vunpack.c.2.s8 %v643_v21  ;;  %v3203_v39 = vpack.c.bf16 %v2611_v50, %v2603_v10  ;;  %v2315_v15 = vcvt.s32.f32 %v1291_v47 }
 0x2cf   :  { %4067 = vmatpush.bf16.msrb.mxu0 %v3067_v7  ;;  %v2323_v38 = vcvt.s32.f32 %v1299_v14  ;;  %v1427_v8 = vunpack.c.3.s8 %v643_v21  ;;  %4080 = vmatpush.bf16.msrb.mxu1 %v3131_v51  ;;  %v1563_v25 = vunpack.c.0.s8 %v683_v49  ;;  %v1571_v27 = vunpack.c.1.s8 %v683_v49  ;;  %v3880_v51 = vpop.f32.mrf.mxu1 }
 0x2d0   :  { %v3267_v44 = vpack.c.bf16 %v2739_v46, %v2731_v48  ;;  %v2443_v34 = vcvt.s32.f32 %v1419_v23  ;;  %4092 = vmatpush.bf16.msrb.mxu2 %v3203_v39  ;;  %v1691_v42 = vunpack.c.0.s8 %v715_v5  ;;  %v1699_v28 = vunpack.c.1.s8 %v715_v5  ;;  %v3867_v14 = vpop.f32.mrf.mxu0 }
 0x2d1   :  { %v3059_v54 = vpack.c.bf16 %v2323_v38, %v2315_v15  ;;  %v2451_v63 = vcvt.s32.f32 %v1427_v8  ;;  %v2587_v53 = vcvt.s32.f32 %v1563_v25  ;;  %v2595_v61 = vcvt.s32.f32 %v1571_v27  ;;  %v6188_v14 = vld [vmem:[#allocation11] sm:$0xff] }
 0x2d2   :  { %4105 = vmatpush.bf16.msrb.mxu3 %v3267_v44  ;;  %v1275_v26 = vunpack.c.0.s8 %v611_v31  ;;  %v1283_v32 = vunpack.c.1.s8 %v611_v31  ;;  %v2715_v29 = vcvt.s32.f32 %v1691_v42  ;;  %v2723_v56 = vcvt.s32.f32 %v1699_v28  ;;  %v667_v28 = vld [vmem:[#allocation8 + $0x638] sm:$0xff] }
 0x2d3   :  { %4068 = vmatpush.bf16.msrb.mxu0 %v3059_v54  ;;  %v3123_v0 = vpack.c.bf16 %v2451_v63, %v2443_v34  ;;  %v1403_v49 = vunpack.c.0.s8 %v643_v21  ;;  %v3195_v37 = vpack.c.bf16 %v2595_v61, %v2587_v53  ;;  %v1411_v12 = vunpack.c.1.s8 %v643_v21  ;;  %v6186_v53 = vpop.f32.mrf.mxu3 }
 0x2d4   :  { %v2299_v60 = vcvt.s32.f32 %v1275_v26  ;;  %v2307_v35 = vcvt.s32.f32 %v1283_v32  ;;  %v3259_v16 = vpack.c.bf16 %v2723_v56, %v2715_v29  ;;  %v1547_v1 = vunpack.c.2.s8 %v675_v30  ;;  %v699_v29 = vld [vmem:[#allocation8 + $0x738] sm:$0xff] }
 0x2d5   :  { %4081 = vmatpush.bf16.msrb.mxu1 %v3123_v0  ;;  %v2427_v5 = vcvt.s32.f32 %v1403_v49  ;;  %v1555_v9 = vunpack.c.3.s8 %v675_v30  ;;  %4093 = vmatpush.bf16.msrb.mxu2 %v3195_v37  ;;  %v2435_v31 = vcvt.s32.f32 %v1411_v12  ;;  %v1675_v57 = vunpack.c.2.s8 %v707_v59 }
 0x2d6   :  { %v3051_v41 = vpack.c.bf16 %v2307_v35, %v2299_v60  ;;  %v1683_v58 = vunpack.c.3.s8 %v707_v59  ;;  %4106 = vmatpush.bf16.msrb.mxu3 %v3259_v16  ;;  %v2571_v20 = vcvt.s32.f32 %v1547_v1  ;;  %v3840_v62 = vadd.f32 %v6163_v11, %v6172_v24  ;;  %v5264_v1 = vld [vmem:[#allocation13 + $0x38] sm:$0xff] }
 0x2d7   :  { %v2579_v10 = vcvt.s32.f32 %v1555_v9  ;;  %v1259_v6 = vunpack.c.2.s8 %v603_v13  ;;  %v3115_v21 = vpack.c.bf16 %v2435_v31, %v2427_v5  ;;  %v2699_v7 = vcvt.s32.f32 %v1675_v57 }
 0x2d8   :  { %4069 = vmatpush.bf16.msrb.mxu0 %v3051_v41  ;;  %v2707_v50 = vcvt.s32.f32 %v1683_v58  ;;  %v1267_v47 = vunpack.c.3.s8 %v603_v13  ;;  %v6182_v46 = vadd.f32 %v6165_v43, %v3840_v62  ;;  %v1387_v39 = vunpack.c.2.s8 %v635_v2  ;;  %v6184_v43 = vpop.f32.mrf.mxu2 }
 0x2d9   :  { %v3187_v48 = vpack.c.bf16 %v2579_v10, %v2571_v20  ;;  %v2283_v23 = vcvt.s32.f32 %v1259_v6  ;;  %4082 = vmatpush.bf16.msrb.mxu1 %v3115_v21  ;;  %v1395_v8 = vunpack.c.3.s8 %v635_v2  ;;  %v1531_v44 = vunpack.c.0.s8 %v675_v30 }
 0x2da   :  { %v3251_v15 = vpack.c.bf16 %v2707_v50, %v2699_v7  ;;  %v2291_v38 = vcvt.s32.f32 %v1267_v47  ;;  %v2411_v11 = vcvt.s32.f32 %v1387_v39  ;;  %v1539_v24 = vunpack.c.1.s8 %v675_v30 }
 0x2db   :  { %4094 = vmatpush.bf16.msrb.mxu2 %v3187_v48  ;;  %v1659_v34 = vunpack.c.0.s8 %v707_v59  ;;  %v1667_v25 = vunpack.c.1.s8 %v707_v59  ;;  %v2419_v54 = vcvt.s32.f32 %v1395_v8  ;;  %v2555_v63 = vcvt.s32.f32 %v1531_v44  ;;  %v3906_v8 = vpop.f32.mrf.mxu3 }
 0x2dc   :  { %4107 = vmatpush.bf16.msrb.mxu3 %v3251_v15  ;;  %v3043_v27 = vpack.c.bf16 %v2291_v38, %v2283_v23  ;;  %v1243_v42 = vunpack.c.0.s8 %v603_v13  ;;  %v2563_v61 = vcvt.s32.f32 %v1539_v24  ;;  %v1251_v0 = vunpack.c.1.s8 %v603_v13  ;;  %v5272_v13 = vld [vmem:[#allocation13 + $0x78] sm:$0xff]  ;;  %v5263_v23 = vld [vmem:[#allocation13 + $0x30] sm:$0xff] }
 0x2dd   :  { %v2683_v26 = vcvt.s32.f32 %v1659_v34  ;;  %v2691_v32 = vcvt.s32.f32 %v1667_v25  ;;  %v3107_v56 = vpack.c.bf16 %v2419_v54, %v2411_v11  ;;  %v1371_v49 = vunpack.c.0.s8 %v635_v2  ;;  %v5271_v24 = vld [vmem:[#allocation13 + $0x70] sm:$0xff] }
 0x2de   :  { %4070 = vmatpush.bf16.msrb.mxu0 %v3043_v27  ;;  %v2267_v30 = vcvt.s32.f32 %v1243_v42  ;;  %v1379_v59 = vunpack.c.1.s8 %v635_v2  ;;  %v3179_v37 = vpack.c.bf16 %v2563_v61, %v2555_v63  ;;  %v2275_v35 = vcvt.s32.f32 %v1251_v0  ;;  %v5270_v0 = vld [vmem:[#allocation13 + $0x68] sm:$0xff] }
 0x2df   :  { %v3243_v60 = vpack.c.bf16 %v2691_v32, %v2683_v26  ;;  %v1515_v12 = vunpack.c.2.s8 %v667_v28  ;;  %4083 = vmatpush.bf16.msrb.mxu1 %v3107_v56  ;;  %v2395_v16 = vcvt.s32.f32 %v1371_v49  ;;  %v1523_v9 = vunpack.c.3.s8 %v667_v28  ;;  %v5262_v26 = vld [vmem:[#allocation13 + $0x28] sm:$0xff] }
 0x2e0   :  { %v2403_v5 = vcvt.s32.f32 %v1379_v59  ;;  %v1643_v41 = vunpack.c.2.s8 %v699_v29  ;;  %4095 = vmatpush.bf16.msrb.mxu2 %v3179_v37  ;;  %v3035_v31 = vpack.c.bf16 %v2275_v35, %v2267_v30  ;;  %v1651_v58 = vunpack.c.3.s8 %v699_v29  ;;  %v3893_v38 = vpop.f32.mrf.mxu2  ;;  %v5261_v59 = vld [vmem:[#allocation13 + $0x20] sm:$0xff] }
 0x2e1   :  { %4108 = vmatpush.bf16.msrb.mxu3 %v3243_v60  ;;  %v2539_v57 = vcvt.s32.f32 %v1515_v12  ;;  %v1499_v20 = vunpack.c.0.s8 %v667_v28  ;;  %v2547_v62 = vcvt.s32.f32 %v1523_v9  ;;  %v1507_v6 = vunpack.c.1.s8 %v667_v28  ;;  %v6200_v28 = vld [vmem:[#allocation10] sm:$0xff]  ;;  %v5269_v12 = vld [vmem:[#allocation13 + $0x60] sm:$0xff]  ;;  %v5286_v9 = vld [vmem:[#allocation13 + $0xe8] sm:$0xff] }
 0x2e2   :  { %v3099_v10 = vpack.c.bf16 %v2403_v5, %v2395_v16  ;;  %v2667_v2 = vcvt.s32.f32 %v1643_v41  ;;  %4071 = vmatpush.bf16.msrb.mxu0 %v3035_v31  ;;  %v2675_v21 = vcvt.s32.f32 %v1651_v58  ;;  %v1627_v50 = vunpack.c.0.s8 %v699_v29  ;;  %v5260_v41 = vld [vmem:[#allocation13 + $0x18] sm:$0xff]  ;;  %v5277_v58 = vld [vmem:[#allocation13 + $0xa0] sm:$0xff] }
 0x2e3   :  { %v2523_v7 = vcvt.s32.f32 %v1499_v20  ;;  %v1635_v47 = vunpack.c.1.s8 %v699_v29  ;;  %v4151_v51 = vperm.slane %v6188_v14, 3  ;;  %v3171_v48 = vpack.c.bf16 %v2547_v62, %v2539_v57  ;;  %v5268_v57 = vld [vmem:[#allocation13 + $0x58] sm:$0xff] }
 0x2e4   :  { %4084 = vmatpush.bf16.msrb.mxu1 %v3099_v10  ;;  %v2531_v39 = vcvt.s32.f32 %v1507_v6  ;;  %v3866_v15 = vadd.f32 %v6175_v4, %v6182_v46  ;;  %v4172_v44 = vunpack.c.l.b16 %v6155_v3  ;;  %v3235_v11 = vpack.c.bf16 %v2675_v21, %v2667_v2  ;;  %v5280_v46 = vld [vmem:[#allocation13 + $0xb8] sm:$0xff]  ;;  %v5259_v2 = vld [vmem:[#allocation13 + $0x10] sm:$0xff] }
 0x2e5   :  { %v2651_v34 = vcvt.s32.f32 %v1627_v50  ;;  %v2659_v25 = vcvt.s32.f32 %v1635_v47  ;;  %v4173_v27 = vunpack.c.h.b16 %v6155_v3  ;;  %4096 = vmatpush.bf16.msrb.mxu2 %v3171_v48  ;;  %4072 = vmatmul.bf16.vlgmr.msrb.gmra.mxu0 %v5854_v18  ;;  %v4165_v42 = vpack.c.bf16 %v4151_v51, %v4150_v55  ;;  %v5288_v3 = vld [vmem:[#allocation13 + $0xf8] sm:$0xff]  ;;  %v5267_v50 = vld [vmem:[#allocation13 + $0x50] sm:$0xff] }
 0x2e6   :  { %4788 = vmatpush.bf16.msra.mxu0 %v5264_v1  ;;  %v3163_v54 = vpack.c.bf16 %v2531_v39, %v2523_v7  ;;  %v3879_v63 = vadd.f32 %v6177_v22, %v3866_v15  ;;  %4109 = vmatpush.bf16.msrb.mxu3 %v3235_v11  ;;  %v4122_v61 = vperm.slane %v6200_v28, 4  ;;  %v4123_v32 = vperm.slane %v6200_v28, 5  ;;  %v5278_v1 = vld [vmem:[#allocation13 + $0xa8] sm:$0xff]  ;;  %v5276_v48 = vld [vmem:[#allocation13 + $0x98] sm:$0xff] }
 0x2e7   :  { %4085 = vmatmul.bf16.vlgmr.msrb.gmra.mxu1 %v5856_v36  ;;  %v3227_v4 = vpack.c.bf16 %v2659_v25, %v2651_v34  ;;  %v4180_v22 = vpack.c.b16 %v4172_v44, %v4172_v44  ;;  %v4181_v36 = vpack.c.b16 %v4173_v27, %v4173_v27  ;;  %v3917_v55 = vpop.f32.mrf.mxu0  ;;  %v4174_v30 = vunpack.c.l.b16 %v4165_v42  ;;  %v5284_v39 = vld [vmem:[#allocation13 + $0xd8] sm:$0xff]  ;;  %v5258_v15 = vld [vmem:[#allocation13 + $0x8] sm:$0xff] }
 0x2e8   :  { %4801 = vmatpush.bf16.msra.mxu1 %v5272_v13  ;;  %v3892_v18 = vadd.f32 %v6184_v43, %v3879_v63  ;;  %v3930_v56 = vpop.f32.mrf.mxu1  ;;  %v4138_v49 = vmul.f32 %v4122_v61, %v6160_v17  ;;  %v5287_v43 = vld [vmem:[#allocation13 + $0xf0] sm:$0xff]  ;;  %v4175_v35 = vunpack.c.h.b16 %v4165_v42  ;;  %v4220_v6 = vunpack.c.l.bf16 %v5990_v40  ;;  %v5266_v44 = vld [vmem:[#allocation13 + $0x48] sm:$0xff]  ;;  %v5257_v42 = vld [vmem:[#allocation13] sm:$0xff] }
 0x2e9   :  { %4097 = vmatpush.bf16.msrb.mxu2 %v3163_v54  ;;  %v4189_v60 = vpack.i.b16 %v4180_v22, %v4180_v22  ;;  %v4193_v16 = vpack.i.b16 %v4181_v36, %v4181_v36  ;;  %v4182_v17 = vpack.c.b16 %v4174_v30, %v4174_v30  ;;  %v4221_v47 = vunpack.c.h.bf16 %v5990_v40  ;;  %v5275_v54 = vld [vmem:[#allocation13 + $0x90] sm:$0xff]  ;;  %v5296_v22 = vld [vmem:[#allocation13 + $0x138] sm:$0xff] }
 0x2ea   :  { %4789 = vmatpush.bf16.msra.mxu0 %v5263_v23  ;;  %v3905_v29 = vadd.f32 %v6186_v53, %v3892_v18  ;;  %4110 = vmatpush.bf16.msrb.mxu3 %v3227_v4  ;;  %v3931_v53 = vadd.f32 %v3930_v56, %v3917_v55  ;;  %v4183_v13 = vpack.c.b16 %v4175_v35, %v4175_v35  ;;  %v4152_v34 = vperm.slane %v6188_v14, 4  ;;  %v5282_v56 = vld [vmem:[#allocation13 + $0xc8] sm:$0xff] }
 0x2eb   :  { %v4191_v31 = vperm.slane %v4189_v60, 0  ;;  %v4197_v62 = vpack.i.b16 %v4182_v17, %v4182_v17  ;;  %v4153_v25 = vperm.slane %v6188_v14, 5  ;;  %v4222_v63 = vunpack.c.l.bf16 %v6095_v52  ;;  %v5303_v60 = vld [vmem:[#allocation13 + $0x170] sm:$0xff] }
 0x2ec   :  { %4802 = vmatpush.bf16.msra.mxu1 %v5271_v24  ;;  %v4139_v37 = vmul.f32 %v4123_v32, %v3905_v29  ;;  %4098 = vmatmul.bf16.vlgmr.msrb.gmra.mxu2 %v5864_v45  ;;  %v4195_v45 = vperm.slane %v4193_v16, 0  ;;  %v4201_v7 = vpack.i.b16 %v4183_v13, %v4183_v13  ;;  %v5265_v32 = vld [vmem:[#allocation13 + $0x40] sm:$0xff]  ;;  %v5304_v29 = vld [vmem:[#allocation13 + $0x178] sm:$0xff] }
 0x2ed   :  { %4814 = vmatpush.bf16.msra.mxu2 %v5280_v46  ;;  %4111 = vmatmul.bf16.vlgmr.msrb.gmra.mxu3 %v5866_v19  ;;  %v5285_v19 = vld [vmem:[#allocation13 + $0xe0] sm:$0xff]  ;;  %v4228_v21 = vunpack.c.l.bf16 %v4191_v31  ;;  %v4199_v23 = vperm.slane %v4197_v62, 0  ;;  %v5283_v46 = vld [vmem:[#allocation13 + $0xd0] sm:$0xff]  ;;  %v4166_v36 = vpack.c.bf16 %v4153_v25, %v4152_v34  ;;  %v5302_v31 = vld [vmem:[#allocation13 + $0x168] sm:$0xff] }
 0x2ee   :  { %4827 = vmatpush.bf16.msra.mxu3 %v5288_v3  ;;  %4790 = vmatpush.bf16.msra.mxu0 %v5262_v26  ;;  %v6209_v5 = vpack.c.bf16 %v4139_v37, %v4138_v49  ;;  %v4229_v51 = vunpack.c.l.bf16 %v4195_v45  ;;  %v4203_v8 = vperm.slane %v4201_v7, 0  ;;  %v4223_v26 = vunpack.c.h.bf16 %v6095_v52  ;;  %v5291_v7 = vld [vmem:[#allocation13 + $0x110] sm:$0xff]  ;;  %v5289_v25 = vld [vmem:[#allocation13 + $0x100] sm:$0xff] }
 0x2ef   :  { %v3919_v20 = vpop.f32.mrf.mxu0  ;;  %v4236_v38 = vadd.f32 %v4228_v21, %v4220_v6  ;;  %v4230_v4 = vunpack.c.l.bf16 %v4199_v23  ;;  %v4176_v37 = vunpack.c.l.b16 %v4166_v36  ;;  %v5300_v6 = vld [vmem:[#allocation13 + $0x158] sm:$0xff] }
 0x2f0   :  { %4803 = vmatpush.bf16.msra.mxu1 %v5270_v0  ;;  %v3932_v10 = vpop.f32.mrf.mxu1  ;;  %v4237_v24 = vadd.f32 %v4229_v51, %v4221_v47  ;;  %v4231_v18 = vunpack.c.l.bf16 %v4203_v8  ;;  %v4224_v47 = vunpack.c.l.bf16 %v6209_v5 }
 0x2f1   :  { %4815 = vmatpush.bf16.msra.mxu2 %v5279_v33  ;;  %v4256_v3 = vmax.f32 %v4236_v38, 0.0  ;;  %v5274_v33 = vld [vmem:[#allocation13 + $0x88] sm:$0xff]  ;;  %v4238_v55 = vadd.f32 %v4230_v4, %v4222_v63  ;;  %v5301_v10 = vld [vmem:[#allocation13 + $0x160] sm:$0xff] }
 0x2f2   :  { %4828 = vmatpush.bf16.msra.mxu3 %v5287_v43  ;;  %4791 = vmatpush.bf16.msra.mxu0 %v5261_v59  ;;  %v4257_v0 = vmax.f32 %v4237_v24, 0.0  ;;  %v4239_v49 = vadd.f32 %v4231_v18, %v4223_v26  ;;  %v5295_v43 = vld [vmem:[#allocation13 + $0x130] sm:$0xff]  ;;  %v5298_v24 = vld [vmem:[#allocation13 + $0x148] sm:$0xff] }
 0x2f3   :  { %v4264_v30 = vpack.c.bf16 %v4256_v3, %v4256_v3  ;;  %v4258_v16 = vmax.f32 %v4238_v55, 0.0 }
 0x2f4   :  { %4804 = vmatpush.bf16.msra.mxu1 %v5269_v12  ;;  %v4265_v52 = vpack.c.bf16 %v4257_v0, %v4257_v0  ;;  %v4177_v12 = vunpack.c.h.b16 %v4166_v36  ;;  %v4259_v17 = vmax.f32 %v4239_v49, 0.0  ;;  %v5320_v0 = vld [vmem:[#allocation13 + $0x1f8] sm:$0xff]  ;;  %v5310_v49 = vld [vmem:[#allocation13 + $0x1a8] sm:$0xff] }
 0x2f5   :  { %4816 = vmatpush.bf16.msra.mxu2 %v5278_v1  ;;  %v5281_v1 = vld [vmem:[#allocation13 + $0xc0] sm:$0xff] }
 0x2f6   :  { %4829 = vmatpush.bf16.msra.mxu3 %v5286_v9  ;;  %4792 = vmatpush.bf16.msra.mxu0 %v5260_v41  ;;  %v5294_v9 = vld [vmem:[#allocation13 + $0x128] sm:$0xff]  ;;  %v4184_v41 = vpack.c.b16 %v4176_v37, %v4176_v37  ;;  %v4185_v13 = vpack.c.b16 %v4177_v12, %v4177_v12  ;;  %v4267_v45 = vpack.c.bf16 %v4259_v17, %v4259_v17  ;;  %v5309_v37 = vld [vmem:[#allocation13 + $0x1a0] sm:$0xff]  ;;  %v5316_v12 = vld [vmem:[#allocation13 + $0x1d8] sm:$0xff] }
 0x2f7   :  { %v3943_v11 = vpop.f32.mrf.mxu2  ;;  %v5315_v17 = vld [vmem:[#allocation13 + $0x1d0] sm:$0xff] }
 0x2f8   :  { %4805 = vmatpush.bf16.msra.mxu1 %v5268_v57  ;;  %v3944_v27 = vadd.f32 %v3943_v11, %v3931_v53  ;;  %v3956_v40 = vpop.f32.mrf.mxu3  ;;  %v5273_v53 = vld [vmem:[#allocation13 + $0x80] sm:$0xff]  ;;  %v4266_v57 = vpack.c.bf16 %v4258_v16, %v4258_v16  ;;  %v4205_v20 = vpack.i.b16 %v4184_v41, %v4184_v41  ;;  %v4209_v62 = vpack.i.b16 %v4185_v13, %v4185_v13  ;;  %v5314_v41 = vld [vmem:[#allocation13 + $0x1c8] sm:$0xff] }
 0x2f9   :  { %4817 = vmatpush.bf16.msra.mxu2 %v5277_v58  ;;  %v5293_v58 = vld [vmem:[#allocation13 + $0x120] sm:$0xff] }
 0x2fa   :  { %4830 = vmatpush.bf16.msra.mxu3 %v5285_v19  ;;  %4793 = vmatpush.bf16.msra.mxu0 %v5259_v2  ;;  %v6216_v61 = vadd.f32 %v3956_v40, %v3944_v27  ;;  %v5292_v19 = vld [vmem:[#allocation13 + $0x118] sm:$0xff]  ;;  %v4207_v2 = vperm.slane %v4205_v20, 0  ;;  %v4211_v21 = vperm.slane %v4209_v62, 0  ;;  %v5313_v13 = vld [vmem:[#allocation13 + $0x1c0] sm:$0xff] }
 0x2fc   :  { %4806 = vmatpush.bf16.msra.mxu1 %v5267_v50  ;;  %v4232_v51 = vunpack.c.l.bf16 %v4207_v2 }
 0x2fd   :  { %4818 = vmatpush.bf16.msra.mxu2 %v5276_v48  ;;  %v5299_v48 = vld [vmem:[#allocation13 + $0x150] sm:$0xff] }
 0x2fe   :  { %4831 = vmatpush.bf16.msra.mxu3 %v5284_v39  ;;  %4794 = vmatpush.bf16.msra.mxu0 %v5258_v15  ;;  %v4225_v39 = vunpack.c.h.bf16 %v6209_v5  ;;  %v4233_v15 = vunpack.c.l.bf16 %v4211_v21  ;;  %v4240_v11 = vadd.f32 %v4232_v51, %v4224_v47 }
 0x2ff   :  { %v3945_v59 = vpop.f32.mrf.mxu2 }
 0x300   :  { %4807 = vmatpush.bf16.msra.mxu1 %v5266_v44  ;;  %v3958_v35 = vpop.f32.mrf.mxu3  ;;  %v5290_v44 = vld [vmem:[#allocation13 + $0x108] sm:$0xff]  ;;  %v4241_v34 = vadd.f32 %v4233_v15, %v4225_v39  ;;  %v4260_v40 = vmax.f32 %v4240_v11, 0.0  ;;  %v4125_v11 = vperm.slane %v6200_v28, 7 }
 0x301   :  { %4819 = vmatpush.bf16.msra.mxu2 %v5275_v54  ;;  %v5297_v54 = vld [vmem:[#allocation13 + $0x140] sm:$0xff]  ;;  %v5308_v35 = vld [vmem:[#allocation13 + $0x198] sm:$0xff] }
 0x302   :  { %4832 = vmatpush.bf16.msra.mxu3 %v5283_v46  ;;  %4795 = vmatpush.bf16.msra.mxu0 %v5257_v42  ;;  %v4261_v63 = vmax.f32 %v4241_v34, 0.0  ;;  %v4268_v46 = vpack.c.bf16 %v4260_v40, %v4260_v40 }
 0x304   :  { %4808 = vmatpush.bf16.msra.mxu1 %v5265_v32  ;;  %v4269_v5 = vpack.c.bf16 %v4261_v63, %v4261_v63 }
 0x305   :  { %4820 = vmatpush.bf16.msra.mxu2 %v5274_v33  ;;  %4796 = vmatmul.bf16.vlgmr.msra.gmra.mxu0 %v4264_v30  ;;  %v5319_v30 = vld [vmem:[#allocation13 + $0x1f0] sm:$0xff] }
 0x306   :  { %4840 = vmatpush.bf16.msrb.mxu0 %v5296_v22  ;;  %4833 = vmatpush.bf16.msra.mxu3 %v5282_v56  ;;  %v5312_v22 = vld [vmem:[#allocation13 + $0x1b8] sm:$0xff]  ;;  %v5311_v56 = vld [vmem:[#allocation13 + $0x1b0] sm:$0xff] }
 0x307   :  { %4809 = vmatmul.bf16.vlgmr.msra.gmra.mxu1 %v4265_v52 }
 0x308   :  { %4853 = vmatpush.bf16.msrb.mxu1 %v5304_v29 }
 0x309   :  { %4821 = vmatpush.bf16.msra.mxu2 %v5273_v53 }
 0x30a   :  { %4841 = vmatpush.bf16.msrb.mxu0 %v5295_v43  ;;  %4834 = vmatpush.bf16.msra.mxu3 %v5281_v1  ;;  %v5318_v43 = vld [vmem:[#allocation13 + $0x1e8] sm:$0xff]  ;;  %v5307_v1 = vld [vmem:[#allocation13 + $0x190] sm:$0xff] }
 0x30c   :  { %4854 = vmatpush.bf16.msrb.mxu1 %v5303_v60  ;;  %4822 = vmatmul.bf16.vlgmr.msra.gmra.mxu2 %v4266_v57  ;;  %v5317_v60 = vld [vmem:[#allocation13 + $0x1e0] sm:$0xff]  ;;  %v4154_v57 = vperm.slane %v6188_v14, 6 }
 0x30d   :  { %4835 = vmatmul.bf16.vlgmr.msra.gmra.mxu3 %v4267_v45  ;;  %4866 = vmatpush.bf16.msrb.mxu2 %v5312_v22  ;;  %v4155_v45 = vperm.slane %v6188_v14, 7  ;;  %v4124_v14 = vperm.slane %v6200_v28, 6  ;;  %v5334_v28 = vld [vmem:[%s6242_s7] ss:$0 sm:$0xff]  ;;  %s5552_s7 = smov [#allocation14]  }
 0x30e   :  { %4842 = vmatpush.bf16.msrb.mxu0 %v5294_v9  ;;  %4879 = vmatpush.bf16.msrb.mxu3 %v5320_v0  ;;  %v5306_v9 = vld [vmem:[#allocation13 + $0x188] sm:$0xff]  ;;  %s4898_s18 = sshll.u32 %s5552_s7, 4  ;;  %s4899_s18 = int_to_ptr.vmem [resolvable:$true] %s4898_s18 }
 0x310   :  { %4855 = vmatpush.bf16.msrb.mxu1 %v5302_v31  ;;  %v3969_v50 = vpop.f32.mrf.mxu0  ;;  %v5305_v31 = vld [vmem:[#allocation13 + $0x180] sm:$0xff] }
 0x311   :  { %v3970_v23 = vadd.f32 %v3969_v50, %v6216_v61  ;;  %4867 = vmatpush.bf16.msrb.mxu2 %v5311_v56 }
 0x312   :  { %4843 = vmatpush.bf16.msrb.mxu0 %v5293_v58  ;;  %v3982_v38 = vpop.f32.mrf.mxu1  ;;  %4880 = vmatpush.bf16.msrb.mxu3 %v5319_v30 }
 0x313   :  { %v3983_v8 = vadd.f32 %v3982_v38, %v3970_v23 }
 0x314   :  { %4856 = vmatpush.bf16.msrb.mxu1 %v5301_v10  ;;  %v4167_v10 = vpack.c.bf16 %v4155_v45, %v4154_v57 }
 0x315   :  { %4868 = vmatpush.bf16.msrb.mxu2 %v5310_v49 }
 0x316   :  { %4844 = vmatpush.bf16.msrb.mxu0 %v5292_v19  ;;  %4881 = vmatpush.bf16.msrb.mxu3 %v5318_v43  ;;  %v4178_v2 = vunpack.c.l.b16 %v4167_v10 }
 0x318   :  { %4857 = vmatpush.bf16.msrb.mxu1 %v5300_v6  ;;  %v3971_v27 = vpop.f32.mrf.mxu0  ;;  %v4179_v6 = vunpack.c.h.b16 %v4167_v10  ;;  %v4186_v47 = vpack.c.b16 %v4178_v2, %v4178_v2 }
 0x319   :  { %4869 = vmatpush.bf16.msrb.mxu2 %v5309_v37 }
 0x31a   :  { %4845 = vmatpush.bf16.msrb.mxu0 %v5291_v7  ;;  %v3984_v4 = vpop.f32.mrf.mxu1  ;;  %4882 = vmatpush.bf16.msrb.mxu3 %v5317_v60  ;;  %v4187_v51 = vpack.c.b16 %v4179_v6, %v4179_v6  ;;  %v4213_v39 = vpack.i.b16 %v4186_v47, %v4186_v47 }
 0x31c   :  { %4858 = vmatpush.bf16.msrb.mxu1 %v5299_v48  ;;  %v4217_v15 = vpack.i.b16 %v4187_v51, %v4187_v51  ;;  %v4215_v34 = vperm.slane %v4213_v39, 0 }
 0x31d   :  { %4870 = vmatpush.bf16.msrb.mxu2 %v5308_v35 }
 0x31e   :  { %4846 = vmatpush.bf16.msrb.mxu0 %v5290_v44  ;;  %4883 = vmatpush.bf16.msrb.mxu3 %v5316_v12  ;;  %v4234_v63 = vunpack.c.l.bf16 %v4215_v34 }
 0x320   :  { %4859 = vmatpush.bf16.msrb.mxu1 %v5298_v24  ;;  %v3995_v42 = vpop.f32.mrf.mxu2 }
 0x321   :  { %v3996_v61 = vadd.f32 %v3995_v42, %v3983_v8  ;;  %v4008_v3 = vpop.f32.mrf.mxu3  ;;  %4871 = vmatpush.bf16.msrb.mxu2 %v5307_v1 }
 0x322   :  { %4847 = vmatpush.bf16.msrb.mxu0 %v5289_v25  ;;  %4884 = vmatpush.bf16.msrb.mxu3 %v5315_v17  ;;  %v4219_v25 = vperm.slane %v4217_v15, 0 }
 0x323   :  { %v6222_v26 = vadd.f32 %v4008_v3, %v3996_v61 }
 0x324   :  { %4860 = vmatpush.bf16.msrb.mxu1 %v5297_v54  ;;  %v4235_v4 = vunpack.c.l.bf16 %v4219_v25 }
 0x325   :  { %4848 = vmatmul.bf16.vlgmr.msrb.gmra.mxu0 %v4268_v46  ;;  %4872 = vmatpush.bf16.msrb.mxu2 %v5306_v9  ;;  %v4140_v27 = vmul.f32 %v4124_v14, %v6222_v26 }
 0x326   :  { %4885 = vmatpush.bf16.msrb.mxu3 %v5314_v41 }
 0x327   :  { %4861 = vmatmul.bf16.vlgmr.msrb.gmra.mxu1 %v4269_v5 }
 0x328   :  { %v3997_v18 = vpop.f32.mrf.mxu2 }
 0x329   :  { %v4010_v32 = vpop.f32.mrf.mxu3  ;;  %4873 = vmatpush.bf16.msrb.mxu2 %v5305_v31 }
 0x32a   :  { %4886 = vmatpush.bf16.msrb.mxu3 %v5313_v13 }
 0x339   :  { %v4021_v36 = vpop.f32.mrf.mxu0 }
 0x33b   :  { %v4034_v29 = vpop.f32.mrf.mxu1 }
 0x33c   :  { %v4035_v58 = vadd.f32 %v4034_v29, %v4021_v36 }
 0x341   :  { %v4023_v33 = vpop.f32.mrf.mxu0 }
 0x343   :  { %v4036_v55 = vpop.f32.mrf.mxu1 }
 0x34a   :  { %v4047_v59 = vpop.f32.mrf.mxu2 }
 0x34b   :  { %v4060_v52 = vpop.f32.mrf.mxu3  ;;  %v4048_v19 = vadd.f32 %v4047_v59, %v4035_v58 }
 0x34d   :  { %v4061_v21 = vadd.f32 %v4060_v52, %v4048_v19 }
 0x352   :  { %v4049_v53 = vpop.f32.mrf.mxu2 }
 0x353   :  { %v4062_v16 = vpop.f32.mrf.mxu3 }
 0x362   :  { %v4073_v20 = vpop.f32.mrf.mxu0 }
 0x363   :  { %v4074_v7 = vadd.f32 %v4073_v20, %v4061_v21 }
 0x364   :  { %v4086_v62 = vpop.f32.mrf.mxu1 }
 0x365   :  { %v4087_v23 = vadd.f32 %v4086_v62, %v4074_v7 }
 0x36a   :  { %v4075_v50 = vpop.f32.mrf.mxu0 }
 0x36c   :  { %v4088_v48 = vpop.f32.mrf.mxu1 }
 0x36f   :  { %v4099_v38 = vpop.f32.mrf.mxu2 }
 0x370   :  { %v4100_v8 = vadd.f32 %v4099_v38, %v4087_v23  ;;  %v4112_v44 = vpop.f32.mrf.mxu3 }
 0x372   :  { %v4113_v24 = vadd.f32 %v4112_v44, %v4100_v8 }
 0x374   :  { %v4141_v40 = vmul.f32 %v4125_v11, %v4113_v24 }
 0x376   :  { %v4145_v54 = vpack.c.bf16 %v4141_v40, %v4140_v27 }
 0x377   :  { %v4101_v46 = vpop.f32.mrf.mxu2 }
 0x378   :  { %v4226_v5 = vunpack.c.l.bf16 %v4145_v54  ;;  %v4227_v42 = vunpack.c.h.bf16 %v4145_v54  ;;  %v4114_v61 = vpop.f32.mrf.mxu3 }
 0x37a   :  { %v4242_v3 = vadd.f32 %v4234_v63, %v4226_v5  ;;  %v4243_v18 = vadd.f32 %v4235_v4, %v4227_v42 }
 0x37c   :  { %v4262_v32 = vmax.f32 %v4242_v3, 0.0  ;;  %v4263_v22 = vmax.f32 %v4243_v18, 0.0 }
 0x37e   :  { %v4270_v0 = vpack.c.bf16 %v4262_v32, %v4262_v32  ;;  %v4271_v36 = vpack.c.bf16 %v4263_v22, %v4263_v22 }
 0x380   :  { %4874 = vmatmul.bf16.vlgmr.msrb.gmra.mxu2 %v4270_v0  ;;  %4887 = vmatmul.bf16.vlgmr.msrb.gmra.mxu3 %v4271_v36 }
 0x382   :  { %v4797_v29 = vpop.f32.mrf.mxu0 }
 0x383   :  { %v4798_v26 = vadd.f32 %v5334_v28, %v4797_v29 }
 0x384   :  { %v4810_v33 = vpop.f32.mrf.mxu1 }
 0x385   :  { %v4811_v55 = vadd.f32 %v4810_v33, %v4798_v26 }
 0x38a   :  { %v4799_v56 = vpop.f32.mrf.mxu0 }
 0x38c   :  { %v4812_v30 = vpop.f32.mrf.mxu1 }
 0x38f   :  { %v4823_v49 = vpop.f32.mrf.mxu2 }
 0x390   :  { %v4824_v43 = vadd.f32 %v4823_v49, %v4811_v55  ;;  %v4836_v59 = vpop.f32.mrf.mxu3 }
 0x392   :  { %v4837_v52 = vadd.f32 %v4836_v59, %v4824_v43 }
 0x397   :  { %v4825_v37 = vpop.f32.mrf.mxu2 }
 0x398   :  { %v4838_v60 = vpop.f32.mrf.mxu3 }
 0x3a2   :  { %v4849_v35 = vpop.f32.mrf.mxu0 }
 0x3a3   :  { %v4850_v12 = vadd.f32 %v4849_v35, %v4837_v52 }
 0x3a4   :  { %v4862_v53 = vpop.f32.mrf.mxu1 }
 0x3a5   :  { %v4863_v16 = vadd.f32 %v4862_v53, %v4850_v12 }
 0x3aa   :  { %v4851_v1 = vpop.f32.mrf.mxu0 }
 0x3ac   :  { %v4864_v17 = vpop.f32.mrf.mxu1 }
 0x403   :  { %v4875_v9 = vpop.f32.mrf.mxu2  ;;  %v4888_v41 = vpop.f32.mrf.mxu3 }
 0x404   :  { %v4876_v31 = vadd.f32 %v4875_v9, %v4863_v16 }
 0x406   :  { %v4889_v13 = vadd.f32 %v4888_v41, %v4876_v31 }
 0x408   :  { %4892 = vst [vmem:[#allocation14] sm:$0xff] %v4889_v13 }
 0x409   :  { %4903 = dma.vmem_to_hbm [thread:$0]  %s4899_s18, 128, %s4901_s20, [#allocation4]  }
 0x40b   :  { %v4877_v57 = vpop.f32.mrf.mxu2  ;;  %v4890_v45 = vpop.f32.mrf.mxu3 }
 0x40c   :  { %5538 = dma.done.wait [#allocation4], 128  }
 0x40d   :  { %5539 = vsyncadd [#allocation4], 4294967168 }
 0x40e   :  { %4908 = vsyncpa [#allocation3], 1 }
 0x40f   :  { %4909 = vsyncpa [#allocation6], 1 }
 0x410   :  { %4910 = vsyncpa [#allocation9], 1 }
 0x411   :  { %4911 = vsyncpa [#allocation12], 1 }
 0x412   :  { %4912 = vsyncpa [#allocation4], 1 }

</bundles_post_ra>
